<compile_context>
chip_gen: v7x
topology: tpu7x:2x2x1
jax: 0.10.0
libtpu: 0.0.40
codegen_flags: <defaults>
</compile_context>

<pallas_src>
import jax
import jax.numpy as jnp
from jax import lax
from jax.experimental import pallas as pl
from jax.experimental.pallas import tpu as pltpu

BN_EPS = 1e-5


def _conv3x3_bn_relu(v, w_ref, gamma, beta):
    """3x3 conv (pad=1, stride=1) + training-mode BatchNorm2d + ReLU.

    v:      (B, H, W, Cin) float32 activation value (NHWC).
    w_ref:  (9, Cin, Cout) bfloat16 weight ref (taps flattened, ky-major).
    gamma:  (1, Cout) float32, beta: (1, Cout) float32.

    The conv bias is intentionally omitted: training-mode BN subtracts the
    per-channel batch mean, which cancels any per-channel bias exactly.
    """
    B, H, W, Cin = v.shape
    Cout = w_ref.shape[-1]
    n = B * H * W

    # --- W-direction taps: XLU sublane roll + edge-column mask.  Rotations are
    #     modular, so the "reads x+1" tap uses the non-negative shift W-1. ---
    col = lax.broadcasted_iota(jnp.int32, v.shape, 2)
    x_m1 = jnp.where(col == 0, 0.0, pltpu.roll(v, shift=1, axis=2))          # reads x-1
    x_p1 = jnp.where(col == W - 1, 0.0, pltpu.roll(v, shift=W - 1, axis=2))  # reads x+1
    # Flatten in f32 (layout-preserving: W matches the sublane tile) then cast
    # to bf16 so the MXU runs at its native rate with f32 accumulation.
    cols = tuple(c.reshape(n, Cin).astype(jnp.bfloat16) for c in (x_m1, v, x_p1))

    # --- For each kernel row ky: 3 bf16 MXU matmuls on the *unshifted* rows,
    #     then shift the ky-partial OUTPUT along H with tile-aligned zero-concats
    #     (H shifts never touch the (sublane, lane) tile). ---
    u = []
    for ky in range(3):
        acc = jnp.zeros((n, Cout), jnp.float32)
        for kx in range(3):
            acc = acc + jnp.dot(cols[kx], w_ref[ky * 3 + kx],
                                preferred_element_type=jnp.float32)
        u.append(acc.reshape(B, H, W, Cout))

    zrow = jnp.zeros((B, 1, W, Cout), jnp.float32)
    y = u[1]
    y = y + jnp.concatenate([zrow, u[0][:, :H - 1]], axis=1)   # tap row ky=0 reads y-1
    y = y + jnp.concatenate([u[2][:, 1:], zrow], axis=1)       # tap row ky=2 reads y+1

    # --- Training-mode BN folded to one FMA with one-pass stats (f32 sums,
    #     biased variance), fused with ReLU. ---
    y2 = y.reshape(n, Cout)
    s1 = jnp.sum(y2, axis=0, keepdims=True)
    s2 = jnp.sum(y2 * y2, axis=0, keepdims=True)
    mean = s1 * (1.0 / n)
    var = s2 * (1.0 / n) - mean * mean
    scale = gamma * lax.rsqrt(var + BN_EPS)
    shift = beta - mean * scale
    y2 = jnp.maximum(y2 * scale + shift, 0.0)                  # BN + ReLU in one pass
    return y2.reshape(B, H, W, Cout)


def _down_kernel(x_ref,
                 w1_ref, g1_ref, be1_ref,
                 w2_ref, g2_ref, be2_ref,
                 w3_ref, g3_ref, be3_ref,
                 out_ref):
    # x_ref: (B, Hp, 2, Wp, 2*Cin) -- the 2x2 pool window is exposed by pure
    # reshapes in the wrapper (no HBM transpose).  MaxPool2d(2) in-kernel:
    cin = x_ref.shape[-1] // 2
    m = jnp.maximum(x_ref[:, :, 0, :, :], x_ref[:, :, 1, :, :])   # pool the H pair
    pooled = jnp.maximum(m[..., :cin], m[..., cin:])              # pool the W pair

    y = _conv3x3_bn_relu(pooled, w1_ref, g1_ref[...], be1_ref[...])
    y = _conv3x3_bn_relu(y, w2_ref, g2_ref[...], be2_ref[...])
    y = _conv3x3_bn_relu(y, w3_ref, g3_ref[...], be3_ref[...])
    out_ref[...] = y


@jax.jit
def down_forward(x_nchw, params):
    """Pallas implementation of Down.forward.  x_nchw: (B, Cin, H, W) float32."""
    B, Cin, H, W = x_nchw.shape
    Hp, Wp = H // 2, W // 2
    Cout = params["w1"].shape[-1]

    # NCHW -> NHWC is required by the channel-minor kernel layout (the public
    # API keeps PyTorch's NCHW).  The 2x2 pooling window is exposed with pure
    # reshapes only.
    x = jnp.transpose(x_nchw, (0, 2, 3, 1)).reshape(B, Hp, 2, Wp, 2 * Cin)

    def layer(i):
        # Weights in bf16 (MXU-native), taps flattened to a leading axis so the
        # kernel indexes them with a single static ref index.  BN affine params
        # stay f32.  The conv bias params[f"b{i}"] is NOT passed: it is
        # cancelled exactly by the training-mode BN mean subtraction.
        w = params[f"w{i}"]
        return (w.astype(jnp.bfloat16).reshape(9, w.shape[2], w.shape[3]),
                params[f"g{i}"].astype(jnp.float32),
                params[f"be{i}"].astype(jnp.float32))

    args = (x,) + layer(1) + layer(2) + layer(3)
    vmem = pl.BlockSpec(memory_space=pltpu.MemorySpace.VMEM)

    out_nhwc = pl.pallas_call(
        _down_kernel,
        out_shape=jax.ShapeDtypeStruct((B, Hp, Wp, Cout), jnp.float32),
        in_specs=[vmem] * len(args),
        out_specs=vmem,
        compiler_params=pltpu.CompilerParams(
            vmem_limit_bytes=32 * 1024 * 1024),
    )(*args)
    return jnp.transpose(out_nhwc, (0, 3, 1, 2))                  # NHWC -> NCHW


def down_reference(x_nchw, p, conv_dtype=jnp.float32):
    """Pure-JAX reference of the PyTorch module (training-mode BN, with bias)."""
    x = jnp.transpose(x_nchw, (0, 2, 3, 1))
    B, H, W, C = x.shape
    x = x.reshape(B, H // 2, 2, W // 2, 2, C).max(axis=(2, 4))

    def block(y, w, b, g, be):
        out = lax.conv_general_dilated(
            y.astype(conv_dtype), w.astype(conv_dtype), (1, 1),
            [(1, 1), (1, 1)], dimension_numbers=("NHWC", "HWIO", "NHWC"),
            preferred_element_type=jnp.float32)
        out = out + b.reshape(1, 1, 1, -1)
        m = out.mean(axis=(0, 1, 2), keepdims=True)
        v = ((out - m) ** 2).mean(axis=(0, 1, 2), keepdims=True)
        out = (out - m) * lax.rsqrt(v + BN_EPS)
        out = out * g.reshape(1, 1, 1, -1) + be.reshape(1, 1, 1, -1)
        return jnp.maximum(out, 0.0)

    y = block(x, p["w1"], p["b1"], p["g1"], p["be1"])
    y = block(y, p["w2"], p["b2"], p["g2"], p["be2"])
    y = block(y, p["w3"], p["b3"], p["g3"], p["be3"])
    return jnp.transpose(y, (0, 3, 1, 2))


def make_params(key, cin, cout):
    """Deterministic synthetic parameters. Conv weights are HWIO (3,3,Ci,Co)."""
    ks = jax.random.split(key, 12)

    def conv(k, ci, co, scale):
        return jax.random.normal(k, (3, 3, ci, co), jnp.float32) * scale

    def vec(k, co, base, scale):
        return base + scale * jax.random.normal(k, (1, co), jnp.float32)

    return {
        "w1": conv(ks[0], cin, cout, 0.2),  "b1": vec(ks[1], cout, 0.0, 0.1),
        "g1": vec(ks[2], cout, 1.0, 0.1),   "be1": vec(ks[3], cout, 0.0, 0.1),
        "w2": conv(ks[4], cout, cout, 0.2), "b2": vec(ks[5], cout, 0.0, 0.1),
        "g2": vec(ks[6], cout, 1.0, 0.1),   "be2": vec(ks[7], cout, 0.0, 0.1),
        "w3": conv(ks[8], cout, cout, 0.2), "b3": vec(ks[9], cout, 0.0, 0.1),
        "g3": vec(ks[10], cout, 1.0, 0.1),  "be3": vec(ks[11], cout, 0.0, 0.1),
    }


if __name__ == "__main__":
    B, Cin, Cout, H, W = 2, 4, 8, 16, 16
    key = jax.random.PRNGKey(0)
    k_x, k_p = jax.random.split(key)
    x = jax.random.normal(k_x, (B, Cin, H, W), jnp.float32)
    params = make_params(k_p, Cin, Cout)

    out = jax.block_until_ready(down_forward(x, params))
    assert out.shape == (B, Cout, H // 2, W // 2), out.shape

    # Reference running the module's exact ops with the same bf16 conv-operand
    # policy as the kernel (isolates kernel correctness from mixed precision).
    ref_bf16 = jax.block_until_ready(
        down_reference(x, params, conv_dtype=jnp.bfloat16))
    err_bf16 = float(jnp.max(jnp.abs(out - ref_bf16)))
    assert err_bf16 < 2e-2, f"max abs error vs bf16-policy reference: {err_bf16}"

    # Loose envelope vs the pure-f32 module (bf16 mixed-precision tolerance
    # accumulated over three batch-normalized layers).
    ref_f32 = jax.block_until_ready(
        down_reference(x, params, conv_dtype=jnp.float32))
    err_f32 = float(jnp.max(jnp.abs(out - ref_f32)))
    assert err_f32 < 3.5e-1, f"max abs error vs f32 reference: {err_f32}"

    print("KERNEL_OK")
</pallas_src>

<mosaic_0001>
module attributes {stable_mosaic.version = 11 : i64} {
  func.func @_down_kernel(%arg0: memref<2x8x2x8x8xf32, #tpu.memory_space<vmem>>, %arg1: memref<9x4x8xbf16, #tpu.memory_space<vmem>>, %arg2: memref<1x8xf32, #tpu.memory_space<vmem>>, %arg3: memref<1x8xf32, #tpu.memory_space<vmem>>, %arg4: memref<9x8x8xbf16, #tpu.memory_space<vmem>>, %arg5: memref<1x8xf32, #tpu.memory_space<vmem>>, %arg6: memref<1x8xf32, #tpu.memory_space<vmem>>, %arg7: memref<9x8x8xbf16, #tpu.memory_space<vmem>>, %arg8: memref<1x8xf32, #tpu.memory_space<vmem>>, %arg9: memref<1x8xf32, #tpu.memory_space<vmem>>, %arg10: memref<2x8x8x8xf32, #tpu.memory_space<vmem>>) attributes {dimension_semantics = [], scalar_prefetch = 0 : i64, scratch_operands = 0 : i64, tpu.core_type = #tpu.core_type<tc>} {
    %c0 = arith.constant 0 : index
    %c0_0 = arith.constant 0 : index
    %c0_1 = arith.constant 0 : index
    %c0_2 = arith.constant 0 : index
    %c0_3 = arith.constant 0 : index
    %0 = vector.load %arg0[%c0, %c0_0, %c0_1, %c0_2, %c0_3] : memref<2x8x2x8x8xf32, #tpu.memory_space<vmem>>, vector<2x8x1x8x8xf32>
    %1 = vector.shape_cast %0 : vector<2x8x1x8x8xf32> to vector<2x8x8x8xf32>
    %c0_4 = arith.constant 0 : index
    %c0_5 = arith.constant 0 : index
    %c1 = arith.constant 1 : index
    %c0_6 = arith.constant 0 : index
    %c0_7 = arith.constant 0 : index
    %2 = vector.load %arg0[%c0_4, %c0_5, %c1, %c0_6, %c0_7] : memref<2x8x2x8x8xf32, #tpu.memory_space<vmem>>, vector<2x8x1x8x8xf32>
    %3 = vector.shape_cast %2 : vector<2x8x1x8x8xf32> to vector<2x8x8x8xf32>
    %4 = arith.maximumf %1, %3 : vector<2x8x8x8xf32>
    %5 = vector.extract_strided_slice %4 {offsets = [0, 0, 0, 0], sizes = [2, 8, 8, 4], strides = [1, 1, 1, 1]} : vector<2x8x8x8xf32> to vector<2x8x8x4xf32>
    %6 = vector.extract_strided_slice %4 {offsets = [0, 0, 0, 4], sizes = [2, 8, 8, 4], strides = [1, 1, 1, 1]} : vector<2x8x8x8xf32> to vector<2x8x8x4xf32>
    %7 = arith.maximumf %5, %6 : vector<2x8x8x4xf32>
    %c0_8 = arith.constant 0 : index
    %c0_9 = arith.constant 0 : index
    %8 = vector.load %arg2[%c0_8, %c0_9] : memref<1x8xf32, #tpu.memory_space<vmem>>, vector<1x8xf32>
    %c0_10 = arith.constant 0 : index
    %c0_11 = arith.constant 0 : index
    %9 = vector.load %arg3[%c0_10, %c0_11] : memref<1x8xf32, #tpu.memory_space<vmem>>, vector<1x8xf32>
    %10 = tpu.iota {dimensions = array<i32: 2>} : vector<2x8x8x4xi32>
    %c0_i32 = arith.constant 0 : i32
    %11 = vector.broadcast %c0_i32 : i32 to vector<2x8x8x4xi32>
    %12 = arith.cmpi eq, %10, %11 : vector<2x8x8x4xi32>
    %c1_i32 = arith.constant 1 : i32
    %13 = tpu.dynamic_rotate %7 by %c1_i32 dim 2 : vector<2x8x8x4xf32>, i32 -> vector<2x8x8x4xf32>
    %cst = arith.constant 0.000000e+00 : f32
    %14 = vector.broadcast %cst : f32 to vector<2x8x8x4xf32>
    %15 = arith.select %12, %14, %13 : vector<2x8x8x4xi1>, vector<2x8x8x4xf32>
    %c7_i32 = arith.constant 7 : i32
    %16 = vector.broadcast %c7_i32 : i32 to vector<2x8x8x4xi32>
    %17 = arith.cmpi eq, %10, %16 : vector<2x8x8x4xi32>
    %c7_i32_12 = arith.constant 7 : i32
    %18 = tpu.dynamic_rotate %7 by %c7_i32_12 dim 2 : vector<2x8x8x4xf32>, i32 -> vector<2x8x8x4xf32>
    %cst_13 = arith.constant 0.000000e+00 : f32
    %19 = vector.broadcast %cst_13 : f32 to vector<2x8x8x4xf32>
    %20 = arith.select %17, %19, %18 : vector<2x8x8x4xi1>, vector<2x8x8x4xf32>
    %21 = vector.shape_cast %15 : vector<2x8x8x4xf32> to vector<128x4xf32>
    %22 = arith.truncf %21 : vector<128x4xf32> to vector<128x4xbf16>
    %23 = vector.shape_cast %7 : vector<2x8x8x4xf32> to vector<128x4xf32>
    %24 = arith.truncf %23 : vector<128x4xf32> to vector<128x4xbf16>
    %25 = vector.shape_cast %20 : vector<2x8x8x4xf32> to vector<128x4xf32>
    %26 = arith.truncf %25 : vector<128x4xf32> to vector<128x4xbf16>
    %cst_14 = arith.constant 0.000000e+00 : f32
    %27 = vector.broadcast %cst_14 : f32 to vector<128x8xf32>
    %c0_15 = arith.constant 0 : index
    %c0_16 = arith.constant 0 : index
    %c0_17 = arith.constant 0 : index
    %28 = vector.load %arg1[%c0_15, %c0_16, %c0_17] : memref<9x4x8xbf16, #tpu.memory_space<vmem>>, vector<1x4x8xbf16>
    %29 = vector.shape_cast %28 : vector<1x4x8xbf16> to vector<4x8xbf16>
    %cst_18 = arith.constant dense<0.000000e+00> : vector<128x8xf32>
    %30 = tpu.matmul %22, %29, %cst_18 {dimension_numbers = #tpu.dot_dimension_numbers<[1], [0], [0], [1], [0, 0, 1, 1], [], []>} : vector<128x4xbf16>, vector<4x8xbf16>, vector<128x8xf32> -> vector<128x8xf32>
    %31 = arith.addf %27, %30 : vector<128x8xf32>
    %c1_19 = arith.constant 1 : index
    %c0_20 = arith.constant 0 : index
    %c0_21 = arith.constant 0 : index
    %32 = vector.load %arg1[%c1_19, %c0_20, %c0_21] : memref<9x4x8xbf16, #tpu.memory_space<vmem>>, vector<1x4x8xbf16>
    %33 = vector.shape_cast %32 : vector<1x4x8xbf16> to vector<4x8xbf16>
    %cst_22 = arith.constant dense<0.000000e+00> : vector<128x8xf32>
    %34 = tpu.matmul %24, %33, %cst_22 {dimension_numbers = #tpu.dot_dimension_numbers<[1], [0], [0], [1], [0, 0, 1, 1], [], []>} : vector<128x4xbf16>, vector<4x8xbf16>, vector<128x8xf32> -> vector<128x8xf32>
    %35 = arith.addf %31, %34 : vector<128x8xf32>
    %c2 = arith.constant 2 : index
    %c0_23 = arith.constant 0 : index
    %c0_24 = arith.constant 0 : index
    %36 = vector.load %arg1[%c2, %c0_23, %c0_24] : memref<9x4x8xbf16, #tpu.memory_space<vmem>>, vector<1x4x8xbf16>
    %37 = vector.shape_cast %36 : vector<1x4x8xbf16> to vector<4x8xbf16>
    %cst_25 = arith.constant dense<0.000000e+00> : vector<128x8xf32>
    %38 = tpu.matmul %26, %37, %cst_25 {dimension_numbers = #tpu.dot_dimension_numbers<[1], [0], [0], [1], [0, 0, 1, 1], [], []>} : vector<128x4xbf16>, vector<4x8xbf16>, vector<128x8xf32> -> vector<128x8xf32>
    %39 = arith.addf %35, %38 : vector<128x8xf32>
    %40 = vector.shape_cast %39 : vector<128x8xf32> to vector<2x8x8x8xf32>
    %cst_26 = arith.constant 0.000000e+00 : f32
    %41 = vector.broadcast %cst_26 : f32 to vector<128x8xf32>
    %c3 = arith.constant 3 : index
    %c0_27 = arith.constant 0 : index
    %c0_28 = arith.constant 0 : index
    %42 = vector.load %arg1[%c3, %c0_27, %c0_28] : memref<9x4x8xbf16, #tpu.memory_space<vmem>>, vector<1x4x8xbf16>
    %43 = vector.shape_cast %42 : vector<1x4x8xbf16> to vector<4x8xbf16>
    %cst_29 = arith.constant dense<0.000000e+00> : vector<128x8xf32>
    %44 = tpu.matmul %22, %43, %cst_29 {dimension_numbers = #tpu.dot_dimension_numbers<[1], [0], [0], [1], [0, 0, 1, 1], [], []>} : vector<128x4xbf16>, vector<4x8xbf16>, vector<128x8xf32> -> vector<128x8xf32>
    %45 = arith.addf %41, %44 : vector<128x8xf32>
    %c4 = arith.constant 4 : index
    %c0_30 = arith.constant 0 : index
    %c0_31 = arith.constant 0 : index
    %46 = vector.load %arg1[%c4, %c0_30, %c0_31] : memref<9x4x8xbf16, #tpu.memory_space<vmem>>, vector<1x4x8xbf16>
    %47 = vector.shape_cast %46 : vector<1x4x8xbf16> to vector<4x8xbf16>
    %cst_32 = arith.constant dense<0.000000e+00> : vector<128x8xf32>
    %48 = tpu.matmul %24, %47, %cst_32 {dimension_numbers = #tpu.dot_dimension_numbers<[1], [0], [0], [1], [0, 0, 1, 1], [], []>} : vector<128x4xbf16>, vector<4x8xbf16>, vector<128x8xf32> -> vector<128x8xf32>
    %49 = arith.addf %45, %48 : vector<128x8xf32>
    %c5 = arith.constant 5 : index
    %c0_33 = arith.constant 0 : index
    %c0_34 = arith.constant 0 : index
    %50 = vector.load %arg1[%c5, %c0_33, %c0_34] : memref<9x4x8xbf16, #tpu.memory_space<vmem>>, vector<1x4x8xbf16>
    %51 = vector.shape_cast %50 : vector<1x4x8xbf16> to vector<4x8xbf16>
    %cst_35 = arith.constant dense<0.000000e+00> : vector<128x8xf32>
    %52 = tpu.matmul %26, %51, %cst_35 {dimension_numbers = #tpu.dot_dimension_numbers<[1], [0], [0], [1], [0, 0, 1, 1], [], []>} : vector<128x4xbf16>, vector<4x8xbf16>, vector<128x8xf32> -> vector<128x8xf32>
    %53 = arith.addf %49, %52 : vector<128x8xf32>
    %54 = vector.shape_cast %53 : vector<128x8xf32> to vector<2x8x8x8xf32>
    %cst_36 = arith.constant 0.000000e+00 : f32
    %55 = vector.broadcast %cst_36 : f32 to vector<128x8xf32>
    %c6 = arith.constant 6 : index
    %c0_37 = arith.constant 0 : index
    %c0_38 = arith.constant 0 : index
    %56 = vector.load %arg1[%c6, %c0_37, %c0_38] : memref<9x4x8xbf16, #tpu.memory_space<vmem>>, vector<1x4x8xbf16>
    %57 = vector.shape_cast %56 : vector<1x4x8xbf16> to vector<4x8xbf16>
    %cst_39 = arith.constant dense<0.000000e+00> : vector<128x8xf32>
    %58 = tpu.matmul %22, %57, %cst_39 {dimension_numbers = #tpu.dot_dimension_numbers<[1], [0], [0], [1], [0, 0, 1, 1], [], []>} : vector<128x4xbf16>, vector<4x8xbf16>, vector<128x8xf32> -> vector<128x8xf32>
    %59 = arith.addf %55, %58 : vector<128x8xf32>
    %c7 = arith.constant 7 : index
    %c0_40 = arith.constant 0 : index
    %c0_41 = arith.constant 0 : index
    %60 = vector.load %arg1[%c7, %c0_40, %c0_41] : memref<9x4x8xbf16, #tpu.memory_space<vmem>>, vector<1x4x8xbf16>
    %61 = vector.shape_cast %60 : vector<1x4x8xbf16> to vector<4x8xbf16>
    %cst_42 = arith.constant dense<0.000000e+00> : vector<128x8xf32>
    %62 = tpu.matmul %24, %61, %cst_42 {dimension_numbers = #tpu.dot_dimension_numbers<[1], [0], [0], [1], [0, 0, 1, 1], [], []>} : vector<128x4xbf16>, vector<4x8xbf16>, vector<128x8xf32> -> vector<128x8xf32>
    %63 = arith.addf %59, %62 : vector<128x8xf32>
    %c8 = arith.constant 8 : index
    %c0_43 = arith.constant 0 : index
    %c0_44 = arith.constant 0 : index
    %64 = vector.load %arg1[%c8, %c0_43, %c0_44] : memref<9x4x8xbf16, #tpu.memory_space<vmem>>, vector<1x4x8xbf16>
    %65 = vector.shape_cast %64 : vector<1x4x8xbf16> to vector<4x8xbf16>
    %cst_45 = arith.constant dense<0.000000e+00> : vector<128x8xf32>
    %66 = tpu.matmul %26, %65, %cst_45 {dimension_numbers = #tpu.dot_dimension_numbers<[1], [0], [0], [1], [0, 0, 1, 1], [], []>} : vector<128x4xbf16>, vector<4x8xbf16>, vector<128x8xf32> -> vector<128x8xf32>
    %67 = arith.addf %63, %66 : vector<128x8xf32>
    %68 = vector.shape_cast %67 : vector<128x8xf32> to vector<2x8x8x8xf32>
    %cst_46 = arith.constant 0.000000e+00 : f32
    %69 = vector.broadcast %cst_46 : f32 to vector<2x1x8x8xf32>
    %70 = vector.extract_strided_slice %40 {offsets = [0, 0, 0, 0], sizes = [2, 7, 8, 8], strides = [1, 1, 1, 1]} : vector<2x8x8x8xf32> to vector<2x7x8x8xf32>
    %71 = tpu.concatenate %69, %70 in 1 : vector<2x1x8x8xf32>, vector<2x7x8x8xf32> -> vector<2x8x8x8xf32>
    %72 = arith.addf %54, %71 : vector<2x8x8x8xf32>
    %73 = vector.extract_strided_slice %68 {offsets = [0, 1, 0, 0], sizes = [2, 7, 8, 8], strides = [1, 1, 1, 1]} : vector<2x8x8x8xf32> to vector<2x7x8x8xf32>
    %74 = tpu.concatenate %73, %69 in 1 : vector<2x7x8x8xf32>, vector<2x1x8x8xf32> -> vector<2x8x8x8xf32>
    %75 = arith.addf %72, %74 : vector<2x8x8x8xf32>
    %76 = vector.shape_cast %75 : vector<2x8x8x8xf32> to vector<128x8xf32>
    %cst_47 = arith.constant dense<0.000000e+00> : vector<8xf32>
    %77 = vector.multi_reduction <add>, %76, %cst_47 [0] : vector<128x8xf32> to vector<8xf32>
    %78 = vector.shape_cast %77 : vector<8xf32> to vector<1x8xf32>
    %79 = arith.mulf %76, %76 : vector<128x8xf32>
    %cst_48 = arith.constant dense<0.000000e+00> : vector<8xf32>
    %80 = vector.multi_reduction <add>, %79, %cst_48 [0] : vector<128x8xf32> to vector<8xf32>
    %81 = vector.shape_cast %80 : vector<8xf32> to vector<1x8xf32>
    %cst_49 = arith.constant 7.812500e-03 : f32
    %82 = vector.broadcast %cst_49 : f32 to vector<1x8xf32>
    %83 = arith.mulf %78, %82 : vector<1x8xf32>
    %cst_50 = arith.constant 7.812500e-03 : f32
    %84 = vector.broadcast %cst_50 : f32 to vector<1x8xf32>
    %85 = arith.mulf %81, %84 : vector<1x8xf32>
    %86 = arith.mulf %83, %83 : vector<1x8xf32>
    %87 = arith.subf %85, %86 : vector<1x8xf32>
    %cst_51 = arith.constant 9.99999974E-6 : f32
    %88 = vector.broadcast %cst_51 : f32 to vector<1x8xf32>
    %89 = arith.addf %87, %88 : vector<1x8xf32>
    %90 = math.rsqrt %89 : vector<1x8xf32>
    %91 = arith.mulf %8, %90 : vector<1x8xf32>
    %92 = arith.mulf %83, %91 : vector<1x8xf32>
    %93 = arith.subf %9, %92 : vector<1x8xf32>
    %94 = vector.broadcast %91 : vector<1x8xf32> to vector<128x8xf32>
    %95 = arith.mulf %76, %94 : vector<128x8xf32>
    %96 = vector.broadcast %93 : vector<1x8xf32> to vector<128x8xf32>
    %97 = arith.addf %95, %96 : vector<128x8xf32>
    %cst_52 = arith.constant 0.000000e+00 : f32
    %98 = vector.broadcast %cst_52 : f32 to vector<128x8xf32>
    %99 = arith.maximumf %97, %98 : vector<128x8xf32>
    %100 = vector.shape_cast %99 : vector<128x8xf32> to vector<2x8x8x8xf32>
    %c0_53 = arith.constant 0 : index
    %c0_54 = arith.constant 0 : index
    %101 = vector.load %arg5[%c0_53, %c0_54] : memref<1x8xf32, #tpu.memory_space<vmem>>, vector<1x8xf32>
    %c0_55 = arith.constant 0 : index
    %c0_56 = arith.constant 0 : index
    %102 = vector.load %arg6[%c0_55, %c0_56] : memref<1x8xf32, #tpu.memory_space<vmem>>, vector<1x8xf32>
    %103 = tpu.iota {dimensions = array<i32: 2>} : vector<2x8x8x8xi32>
    %c0_i32_57 = arith.constant 0 : i32
    %104 = vector.broadcast %c0_i32_57 : i32 to vector<2x8x8x8xi32>
    %105 = arith.cmpi eq, %103, %104 : vector<2x8x8x8xi32>
    %c1_i32_58 = arith.constant 1 : i32
    %106 = tpu.dynamic_rotate %100 by %c1_i32_58 dim 2 : vector<2x8x8x8xf32>, i32 -> vector<2x8x8x8xf32>
    %cst_59 = arith.constant 0.000000e+00 : f32
    %107 = vector.broadcast %cst_59 : f32 to vector<2x8x8x8xf32>
    %108 = arith.select %105, %107, %106 : vector<2x8x8x8xi1>, vector<2x8x8x8xf32>
    %c7_i32_60 = arith.constant 7 : i32
    %109 = vector.broadcast %c7_i32_60 : i32 to vector<2x8x8x8xi32>
    %110 = arith.cmpi eq, %103, %109 : vector<2x8x8x8xi32>
    %c7_i32_61 = arith.constant 7 : i32
    %111 = tpu.dynamic_rotate %100 by %c7_i32_61 dim 2 : vector<2x8x8x8xf32>, i32 -> vector<2x8x8x8xf32>
    %cst_62 = arith.constant 0.000000e+00 : f32
    %112 = vector.broadcast %cst_62 : f32 to vector<2x8x8x8xf32>
    %113 = arith.select %110, %112, %111 : vector<2x8x8x8xi1>, vector<2x8x8x8xf32>
    %114 = vector.shape_cast %108 : vector<2x8x8x8xf32> to vector<128x8xf32>
    %115 = arith.truncf %114 : vector<128x8xf32> to vector<128x8xbf16>
    %116 = vector.shape_cast %100 : vector<2x8x8x8xf32> to vector<128x8xf32>
    %117 = arith.truncf %116 : vector<128x8xf32> to vector<128x8xbf16>
    %118 = vector.shape_cast %113 : vector<2x8x8x8xf32> to vector<128x8xf32>
    %119 = arith.truncf %118 : vector<128x8xf32> to vector<128x8xbf16>
    %cst_63 = arith.constant 0.000000e+00 : f32
    %120 = vector.broadcast %cst_63 : f32 to vector<128x8xf32>
    %c0_64 = arith.constant 0 : index
    %c0_65 = arith.constant 0 : index
    %c0_66 = arith.constant 0 : index
    %121 = vector.load %arg4[%c0_64, %c0_65, %c0_66] : memref<9x8x8xbf16, #tpu.memory_space<vmem>>, vector<1x8x8xbf16>
    %122 = vector.shape_cast %121 : vector<1x8x8xbf16> to vector<8x8xbf16>
    %cst_67 = arith.constant dense<0.000000e+00> : vector<128x8xf32>
    %123 = tpu.matmul %115, %122, %cst_67 {dimension_numbers = #tpu.dot_dimension_numbers<[1], [0], [0], [1], [0, 0, 1, 1], [], []>} : vector<128x8xbf16>, vector<8x8xbf16>, vector<128x8xf32> -> vector<128x8xf32>
    %124 = arith.addf %120, %123 : vector<128x8xf32>
    %c1_68 = arith.constant 1 : index
    %c0_69 = arith.constant 0 : index
    %c0_70 = arith.constant 0 : index
    %125 = vector.load %arg4[%c1_68, %c0_69, %c0_70] : memref<9x8x8xbf16, #tpu.memory_space<vmem>>, vector<1x8x8xbf16>
    %126 = vector.shape_cast %125 : vector<1x8x8xbf16> to vector<8x8xbf16>
    %cst_71 = arith.constant dense<0.000000e+00> : vector<128x8xf32>
    %127 = tpu.matmul %117, %126, %cst_71 {dimension_numbers = #tpu.dot_dimension_numbers<[1], [0], [0], [1], [0, 0, 1, 1], [], []>} : vector<128x8xbf16>, vector<8x8xbf16>, vector<128x8xf32> -> vector<128x8xf32>
    %128 = arith.addf %124, %127 : vector<128x8xf32>
    %c2_72 = arith.constant 2 : index
    %c0_73 = arith.constant 0 : index
    %c0_74 = arith.constant 0 : index
    %129 = vector.load %arg4[%c2_72, %c0_73, %c0_74] : memref<9x8x8xbf16, #tpu.memory_space<vmem>>, vector<1x8x8xbf16>
    %130 = vector.shape_cast %129 : vector<1x8x8xbf16> to vector<8x8xbf16>
    %cst_75 = arith.constant dense<0.000000e+00> : vector<128x8xf32>
    %131 = tpu.matmul %119, %130, %cst_75 {dimension_numbers = #tpu.dot_dimension_numbers<[1], [0], [0], [1], [0, 0, 1, 1], [], []>} : vector<128x8xbf16>, vector<8x8xbf16>, vector<128x8xf32> -> vector<128x8xf32>
    %132 = arith.addf %128, %131 : vector<128x8xf32>
    %133 = vector.shape_cast %132 : vector<128x8xf32> to vector<2x8x8x8xf32>
    %cst_76 = arith.constant 0.000000e+00 : f32
    %134 = vector.broadcast %cst_76 : f32 to vector<128x8xf32>
    %c3_77 = arith.constant 3 : index
    %c0_78 = arith.constant 0 : index
    %c0_79 = arith.constant 0 : index
    %135 = vector.load %arg4[%c3_77, %c0_78, %c0_79] : memref<9x8x8xbf16, #tpu.memory_space<vmem>>, vector<1x8x8xbf16>
    %136 = vector.shape_cast %135 : vector<1x8x8xbf16> to vector<8x8xbf16>
    %cst_80 = arith.constant dense<0.000000e+00> : vector<128x8xf32>
    %137 = tpu.matmul %115, %136, %cst_80 {dimension_numbers = #tpu.dot_dimension_numbers<[1], [0], [0], [1], [0, 0, 1, 1], [], []>} : vector<128x8xbf16>, vector<8x8xbf16>, vector<128x8xf32> -> vector<128x8xf32>
    %138 = arith.addf %134, %137 : vector<128x8xf32>
    %c4_81 = arith.constant 4 : index
    %c0_82 = arith.constant 0 : index
    %c0_83 = arith.constant 0 : index
    %139 = vector.load %arg4[%c4_81, %c0_82, %c0_83] : memref<9x8x8xbf16, #tpu.memory_space<vmem>>, vector<1x8x8xbf16>
    %140 = vector.shape_cast %139 : vector<1x8x8xbf16> to vector<8x8xbf16>
    %cst_84 = arith.constant dense<0.000000e+00> : vector<128x8xf32>
    %141 = tpu.matmul %117, %140, %cst_84 {dimension_numbers = #tpu.dot_dimension_numbers<[1], [0], [0], [1], [0, 0, 1, 1], [], []>} : vector<128x8xbf16>, vector<8x8xbf16>, vector<128x8xf32> -> vector<128x8xf32>
    %142 = arith.addf %138, %141 : vector<128x8xf32>
    %c5_85 = arith.constant 5 : index
    %c0_86 = arith.constant 0 : index
    %c0_87 = arith.constant 0 : index
    %143 = vector.load %arg4[%c5_85, %c0_86, %c0_87] : memref<9x8x8xbf16, #tpu.memory_space<vmem>>, vector<1x8x8xbf16>
    %144 = vector.shape_cast %143 : vector<1x8x8xbf16> to vector<8x8xbf16>
    %cst_88 = arith.constant dense<0.000000e+00> : vector<128x8xf32>
    %145 = tpu.matmul %119, %144, %cst_88 {dimension_numbers = #tpu.dot_dimension_numbers<[1], [0], [0], [1], [0, 0, 1, 1], [], []>} : vector<128x8xbf16>, vector<8x8xbf16>, vector<128x8xf32> -> vector<128x8xf32>
    %146 = arith.addf %142, %145 : vector<128x8xf32>
    %147 = vector.shape_cast %146 : vector<128x8xf32> to vector<2x8x8x8xf32>
    %cst_89 = arith.constant 0.000000e+00 : f32
    %148 = vector.broadcast %cst_89 : f32 to vector<128x8xf32>
    %c6_90 = arith.constant 6 : index
    %c0_91 = arith.constant 0 : index
    %c0_92 = arith.constant 0 : index
    %149 = vector.load %arg4[%c6_90, %c0_91, %c0_92] : memref<9x8x8xbf16, #tpu.memory_space<vmem>>, vector<1x8x8xbf16>
    %150 = vector.shape_cast %149 : vector<1x8x8xbf16> to vector<8x8xbf16>
    %cst_93 = arith.constant dense<0.000000e+00> : vector<128x8xf32>
    %151 = tpu.matmul %115, %150, %cst_93 {dimension_numbers = #tpu.dot_dimension_numbers<[1], [0], [0], [1], [0, 0, 1, 1], [], []>} : vector<128x8xbf16>, vector<8x8xbf16>, vector<128x8xf32> -> vector<128x8xf32>
    %152 = arith.addf %148, %151 : vector<128x8xf32>
    %c7_94 = arith.constant 7 : index
    %c0_95 = arith.constant 0 : index
    %c0_96 = arith.constant 0 : index
    %153 = vector.load %arg4[%c7_94, %c0_95, %c0_96] : memref<9x8x8xbf16, #tpu.memory_space<vmem>>, vector<1x8x8xbf16>
    %154 = vector.shape_cast %153 : vector<1x8x8xbf16> to vector<8x8xbf16>
    %cst_97 = arith.constant dense<0.000000e+00> : vector<128x8xf32>
    %155 = tpu.matmul %117, %154, %cst_97 {dimension_numbers = #tpu.dot_dimension_numbers<[1], [0], [0], [1], [0, 0, 1, 1], [], []>} : vector<128x8xbf16>, vector<8x8xbf16>, vector<128x8xf32> -> vector<128x8xf32>
    %156 = arith.addf %152, %155 : vector<128x8xf32>
    %c8_98 = arith.constant 8 : index
    %c0_99 = arith.constant 0 : index
    %c0_100 = arith.constant 0 : index
    %157 = vector.load %arg4[%c8_98, %c0_99, %c0_100] : memref<9x8x8xbf16, #tpu.memory_space<vmem>>, vector<1x8x8xbf16>
    %158 = vector.shape_cast %157 : vector<1x8x8xbf16> to vector<8x8xbf16>
    %cst_101 = arith.constant dense<0.000000e+00> : vector<128x8xf32>
    %159 = tpu.matmul %119, %158, %cst_101 {dimension_numbers = #tpu.dot_dimension_numbers<[1], [0], [0], [1], [0, 0, 1, 1], [], []>} : vector<128x8xbf16>, vector<8x8xbf16>, vector<128x8xf32> -> vector<128x8xf32>
    %160 = arith.addf %156, %159 : vector<128x8xf32>
    %161 = vector.shape_cast %160 : vector<128x8xf32> to vector<2x8x8x8xf32>
    %cst_102 = arith.constant 0.000000e+00 : f32
    %162 = vector.broadcast %cst_102 : f32 to vector<2x1x8x8xf32>
    %163 = vector.extract_strided_slice %133 {offsets = [0, 0, 0, 0], sizes = [2, 7, 8, 8], strides = [1, 1, 1, 1]} : vector<2x8x8x8xf32> to vector<2x7x8x8xf32>
    %164 = tpu.concatenate %162, %163 in 1 : vector<2x1x8x8xf32>, vector<2x7x8x8xf32> -> vector<2x8x8x8xf32>
    %165 = arith.addf %147, %164 : vector<2x8x8x8xf32>
    %166 = vector.extract_strided_slice %161 {offsets = [0, 1, 0, 0], sizes = [2, 7, 8, 8], strides = [1, 1, 1, 1]} : vector<2x8x8x8xf32> to vector<2x7x8x8xf32>
    %167 = tpu.concatenate %166, %162 in 1 : vector<2x7x8x8xf32>, vector<2x1x8x8xf32> -> vector<2x8x8x8xf32>
    %168 = arith.addf %165, %167 : vector<2x8x8x8xf32>
    %169 = vector.shape_cast %168 : vector<2x8x8x8xf32> to vector<128x8xf32>
    %cst_103 = arith.constant dense<0.000000e+00> : vector<8xf32>
    %170 = vector.multi_reduction <add>, %169, %cst_103 [0] : vector<128x8xf32> to vector<8xf32>
    %171 = vector.shape_cast %170 : vector<8xf32> to vector<1x8xf32>
    %172 = arith.mulf %169, %169 : vector<128x8xf32>
    %cst_104 = arith.constant dense<0.000000e+00> : vector<8xf32>
    %173 = vector.multi_reduction <add>, %172, %cst_104 [0] : vector<128x8xf32> to vector<8xf32>
    %174 = vector.shape_cast %173 : vector<8xf32> to vector<1x8xf32>
    %cst_105 = arith.constant 7.812500e-03 : f32
    %175 = vector.broadcast %cst_105 : f32 to vector<1x8xf32>
    %176 = arith.mulf %171, %175 : vector<1x8xf32>
    %cst_106 = arith.constant 7.812500e-03 : f32
    %177 = vector.broadcast %cst_106 : f32 to vector<1x8xf32>
    %178 = arith.mulf %174, %177 : vector<1x8xf32>
    %179 = arith.mulf %176, %176 : vector<1x8xf32>
    %180 = arith.subf %178, %179 : vector<1x8xf32>
    %cst_107 = arith.constant 9.99999974E-6 : f32
    %181 = vector.broadcast %cst_107 : f32 to vector<1x8xf32>
    %182 = arith.addf %180, %181 : vector<1x8xf32>
    %183 = math.rsqrt %182 : vector<1x8xf32>
    %184 = arith.mulf %101, %183 : vector<1x8xf32>
    %185 = arith.mulf %176, %184 : vector<1x8xf32>
    %186 = arith.subf %102, %185 : vector<1x8xf32>
    %187 = vector.broadcast %184 : vector<1x8xf32> to vector<128x8xf32>
    %188 = arith.mulf %169, %187 : vector<128x8xf32>
    %189 = vector.broadcast %186 : vector<1x8xf32> to vector<128x8xf32>
    %190 = arith.addf %188, %189 : vector<128x8xf32>
    %cst_108 = arith.constant 0.000000e+00 : f32
    %191 = vector.broadcast %cst_108 : f32 to vector<128x8xf32>
    %192 = arith.maximumf %190, %191 : vector<128x8xf32>
    %193 = vector.shape_cast %192 : vector<128x8xf32> to vector<2x8x8x8xf32>
    %c0_109 = arith.constant 0 : index
    %c0_110 = arith.constant 0 : index
    %194 = vector.load %arg8[%c0_109, %c0_110] : memref<1x8xf32, #tpu.memory_space<vmem>>, vector<1x8xf32>
    %c0_111 = arith.constant 0 : index
    %c0_112 = arith.constant 0 : index
    %195 = vector.load %arg9[%c0_111, %c0_112] : memref<1x8xf32, #tpu.memory_space<vmem>>, vector<1x8xf32>
    %196 = tpu.iota {dimensions = array<i32: 2>} : vector<2x8x8x8xi32>
    %c0_i32_113 = arith.constant 0 : i32
    %197 = vector.broadcast %c0_i32_113 : i32 to vector<2x8x8x8xi32>
    %198 = arith.cmpi eq, %196, %197 : vector<2x8x8x8xi32>
    %c1_i32_114 = arith.constant 1 : i32
    %199 = tpu.dynamic_rotate %193 by %c1_i32_114 dim 2 : vector<2x8x8x8xf32>, i32 -> vector<2x8x8x8xf32>
    %cst_115 = arith.constant 0.000000e+00 : f32
    %200 = vector.broadcast %cst_115 : f32 to vector<2x8x8x8xf32>
    %201 = arith.select %198, %200, %199 : vector<2x8x8x8xi1>, vector<2x8x8x8xf32>
    %c7_i32_116 = arith.constant 7 : i32
    %202 = vector.broadcast %c7_i32_116 : i32 to vector<2x8x8x8xi32>
    %203 = arith.cmpi eq, %196, %202 : vector<2x8x8x8xi32>
    %c7_i32_117 = arith.constant 7 : i32
    %204 = tpu.dynamic_rotate %193 by %c7_i32_117 dim 2 : vector<2x8x8x8xf32>, i32 -> vector<2x8x8x8xf32>
    %cst_118 = arith.constant 0.000000e+00 : f32
    %205 = vector.broadcast %cst_118 : f32 to vector<2x8x8x8xf32>
    %206 = arith.select %203, %205, %204 : vector<2x8x8x8xi1>, vector<2x8x8x8xf32>
    %207 = vector.shape_cast %201 : vector<2x8x8x8xf32> to vector<128x8xf32>
    %208 = arith.truncf %207 : vector<128x8xf32> to vector<128x8xbf16>
    %209 = vector.shape_cast %193 : vector<2x8x8x8xf32> to vector<128x8xf32>
    %210 = arith.truncf %209 : vector<128x8xf32> to vector<128x8xbf16>
    %211 = vector.shape_cast %206 : vector<2x8x8x8xf32> to vector<128x8xf32>
    %212 = arith.truncf %211 : vector<128x8xf32> to vector<128x8xbf16>
    %cst_119 = arith.constant 0.000000e+00 : f32
    %213 = vector.broadcast %cst_119 : f32 to vector<128x8xf32>
    %c0_120 = arith.constant 0 : index
    %c0_121 = arith.constant 0 : index
    %c0_122 = arith.constant 0 : index
    %214 = vector.load %arg7[%c0_120, %c0_121, %c0_122] : memref<9x8x8xbf16, #tpu.memory_space<vmem>>, vector<1x8x8xbf16>
    %215 = vector.shape_cast %214 : vector<1x8x8xbf16> to vector<8x8xbf16>
    %cst_123 = arith.constant dense<0.000000e+00> : vector<128x8xf32>
    %216 = tpu.matmul %208, %215, %cst_123 {dimension_numbers = #tpu.dot_dimension_numbers<[1], [0], [0], [1], [0, 0, 1, 1], [], []>} : vector<128x8xbf16>, vector<8x8xbf16>, vector<128x8xf32> -> vector<128x8xf32>
    %217 = arith.addf %213, %216 : vector<128x8xf32>
    %c1_124 = arith.constant 1 : index
    %c0_125 = arith.constant 0 : index
    %c0_126 = arith.constant 0 : index
    %218 = vector.load %arg7[%c1_124, %c0_125, %c0_126] : memref<9x8x8xbf16, #tpu.memory_space<vmem>>, vector<1x8x8xbf16>
    %219 = vector.shape_cast %218 : vector<1x8x8xbf16> to vector<8x8xbf16>
    %cst_127 = arith.constant dense<0.000000e+00> : vector<128x8xf32>
    %220 = tpu.matmul %210, %219, %cst_127 {dimension_numbers = #tpu.dot_dimension_numbers<[1], [0], [0], [1], [0, 0, 1, 1], [], []>} : vector<128x8xbf16>, vector<8x8xbf16>, vector<128x8xf32> -> vector<128x8xf32>
    %221 = arith.addf %217, %220 : vector<128x8xf32>
    %c2_128 = arith.constant 2 : index
    %c0_129 = arith.constant 0 : index
    %c0_130 = arith.constant 0 : index
    %222 = vector.load %arg7[%c2_128, %c0_129, %c0_130] : memref<9x8x8xbf16, #tpu.memory_space<vmem>>, vector<1x8x8xbf16>
    %223 = vector.shape_cast %222 : vector<1x8x8xbf16> to vector<8x8xbf16>
    %cst_131 = arith.constant dense<0.000000e+00> : vector<128x8xf32>
    %224 = tpu.matmul %212, %223, %cst_131 {dimension_numbers = #tpu.dot_dimension_numbers<[1], [0], [0], [1], [0, 0, 1, 1], [], []>} : vector<128x8xbf16>, vector<8x8xbf16>, vector<128x8xf32> -> vector<128x8xf32>
    %225 = arith.addf %221, %224 : vector<128x8xf32>
    %226 = vector.shape_cast %225 : vector<128x8xf32> to vector<2x8x8x8xf32>
    %cst_132 = arith.constant 0.000000e+00 : f32
    %227 = vector.broadcast %cst_132 : f32 to vector<128x8xf32>
    %c3_133 = arith.constant 3 : index
    %c0_134 = arith.constant 0 : index
    %c0_135 = arith.constant 0 : index
    %228 = vector.load %arg7[%c3_133, %c0_134, %c0_135] : memref<9x8x8xbf16, #tpu.memory_space<vmem>>, vector<1x8x8xbf16>
    %229 = vector.shape_cast %228 : vector<1x8x8xbf16> to vector<8x8xbf16>
    %cst_136 = arith.constant dense<0.000000e+00> : vector<128x8xf32>
    %230 = tpu.matmul %208, %229, %cst_136 {dimension_numbers = #tpu.dot_dimension_numbers<[1], [0], [0], [1], [0, 0, 1, 1], [], []>} : vector<128x8xbf16>, vector<8x8xbf16>, vector<128x8xf32> -> vector<128x8xf32>
    %231 = arith.addf %227, %230 : vector<128x8xf32>
    %c4_137 = arith.constant 4 : index
    %c0_138 = arith.constant 0 : index
    %c0_139 = arith.constant 0 : index
    %232 = vector.load %arg7[%c4_137, %c0_138, %c0_139] : memref<9x8x8xbf16, #tpu.memory_space<vmem>>, vector<1x8x8xbf16>
    %233 = vector.shape_cast %232 : vector<1x8x8xbf16> to vector<8x8xbf16>
    %cst_140 = arith.constant dense<0.000000e+00> : vector<128x8xf32>
    %234 = tpu.matmul %210, %233, %cst_140 {dimension_numbers = #tpu.dot_dimension_numbers<[1], [0], [0], [1], [0, 0, 1, 1], [], []>} : vector<128x8xbf16>, vector<8x8xbf16>, vector<128x8xf32> -> vector<128x8xf32>
    %235 = arith.addf %231, %234 : vector<128x8xf32>
    %c5_141 = arith.constant 5 : index
    %c0_142 = arith.constant 0 : index
    %c0_143 = arith.constant 0 : index
    %236 = vector.load %arg7[%c5_141, %c0_142, %c0_143] : memref<9x8x8xbf16, #tpu.memory_space<vmem>>, vector<1x8x8xbf16>
    %237 = vector.shape_cast %236 : vector<1x8x8xbf16> to vector<8x8xbf16>
    %cst_144 = arith.constant dense<0.000000e+00> : vector<128x8xf32>
    %238 = tpu.matmul %212, %237, %cst_144 {dimension_numbers = #tpu.dot_dimension_numbers<[1], [0], [0], [1], [0, 0, 1, 1], [], []>} : vector<128x8xbf16>, vector<8x8xbf16>, vector<128x8xf32> -> vector<128x8xf32>
    %239 = arith.addf %235, %238 : vector<128x8xf32>
    %240 = vector.shape_cast %239 : vector<128x8xf32> to vector<2x8x8x8xf32>
    %cst_145 = arith.constant 0.000000e+00 : f32
    %241 = vector.broadcast %cst_145 : f32 to vector<128x8xf32>
    %c6_146 = arith.constant 6 : index
    %c0_147 = arith.constant 0 : index
    %c0_148 = arith.constant 0 : index
    %242 = vector.load %arg7[%c6_146, %c0_147, %c0_148] : memref<9x8x8xbf16, #tpu.memory_space<vmem>>, vector<1x8x8xbf16>
    %243 = vector.shape_cast %242 : vector<1x8x8xbf16> to vector<8x8xbf16>
    %cst_149 = arith.constant dense<0.000000e+00> : vector<128x8xf32>
    %244 = tpu.matmul %208, %243, %cst_149 {dimension_numbers = #tpu.dot_dimension_numbers<[1], [0], [0], [1], [0, 0, 1, 1], [], []>} : vector<128x8xbf16>, vector<8x8xbf16>, vector<128x8xf32> -> vector<128x8xf32>
    %245 = arith.addf %241, %244 : vector<128x8xf32>
    %c7_150 = arith.constant 7 : index
    %c0_151 = arith.constant 0 : index
    %c0_152 = arith.constant 0 : index
    %246 = vector.load %arg7[%c7_150, %c0_151, %c0_152] : memref<9x8x8xbf16, #tpu.memory_space<vmem>>, vector<1x8x8xbf16>
    %247 = vector.shape_cast %246 : vector<1x8x8xbf16> to vector<8x8xbf16>
    %cst_153 = arith.constant dense<0.000000e+00> : vector<128x8xf32>
    %248 = tpu.matmul %210, %247, %cst_153 {dimension_numbers = #tpu.dot_dimension_numbers<[1], [0], [0], [1], [0, 0, 1, 1], [], []>} : vector<128x8xbf16>, vector<8x8xbf16>, vector<128x8xf32> -> vector<128x8xf32>
    %249 = arith.addf %245, %248 : vector<128x8xf32>
    %c8_154 = arith.constant 8 : index
    %c0_155 = arith.constant 0 : index
    %c0_156 = arith.constant 0 : index
    %250 = vector.load %arg7[%c8_154, %c0_155, %c0_156] : memref<9x8x8xbf16, #tpu.memory_space<vmem>>, vector<1x8x8xbf16>
    %251 = vector.shape_cast %250 : vector<1x8x8xbf16> to vector<8x8xbf16>
    %cst_157 = arith.constant dense<0.000000e+00> : vector<128x8xf32>
    %252 = tpu.matmul %212, %251, %cst_157 {dimension_numbers = #tpu.dot_dimension_numbers<[1], [0], [0], [1], [0, 0, 1, 1], [], []>} : vector<128x8xbf16>, vector<8x8xbf16>, vector<128x8xf32> -> vector<128x8xf32>
    %253 = arith.addf %249, %252 : vector<128x8xf32>
    %254 = vector.shape_cast %253 : vector<128x8xf32> to vector<2x8x8x8xf32>
    %cst_158 = arith.constant 0.000000e+00 : f32
    %255 = vector.broadcast %cst_158 : f32 to vector<2x1x8x8xf32>
    %256 = vector.extract_strided_slice %226 {offsets = [0, 0, 0, 0], sizes = [2, 7, 8, 8], strides = [1, 1, 1, 1]} : vector<2x8x8x8xf32> to vector<2x7x8x8xf32>
    %257 = tpu.concatenate %255, %256 in 1 : vector<2x1x8x8xf32>, vector<2x7x8x8xf32> -> vector<2x8x8x8xf32>
    %258 = arith.addf %240, %257 : vector<2x8x8x8xf32>
    %259 = vector.extract_strided_slice %254 {offsets = [0, 1, 0, 0], sizes = [2, 7, 8, 8], strides = [1, 1, 1, 1]} : vector<2x8x8x8xf32> to vector<2x7x8x8xf32>
    %260 = tpu.concatenate %259, %255 in 1 : vector<2x7x8x8xf32>, vector<2x1x8x8xf32> -> vector<2x8x8x8xf32>
    %261 = arith.addf %258, %260 : vector<2x8x8x8xf32>
    %262 = vector.shape_cast %261 : vector<2x8x8x8xf32> to vector<128x8xf32>
    %cst_159 = arith.constant dense<0.000000e+00> : vector<8xf32>
    %263 = vector.multi_reduction <add>, %262, %cst_159 [0] : vector<128x8xf32> to vector<8xf32>
    %264 = vector.shape_cast %263 : vector<8xf32> to vector<1x8xf32>
    %265 = arith.mulf %262, %262 : vector<128x8xf32>
    %cst_160 = arith.constant dense<0.000000e+00> : vector<8xf32>
    %266 = vector.multi_reduction <add>, %265, %cst_160 [0] : vector<128x8xf32> to vector<8xf32>
    %267 = vector.shape_cast %266 : vector<8xf32> to vector<1x8xf32>
    %cst_161 = arith.constant 7.812500e-03 : f32
    %268 = vector.broadcast %cst_161 : f32 to vector<1x8xf32>
    %269 = arith.mulf %264, %268 : vector<1x8xf32>
    %cst_162 = arith.constant 7.812500e-03 : f32
    %270 = vector.broadcast %cst_162 : f32 to vector<1x8xf32>
    %271 = arith.mulf %267, %270 : vector<1x8xf32>
    %272 = arith.mulf %269, %269 : vector<1x8xf32>
    %273 = arith.subf %271, %272 : vector<1x8xf32>
    %cst_163 = arith.constant 9.99999974E-6 : f32
    %274 = vector.broadcast %cst_163 : f32 to vector<1x8xf32>
    %275 = arith.addf %273, %274 : vector<1x8xf32>
    %276 = math.rsqrt %275 : vector<1x8xf32>
    %277 = arith.mulf %194, %276 : vector<1x8xf32>
    %278 = arith.mulf %269, %277 : vector<1x8xf32>
    %279 = arith.subf %195, %278 : vector<1x8xf32>
    %280 = vector.broadcast %277 : vector<1x8xf32> to vector<128x8xf32>
    %281 = arith.mulf %262, %280 : vector<128x8xf32>
    %282 = vector.broadcast %279 : vector<1x8xf32> to vector<128x8xf32>
    %283 = arith.addf %281, %282 : vector<128x8xf32>
    %cst_164 = arith.constant 0.000000e+00 : f32
    %284 = vector.broadcast %cst_164 : f32 to vector<128x8xf32>
    %285 = arith.maximumf %283, %284 : vector<128x8xf32>
    %286 = vector.shape_cast %285 : vector<128x8xf32> to vector<2x8x8x8xf32>
    %c0_165 = arith.constant 0 : index
    %c0_166 = arith.constant 0 : index
    %c0_167 = arith.constant 0 : index
    %c0_168 = arith.constant 0 : index
    %287 = vector.load %arg10[%c0_165, %c0_166, %c0_167, %c0_168] : memref<2x8x8x8xf32, #tpu.memory_space<vmem>>, vector<2x8x8x8xf32>
    tpu.vector_store %arg10[%c0_165, %c0_166, %c0_167, %c0_168], %286 {strides = array<i32>} : memref<2x8x8x8xf32, #tpu.memory_space<vmem>>, vector<2x8x8x8xf32>,
    return
  }
}

</mosaic_0001>

<bundles_post_ra>
// kernel: down_forward.1
= control target key start
LH: loop header
LB: loop body
LE: loop exit
PB: predicated region body
PF: predicated region fallthrough
CT: control target
= control target key end

     0   :  { %s5399_s29 = smov 124   ;;  %vm287_vm0 = vcmask 1041408   ;;  %v167_v61 = vlaneseq  ;;  %vm262_vm1 = vcmask 31744   ;;  %vm1591_vm4 = vcmask 1043456   ;;  %s7402_s0 = inlined_call_operand.vmem [shape: f32[2,8,2,8,8], index: 0, kind: input, shape index: {}]   ;;  %s7403_s1 = inlined_call_operand.vmem [shape: bf16[9,4,8], index: 1, kind: input, shape index: {}]   ;;  %s7404_s4 = inlined_call_operand.vmem [shape: bf16[9,8,8], index: 4, kind: input, shape index: {}]   ;;  %s7405_s2 = inlined_call_operand.vmem [shape: f32[1,8], index: 2, kind: input, shape index: {}]   ;;  %s7406_s3 = inlined_call_operand.vmem [shape: f32[1,8], index: 3, kind: input, shape index: {}]   ;;  %s7407_s7 = inlined_call_operand.vmem [shape: bf16[9,8,8], index: 7, kind: input, shape index: {}]   ;;  %s7408_s5 = inlined_call_operand.vmem [shape: f32[1,8], index: 5, kind: input, shape index: {}]   ;;  %s7409_s6 = inlined_call_operand.vmem [shape: f32[1,8], index: 6, kind: input, shape index: {}]   ;;  %s7410_s8 = inlined_call_operand.vmem [shape: f32[1,8], index: 8, kind: input, shape index: {}]   ;;  %s7411_s9 = inlined_call_operand.vmem [shape: f32[1,8], index: 9, kind: input, shape index: {}]   ;;  %s7412_s10 = inlined_call_operand.vmem [shape: f32[2,8,8,8], index: 10, kind: output, shape index: {}]  }
   0x1   :  { %v36_v0 = vld [vmem:[%s7402_s0] sm:$0xff]  ;;  %v37_v1 = vld [vmem:[%s7402_s0 + $0x10] sm:$0xff]  ;;  %v4099_v2 = vld [vmem:[%s7402_s0 + $0x8] sm:$0xff]  ;;  %vm1314_vm5 = vcmask 64512  }
   0x2   :  { %v4100_v3 = vld [vmem:[%s7402_s0 + $0x18] sm:$0xff]  ;;  %v5467_v4 = vmax.f32 %v36_v0, %v4099_v2  ;;  %v38_v5 = vld [vmem:[%s7402_s0 + $0x20] sm:$0xff]  ;;  %v39_v6 = vld [vmem:[%s7402_s0 + $0x30] sm:$0xff] }
   0x3   :  { %v5475_v7 = vmax.f32 %v37_v1, %v4100_v3  ;;  %v4101_v8 = vld [vmem:[%s7402_s0 + $0x28] sm:$0xff]  ;;  %v4102_v9 = vld [vmem:[%s7402_s0 + $0x38] sm:$0xff]  ;;  %v40_v10 = vld [vmem:[%s7402_s0 + $0x40] sm:$0xff]  ;;  %v5622_v1 = vshrl.u32 %v167_v61, 7 }
   0x4   :  { %v5486_v11 = vmax.f32 %v38_v5, %v4101_v8  ;;  %v5488_v12 = vmax.f32 %v39_v6, %v4102_v9  ;;  %v41_v13 = vld [vmem:[%s7402_s0 + $0x50] sm:$0xff]  ;;  %v4103_v14 = vld [vmem:[%s7402_s0 + $0x48] sm:$0xff]  ;;  %v4104_v15 = vld [vmem:[%s7402_s0 + $0x58] sm:$0xff] }
   0x5   :  { %v5353_v16 = vpack.i.bf16 %v5475_v7, %v5467_v4  ;;  %v5501_v17 = vmax.f32 %v40_v10, %v4103_v14  ;;  %v5503_v18 = vmax.f32 %v41_v13, %v4104_v15  ;;  %v42_v19 = vld [vmem:[%s7402_s0 + $0x60] sm:$0xff]  ;;  %v43_v20 = vld [vmem:[%s7402_s0 + $0x70] sm:$0xff]  ;;  %v4105_v21 = vld [vmem:[%s7402_s0 + $0x68] sm:$0xff]  ;;  %vm169_vm2 = vcmp.eq.s32.totalorder %v5622_v1, 0 }
   0x6   :  { %v4106_v22 = vld [vmem:[%s7402_s0 + $0x78] sm:$0xff]  ;;  %v5517_v23 = vmax.f32 %v42_v19, %v4105_v21  ;;  %v44_v24 = vld [vmem:[%s7402_s0 + $0x80] sm:$0xff]  ;;  %v45_v25 = vld [vmem:[%s7402_s0 + $0x90] sm:$0xff]  ;;  %v5358_v26 = vpack.i.bf16 %v5488_v12, %v5486_v11  ;;  %vm202_vm3 = vcmp.eq.s32.totalorder %v5622_v1, 7 }
   0x7   :  { %5354 = vrot.lane.b32.xlu0 %v5353_v16, %s5399_s29  ;;  %v5363_v27 = vpack.i.bf16 %v5503_v18, %v5501_v17  ;;  %v5530_v28 = vmax.f32 %v43_v20, %v4106_v22  ;;  %v4107_v29 = vld [vmem:[%s7402_s0 + $0x88] sm:$0xff]  ;;  %v4108_v30 = vld [vmem:[%s7402_s0 + $0x98] sm:$0xff]  ;;  %v46_v31 = vld [vmem:[%s7402_s0 + $0xa0] sm:$0xff] }
   0x8   :  { %v5541_v32 = vmax.f32 %v44_v24, %v4107_v29  ;;  %v5543_v33 = vmax.f32 %v45_v25, %v4108_v30  ;;  %v47_v34 = vld [vmem:[%s7402_s0 + $0xb0] sm:$0xff]  ;;  %v4109_v35 = vld [vmem:[%s7402_s0 + $0xa8] sm:$0xff]  ;;  %v4110_v36 = vld [vmem:[%s7402_s0 + $0xb8] sm:$0xff] }
   0x9   :  { %5364 = vrot.lane.b32.xlu1 %v5363_v27, %s5399_s29  ;;  %v5368_v37 = vpack.i.bf16 %v5530_v28, %v5517_v23  ;;  %v5557_v38 = vmax.f32 %v46_v31, %v4109_v35  ;;  %v5559_v39 = vmax.f32 %v47_v34, %v4110_v36  ;;  %v48_v40 = vld [vmem:[%s7402_s0 + $0xc0] sm:$0xff]  ;;  %v49_v41 = vld [vmem:[%s7402_s0 + $0xd0] sm:$0xff]  ;;  %v4111_v42 = vld [vmem:[%s7402_s0 + $0xc8] sm:$0xff] }
   0xa   :  { %v4112_v43 = vld [vmem:[%s7402_s0 + $0xd8] sm:$0xff]  ;;  %v50_v44 = vld [vmem:[%s7402_s0 + $0xe0] sm:$0xff]  ;;  %v51_v45 = vld [vmem:[%s7402_s0 + $0xf0] sm:$0xff]  ;;  %v5373_v46 = vpack.i.bf16 %v5543_v33, %v5541_v32  ;;  %v5582_v47 = vmax.f32 %v48_v40, %v4111_v42 }
   0xb   :  { %5359 = vrot.lane.b32.xlu0 %v5358_v26, %s5399_s29  ;;  %v5584_v48 = vmax.f32 %v49_v41, %v4112_v43  ;;  %v4113_v49 = vld [vmem:[%s7402_s0 + $0xe8] sm:$0xff]  ;;  %v4114_v50 = vld [vmem:[%s7402_s0 + $0xf8] sm:$0xff]  ;;  %v4115_v51 = vld [vmem:[%s7403_s1 + $0x2] sm:$0x3]  ;;  %v5378_v54 = vpack.i.bf16 %v5559_v39, %v5557_v38 }
   0xc   :  { %5324 = vmatprep.subr.msk.bf16.mxu1 %vm287_vm0, %v4115_v51  ;;  %v289_v52 = vsel %vm287_vm0, %v4115_v51, 0  ;;  %v259_v53 = vld [vmem:[%s7403_s1] sm:$0x3]  ;;  %v5603_v55 = vmax.f32 %v50_v44, %v4113_v49  ;;  %v5605_v56 = vmax.f32 %v51_v45, %v4114_v50  ;;  %v4132_v58 = vld [vmem:[%s7403_s1 + $0x4] sm:$0x3] }
   0xd   :  { %5369 = vrot.lane.b32.xlu1 %v5368_v37, %s5399_s29  ;;  %4599 = vmatpush3.bf16.msra.mxu1 %v289_v52  ;;  %v411_v57 = vsel %vm287_vm0, %v259_v53, 0  ;;  %v5383_v59 = vpack.i.bf16 %v5584_v48, %v5582_v47  ;;  %v5672_v34 = vld [vmem:[%s7403_s1 + $0x8] sm:$0x3]  ;;  %v535_v37 = vsel %vm287_vm0, %v4132_v58, 0 }
   0xe   :  { %5325 = vmatprep.subr.msk.bf16.mxu0 %vm287_vm0, %v259_v53  ;;  %5326 = vmatprep.subr.msk.bf16.mxu1 %vm287_vm0, %v259_v53  ;;  %v5388_v60 = vpack.i.bf16 %v5605_v56, %v5603_v55 }
   0xf   :  { %5374 = vrot.lane.b32.xlu0 %v5373_v46, %s5399_s29  ;;  %4617 = vmatpush3.bf16.msra.mxu0 %v411_v57 }
  0x10   :  { %5327 = vmatprep.subr.msk.bf16.mxu0 %vm287_vm0, %v4132_v58 }
  0x11   :  { %5379 = vrot.lane.b32.xlu1 %v5378_v54, %s5399_s29  ;;  %v4169_v54 = vld [vmem:[%s7403_s1 + $0xe] sm:$0x3] }
  0x13   :  { %5384 = vrot.lane.b32.xlu0 %v5383_v59, %s5399_s29 }
  0x15   :  { %5389 = vrot.lane.b32.xlu1 %v5388_v60, %s5399_s29 }
  0x79   :  { %v5355_v62 = vpop.permute.xlu0 %5354 }
  0x7a   :  { %v5357_v63 = vunpack.i.h.bf16 %v5355_v62  ;;  %v5356_v0 = vunpack.i.l.bf16 %v5355_v62 }
  0x7b   :  { %v5365_v2 = vpop.permute.xlu1 %5364 }
  0x7c   :  { %v5625_v3 = vmax.f32 %v5475_v7, %v5357_v63  ;;  %v5628_v5 = vmax.f32 %v5467_v4, %v5356_v0  ;;  %v5367_v6 = vunpack.i.h.bf16 %v5365_v2  ;;  %v5366_v8 = vunpack.i.l.bf16 %v5365_v2 }
  0x7d   :  { %v5360_v9 = vpop.permute.xlu0 %5359 }
  0x7e   :  { %v5362_v10 = vunpack.i.h.bf16 %v5360_v9  ;;  %v5361_v13 = vunpack.i.l.bf16 %v5360_v9  ;;  %v5633_v14 = vpack.c.bf16 %v5625_v3, %v5628_v5  ;;  %v5636_v15 = vmax.f32 %v5503_v18, %v5367_v6 }
  0x7f   :  { %v5639_v7 = vmax.f32 %v5501_v17, %v5366_v8  ;;  %v170_v4 = vrot.slane %v5628_v5, 7  ;;  %v5370_v16 = vpop.permute.xlu1 %5369  ;;  %v171_v21 = vrot.slane %v5625_v3, 7  ;;  %v204_v35 = vrot.slane %v5625_v3, 1 }
  0x80   :  { %v5643_v19 = vmax.f32 %v5488_v12, %v5362_v10  ;;  %v5646_v20 = vmax.f32 %v5486_v11, %v5361_v13  ;;  %v5372_v22 = vunpack.i.h.bf16 %v5370_v16  ;;  %4600 = vmatprep.mubr.msk.bf16.mxu1 %vm262_vm1, %v5633_v14  ;;  %v175_v24 = vrot.slane %v5636_v15, 7 }
  0x81   :  { %v174_v25 = vrot.slane %v5639_v7, 7  ;;  %v186_v12 = vsel %vm169_vm2, 0.0, %v170_v4  ;;  %v187_v11 = vsel %vm169_vm2, 0.0, %v171_v21  ;;  %v5371_v30 = vunpack.i.l.bf16 %v5370_v16  ;;  %v5375_v31 = vpop.permute.xlu0 %5374 }
  0x82   :  { %v173_v18 = vrot.slane %v5643_v19, 7  ;;  %v172_v17 = vrot.slane %v5646_v20, 7  ;;  %v5661_v26 = vpack.c.bf16 %v5643_v19, %v5646_v20  ;;  %v5664_v27 = vmax.f32 %v5530_v28, %v5372_v22 }
  0x83   :  { %v5667_v29 = vpack.c.bf16 %v187_v11, %v186_v12  ;;  %v5684_v40 = vmax.f32 %v5517_v23, %v5371_v30  ;;  %v5690_v42 = vpack.c.bf16 %v5636_v15, %v5639_v7  ;;  %v190_v43 = vsel %vm169_vm2, 0.0, %v174_v25  ;;  %v5380_v44 = vpop.permute.xlu1 %5379 }
  0x84   :  { %4601 = vmatmul.mubr.msk.bf16.vlgmr.msra.gmra.mrb[0].mxu1 %vm262_vm1, %v5661_v26  ;;  %v177_v36 = vrot.slane %v5664_v27, 7  ;;  %v188_v28 = vsel %vm169_vm2, 0.0, %v172_v17  ;;  %v189_v41 = vsel %vm169_vm2, 0.0, %v173_v18  ;;  %v191_v46 = vsel %vm169_vm2, 0.0, %v175_v24 }
  0x85   :  { %4618 = vmatprep.mubr.msk.bf16.mxu0 %vm262_vm1, %v5667_v29  ;;  %5085 = vmatpush3.bf16.msra.mxu1 %v411_v57  ;;  %v5694_v45 = vpack.c.bf16 %v189_v41, %v188_v28  ;;  %v5377_v49 = vunpack.i.h.bf16 %v5375_v31  ;;  %v5376_v23 = vunpack.i.l.bf16 %v5375_v31  ;;  %v203_v50 = vrot.slane %v5628_v5, 1  ;;  %v5385_v63 = vpop.permute.xlu0 %5384 }
  0x86   :  { %5328 = vmatprep.subr.msk.bf16.mxu1 %vm287_vm0, %v5672_v34  ;;  %v176_v51 = vrot.slane %v5684_v40, 7  ;;  %4604 = vmatprep.mubr.msk.bf16.mxu1 %vm262_vm1, %v5690_v42  ;;  %v5704_v52 = vpack.c.bf16 %v191_v46, %v190_v43  ;;  %v5708_v53 = vpack.c.bf16 %v5664_v27, %v5684_v40  ;;  %v5382_v59 = vunpack.i.h.bf16 %v5380_v44 }
  0x87   :  { %4619 = vmatmul.mubr.msk.bf16.vlgmr.msra.gmra.mrb[0].mxu0 %vm262_vm1, %v5694_v45  ;;  %v5716_v57 = vmax.f32 %v5543_v33, %v5377_v49  ;;  %v5719_v58 = vmax.f32 %v5541_v32, %v5376_v23  ;;  %v5381_v60 = vunpack.i.l.bf16 %v5380_v44  ;;  %v193_v62 = vsel %vm169_vm2, 0.0, %v177_v36  ;;  %v5390_v8 = vpop.permute.xlu1 %5389  ;;  %v5803_v36 = vld [vmem:[%s7403_s1 + $0xc] sm:$0x3] }
  0x88   :  { %4635 = vmatpush3.bf16.msra.mxu0 %v535_v37  ;;  %4622 = vmatprep.mubr.msk.bf16.mxu0 %vm262_vm1, %v5704_v52  ;;  %v192_v61 = vsel %vm169_vm2, 0.0, %v176_v51  ;;  %v5729_v33 = vmax.f32 %v5559_v39, %v5382_v59  ;;  %v219_v0 = vsel %vm202_vm3, 0.0, %v203_v50  ;;  %v220_v2 = vsel %vm202_vm3, 0.0, %v204_v35 }
  0x89   :  { %5331 = vmatprep.subr.msk.bf16.mxu0 %vm287_vm0, %v4169_v54  ;;  %v5732_v32 = vmax.f32 %v5557_v38, %v5381_v60  ;;  %v5740_v3 = vpack.c.bf16 %v193_v62, %v192_v61  ;;  %v5744_v5 = vpack.c.bf16 %v5716_v57, %v5719_v58  ;;  %v5387_v39 = vunpack.i.h.bf16 %v5385_v63 }
  0x8a   :  { %v5386_v6 = vunpack.i.l.bf16 %v5385_v63  ;;  %v206_v10 = vrot.slane %v5643_v19, 1  ;;  %v205_v13 = vrot.slane %v5646_v20, 1  ;;  %v208_v4 = vrot.slane %v5636_v15, 1 }
  0x8b   :  { %v5749_v38 = vmax.f32 %v5584_v48, %v5387_v39  ;;  %v5757_v16 = vpack.c.bf16 %v220_v2, %v219_v0  ;;  %v207_v21 = vrot.slane %v5639_v7, 1  ;;  %v5764_v48 = vpack.c.bf16 %v5729_v33, %v5732_v32 }
  0x8c   :  { %4605 = vmatmul.mubr.msk.bf16.gmra.mrb[4].mxu1 %vm262_vm1, %v5708_v53  ;;  %v5752_v9 = vmax.f32 %v5582_v47, %v5386_v6  ;;  %v5392_v22 = vunpack.i.h.bf16 %v5390_v8  ;;  %v5391_v47 = vunpack.i.l.bf16 %v5390_v8  ;;  %v222_v15 = vsel %vm202_vm3, 0.0, %v206_v10 }
  0x8d   :  { %4608 = vmatprep.mubr.msk.bf16.mxu1 %vm262_vm1, %v5744_v5  ;;  %v221_v7 = vsel %vm202_vm3, 0.0, %v205_v13  ;;  %v179_v20 = vrot.slane %v5716_v57, 7  ;;  %v178_v18 = vrot.slane %v5719_v58, 7  ;;  %v223_v25 = vsel %vm202_vm3, 0.0, %v207_v21  ;;  %v4141_v13 = vld [vmem:[%s7403_s1 + $0x6] sm:$0x3] }
  0x8e   :  { %v5770_v19 = vpack.c.bf16 %v5749_v38, %v5752_v9  ;;  %v5781_v17 = vmax.f32 %v5605_v56, %v5392_v22  ;;  %v5784_v24 = vmax.f32 %v5603_v55, %v5391_v47  ;;  %v224_v12 = vsel %vm202_vm3, 0.0, %v208_v4 }
  0x8f   :  { %4623 = vmatmul.mubr.msk.bf16.gmra.mrb[4].mxu0 %vm262_vm1, %v5740_v3  ;;  %v5792_v11 = vpack.c.bf16 %v222_v15, %v221_v7  ;;  %v973_v30 = vsel %vm287_vm0, %v4169_v54, 0  ;;  %v210_v31 = vrot.slane %v5664_v27, 1  ;;  %v209_v56 = vrot.slane %v5684_v40, 1 }
  0x90   :  { %4636 = vmatprep.mubr.msk.bf16.mxu0 %vm262_vm1, %v5757_v16  ;;  %v212_v55 = vrot.slane %v5716_v57, 1  ;;  %v5798_v35 = vpack.c.bf16 %v224_v12, %v223_v25  ;;  %v211_v28 = vrot.slane %v5719_v58, 1  ;;  %v5808_v37 = vpack.c.bf16 %v5781_v17, %v5784_v24 }
  0x91   :  { %v194_v27 = vsel %vm169_vm2, 0.0, %v178_v18  ;;  %v195_v40 = vsel %vm169_vm2, 0.0, %v179_v20  ;;  %v181_v41 = vrot.slane %v5729_v33, 7  ;;  %v180_v43 = vrot.slane %v5732_v32, 7 }
  0x92   :  { %v5822_v44 = vpack.c.bf16 %v195_v40, %v194_v27  ;;  %v225_v46 = vsel %vm202_vm3, 0.0, %v209_v56  ;;  %v226_v49 = vsel %vm202_vm3, 0.0, %v210_v31  ;;  %v183_v23 = vrot.slane %v5749_v38, 7 }
  0x93   :  { %v182_v50 = vrot.slane %v5752_v9, 7  ;;  %v227_v51 = vsel %vm202_vm3, 0.0, %v211_v28  ;;  %v228_v54 = vsel %vm202_vm3, 0.0, %v212_v55  ;;  %v214_v57 = vrot.slane %v5729_v33, 1 }
  0x94   :  { %4609 = vmatmul.mubr.msk.bf16.gmra.mrb[8].mxu1 %vm262_vm1, %v5764_v48  ;;  %v5839_v58 = vpack.c.bf16 %v226_v49, %v225_v46  ;;  %v197_v59 = vsel %vm169_vm2, 0.0, %v181_v41  ;;  %v196_v60 = vsel %vm169_vm2, 0.0, %v180_v43  ;;  %v213_v61 = vrot.slane %v5732_v32, 1 }
  0x95   :  { %4612 = vmatprep.mubr.msk.bf16.mxu1 %vm262_vm1, %v5770_v19  ;;  %v5846_v62 = vpack.c.bf16 %v228_v54, %v227_v51  ;;  %v216_v63 = vrot.slane %v5749_v38, 1  ;;  %v215_v0 = vrot.slane %v5752_v9, 1  ;;  %v198_v33 = vsel %vm169_vm2, 0.0, %v182_v50 }
  0x96   :  { %v199_v2 = vsel %vm169_vm2, 0.0, %v183_v23  ;;  %v5858_v39 = vpack.c.bf16 %v197_v59, %v196_v60  ;;  %v185_v32 = vrot.slane %v5781_v17, 7  ;;  %v651_v6 = vsel %vm287_vm0, %v5672_v34, 0 }
  0x97   :  { %4637 = vmatmul.mubr.msk.bf16.vlgmr.msra.gmra.mrb[0].mxu0 %vm262_vm1, %v5792_v11  ;;  %v184_v8 = vrot.slane %v5784_v24, 7  ;;  %v5864_v38 = vpack.c.bf16 %v199_v2, %v198_v33  ;;  %v229_v9 = vsel %vm202_vm3, 0.0, %v213_v61  ;;  %v230_v10 = vsel %vm202_vm3, 0.0, %v214_v57 }
  0x98   :  { %4707 = vmatpush3.bf16.msra.mxu0 %v973_v30  ;;  %4640 = vmatprep.mubr.msk.bf16.mxu0 %vm262_vm1, %v5798_v35  ;;  %v231_v34 = vsel %vm202_vm3, 0.0, %v215_v0  ;;  %v232_v4 = vsel %vm202_vm3, 0.0, %v216_v63  ;;  %v218_v21 = vrot.slane %v5781_v17, 1  ;;  %v5882_v22 = vpack.c.bf16 %v230_v10, %v229_v9  ;;  %v4159_v30 = vld [vmem:[%s7403_s1 + $0xa] sm:$0x3] }
  0x99   :  { %5332 = vmatprep.subr.msk.bf16.mxu0 %vm287_vm0, %v5803_v36  ;;  %v217_v47 = vrot.slane %v5784_v24, 1  ;;  %v5886_v15 = vpack.c.bf16 %v232_v4, %v231_v34  ;;  %v200_v7 = vsel %vm169_vm2, 0.0, %v184_v8  ;;  %v201_v20 = vsel %vm169_vm2, 0.0, %v185_v32 }
  0x9a   :  { %v242_v18 = vpack.c.bf16 %v201_v20, %v200_v7  ;;  %v234_v24 = vsel %vm202_vm3, 0.0, %v218_v21  ;;  %v751_v12 = vsel %vm287_vm0, %v4141_v13, 0  ;;  %v1071_v31 = vsel %vm287_vm0, %v5803_v36, 0 }
  0x9b   :  { %v233_v17 = vsel %vm202_vm3, 0.0, %v217_v47 }
  0x9c   :  { %4613 = vmatmul.mubr.msk.bf16.gmra.mrb[12].mxu1 %vm262_vm1, %v5808_v37  ;;  %v258_v25 = vpack.c.bf16 %v234_v24, %v233_v17  ;;  %v4195_v17 = vld [vmem:[%s7404_s4 + $0x4] sm:$0xf]  ;;  %v4222_v24 = vld [vmem:[%s7404_s4 + $0x10] sm:$0xf] }
  0x9d   :  { %4626 = vmatprep.mubr.msk.bf16.mxu1 %vm262_vm1, %v5822_v44 }
  0x9f   :  { %4641 = vmatmul.mubr.msk.bf16.gmra.mrb[4].mxu0 %vm262_vm1, %v5839_v58 }
  0xa0   :  { %4644 = vmatprep.mubr.msk.bf16.mxu0 %vm262_vm1, %v5846_v62 }
  0xa4   :  { %4627 = vmatmul.mubr.msk.bf16.vlgmr.msra.gmra.mrb[8].mxu1 %vm262_vm1, %v5858_v39 }
  0xa5   :  { %4630 = vmatprep.mubr.msk.bf16.mxu1 %vm262_vm1, %v5864_v38  ;;  %4653 = vmatpush3.bf16.msra.mxu1 %v651_v6 }
  0xa6   :  { %5329 = vmatprep.subr.msk.bf16.mxu1 %vm287_vm0, %v4141_v13 }
  0xa7   :  { %4645 = vmatmul.mubr.msk.bf16.gmra.mrb[8].mxu0 %vm262_vm1, %v5882_v22 }
  0xa8   :  { %4648 = vmatprep.mubr.msk.bf16.mxu0 %vm262_vm1, %v5886_v15 }
  0xac   :  { %4631 = vmatmul.mubr.msk.bf16.gmra.mrb[12].mxu1 %vm262_vm1, %v242_v18 }
  0xad   :  { %4654 = vmatprep.mubr.msk.bf16.mxu1 %vm262_vm1, %v5633_v14 }
  0xaf   :  { %4649 = vmatmul.mubr.msk.bf16.gmra.mrb[12].mxu0 %vm262_vm1, %v258_v25 }
  0xb0   :  { %4708 = vmatprep.mubr.msk.bf16.mxu0 %vm262_vm1, %v5633_v14  ;;  %v4186_v14 = vld [vmem:[%s7403_s1 + $0x10] sm:$0x3] }
  0xb4   :  { %4655 = vmatmul.mubr.msk.bf16.vlgmr.msra.gmra.mrb[16].mxu1 %vm262_vm1, %v5661_v26 }
  0xb5   :  { %4658 = vmatprep.mubr.msk.bf16.mxu1 %vm262_vm1, %v5690_v42  ;;  %4671 = vmatpush3.bf16.msra.mxu1 %v751_v12  ;;  %v1955_v12 = vsel %vm1591_vm4, %v4222_v24, 0 }
  0xb6   :  { %5330 = vmatprep.subr.msk.bf16.mxu1 %vm287_vm0, %v4159_v30 }
  0xb7   :  { %4709 = vmatmul.mubr.msk.bf16.vlgmr.msra.gmra.mrb[16].mxu0 %vm262_vm1, %v5661_v26  ;;  %v853_v26 = vsel %vm287_vm0, %v4159_v30, 0  ;;  %v6048_v30 = vld [vmem:[%s7404_s4] sm:$0xf] }
  0xb8   :  { %4725 = vmatpush3.bf16.msra.mxu0 %v1071_v31  ;;  %4712 = vmatprep.mubr.msk.bf16.mxu0 %vm262_vm1, %v5690_v42  ;;  %v1171_v42 = vsel %vm287_vm0, %v4186_v14, 0 }
  0xb9   :  { %5333 = vmatprep.subr.msk.bf16.mxu0 %vm287_vm0, %v4186_v14 }
  0xbc   :  { %4659 = vmatmul.mubr.msk.bf16.gmra.mrb[20].mxu1 %vm262_vm1, %v5708_v53 }
  0xbd   :  { %4662 = vmatprep.mubr.msk.bf16.mxu1 %vm262_vm1, %v5744_v5 }
  0xbf   :  { %4713 = vmatmul.mubr.msk.bf16.gmra.mrb[20].mxu0 %vm262_vm1, %v5708_v53 }
  0xc0   :  { %4716 = vmatprep.mubr.msk.bf16.mxu0 %vm262_vm1, %v5744_v5 }
  0xc4   :  { %4663 = vmatmul.mubr.msk.bf16.gmra.mrb[24].mxu1 %vm262_vm1, %v5764_v48 }
  0xc5   :  { %4666 = vmatprep.mubr.msk.bf16.mxu1 %vm262_vm1, %v5770_v19 }
  0xc7   :  { %4717 = vmatmul.mubr.msk.bf16.gmra.mrb[24].mxu0 %vm262_vm1, %v5764_v48 }
  0xc8   :  { %4720 = vmatprep.mubr.msk.bf16.mxu0 %vm262_vm1, %v5770_v19 }
  0xcc   :  { %4667 = vmatmul.mubr.msk.bf16.gmra.mrb[28].mxu1 %vm262_vm1, %v5808_v37 }
  0xcd   :  { %4672 = vmatprep.mubr.msk.bf16.mxu1 %vm262_vm1, %v5667_v29 }
  0xcf   :  { %4721 = vmatmul.mubr.msk.bf16.gmra.mrb[28].mxu0 %vm262_vm1, %v5808_v37 }
  0xd0   :  { %4726 = vmatprep.mubr.msk.bf16.mxu0 %vm262_vm1, %v5667_v29 }
  0xd4   :  { %4673 = vmatmul.mubr.msk.bf16.vlgmr.msra.gmra.mrb[16].mxu1 %vm262_vm1, %v5694_v45 }
  0xd5   :  { %4676 = vmatprep.mubr.msk.bf16.mxu1 %vm262_vm1, %v5704_v52  ;;  %4689 = vmatpush3.bf16.msra.mxu1 %v853_v26 }
  0xd6   :  { %5334 = vmatprep.subr.msk.bf16.mxu1 %vm1591_vm4, %v4195_v17 }
  0xd7   :  { %4727 = vmatmul.mubr.msk.bf16.vlgmr.msra.gmra.mrb[32].mxu0 %vm262_vm1, %v5694_v45 }
  0xd8   :  { %4743 = vmatpush3.bf16.msra.mxu0 %v1171_v42  ;;  %4730 = vmatprep.mubr.msk.bf16.mxu0 %vm262_vm1, %v5704_v52 }
  0xd9   :  { %5337 = vmatprep.subr.msk.bf16.mxu0 %vm1591_vm4, %v4222_v24 }
  0xdc   :  { %4677 = vmatmul.mubr.msk.bf16.gmra.mrb[20].mxu1 %vm262_vm1, %v5740_v3 }
  0xdd   :  { %4680 = vmatprep.mubr.msk.bf16.mxu1 %vm262_vm1, %v5822_v44 }
  0xdf   :  { %4731 = vmatmul.mubr.msk.bf16.gmra.mrb[20].mxu0 %vm262_vm1, %v5740_v3 }
  0xe0   :  { %4734 = vmatprep.mubr.msk.bf16.mxu0 %vm262_vm1, %v5822_v44 }
  0xe4   :  { %4681 = vmatmul.mubr.msk.bf16.gmra.mrb[24].mxu1 %vm262_vm1, %v5858_v39 }
  0xe5   :  { %4684 = vmatprep.mubr.msk.bf16.mxu1 %vm262_vm1, %v5864_v38 }
  0xe7   :  { %4735 = vmatmul.mubr.msk.bf16.gmra.mrb[36].mxu0 %vm262_vm1, %v5858_v39 }
  0xe8   :  { %4738 = vmatprep.mubr.msk.bf16.mxu0 %vm262_vm1, %v5864_v38 }
  0xec   :  { %4685 = vmatmul.mubr.msk.bf16.gmra.mrb[28].mxu1 %vm262_vm1, %v242_v18 }
  0xed   :  { %4690 = vmatprep.mubr.msk.bf16.mxu1 %vm262_vm1, %v5757_v16 }
  0xef   :  { %4739 = vmatmul.mubr.msk.bf16.gmra.mrb[28].mxu0 %vm262_vm1, %v242_v18 }
  0xf0   :  { %4744 = vmatprep.mubr.msk.bf16.mxu0 %vm262_vm1, %v5757_v16 }
  0xf4   :  { %4691 = vmatmul.mubr.msk.bf16.vlgmr.msra.gmra.mrb[16].mxu1 %vm262_vm1, %v5792_v11 }
  0xf5   :  { %4694 = vmatprep.mubr.msk.bf16.mxu1 %vm262_vm1, %v5798_v35 }
  0xf7   :  { %4745 = vmatmul.mubr.msk.bf16.vlgmr.msra.gmra.mrb[40].mxu0 %vm262_vm1, %v5792_v11 }
  0xf8   :  { %4748 = vmatprep.mubr.msk.bf16.mxu0 %vm262_vm1, %v5798_v35  ;;  %4815 = vmatpush3.bf16.msra.mxu0 %v1955_v12 }
  0xfc   :  { %4695 = vmatmul.mubr.msk.bf16.gmra.mrb[20].mxu1 %vm262_vm1, %v5839_v58 }
  0xfd   :  { %4698 = vmatprep.mubr.msk.bf16.mxu1 %vm262_vm1, %v5846_v62 }
  0xff   :  { %4749 = vmatmul.mubr.msk.bf16.gmra.mrb[20].mxu0 %vm262_vm1, %v5839_v58 }
 0x100   :  { %4752 = vmatprep.mubr.msk.bf16.mxu0 %vm262_vm1, %v5846_v62 }
 0x104   :  { %4699 = vmatmul.mubr.msk.bf16.gmra.mrb[24].mxu1 %vm262_vm1, %v5882_v22 }
 0x105   :  { %4702 = vmatprep.mubr.msk.bf16.mxu1 %vm262_vm1, %v5886_v15 }
 0x107   :  { %4753 = vmatmul.mubr.msk.bf16.gmra.mrb[44].mxu0 %vm262_vm1, %v5882_v22 }
 0x108   :  { %4756 = vmatprep.mubr.msk.bf16.mxu0 %vm262_vm1, %v5886_v15 }
 0x10c   :  { %4703 = vmatmul.mubr.msk.bf16.gmra.mrb[28].mxu1 %vm262_vm1, %v258_v25 }
 0x10f   :  { %4757 = vmatmul.mubr.msk.bf16.gmra.mrb[28].mxu0 %vm262_vm1, %v258_v25  ;;  %v1593_v25 = vsel %vm1591_vm4, %v4195_v17, 0 }
 0x110   :  { %4761 = vmatpush3.bf16.msra.mxu1 %v1593_v25 }
 0x111   :  { %5335 = vmatprep.subr.msk.bf16.mxu1 %vm1591_vm4, %v6048_v30 }
 0x157   :  { %v4602_v29 = vpop.f32.mrb[0].mxu1 }
 0x158   :  { %v325_v45 = vpop.f32.mrb[1].mxu1 }
 0x159   :  { %v4603_v52 = vpop.f32.mrb[2].mxu1 }
 0x15a   :  { %v328_v53 = vpop.f32.mrb[3].mxu1 }
 0x15f   :  { %v4606_v3 = vpop.f32.mrb[4].mxu1 }
 0x160   :  { %v341_v5 = vpop.f32.mrb[5].mxu1 }
 0x161   :  { %v4607_v16 = vpop.f32.mrb[6].mxu1 }
 0x162   :  { %v344_v48 = vpop.f32.mrb[7].mxu1 }
 0x16a   :  { %v4638_v19 = vpop.f32.mrb[0].mxu0 }
 0x16b   :  { %v6007_v11 = vadd.f32 %v4638_v19, %v4602_v29  ;;  %v571_v56 = vpop.f32.mrb[1].mxu0 }
 0x16c   :  { %v6009_v55 = vadd.f32 %v571_v56, %v325_v45  ;;  %v4639_v35 = vpop.f32.mrb[2].mxu0 }
 0x16d   :  { %v6011_v36 = vadd.f32 %v4639_v35, %v4603_v52  ;;  %v574_v28 = vpop.f32.mrb[3].mxu0 }
 0x16e   :  { %v6013_v37 = vadd.f32 %v574_v28, %v328_v53 }
 0x172   :  { %v4642_v27 = vpop.f32.mrb[4].mxu0 }
 0x173   :  { %v6015_v40 = vadd.f32 %v4642_v27, %v4606_v3  ;;  %v587_v41 = vpop.f32.mrb[5].mxu0  ;;  %v6055_v3 = vld [vmem:[%s7404_s4 + $0xc] sm:$0xf] }
 0x174   :  { %v6017_v43 = vadd.f32 %v587_v41, %v341_v5  ;;  %v4643_v44 = vpop.f32.mrb[6].mxu0  ;;  %5338 = vmatprep.subr.msk.bf16.mxu0 %vm1591_vm4, %v6055_v3 }
 0x175   :  { %v590_v46 = vpop.f32.mrb[7].mxu0 }
 0x176   :  { %v6019_v49 = vadd.f32 %v590_v46, %v344_v48 }
 0x177   :  { %v4628_v23 = vpop.f32.mrb[8].mxu1 }
 0x178   :  { %v478_v50 = vpop.f32.mrb[9].mxu1 }
 0x179   :  { %v4629_v51 = vpop.f32.mrb[10].mxu1 }
 0x17a   :  { %v481_v54 = vpop.f32.mrb[11].mxu1  ;;  %v4646_v57 = vpop.f32.mrb[8].mxu0 }
 0x17b   :  { %v6021_v58 = vadd.f32 %v4646_v57, %v4628_v23  ;;  %v602_v59 = vpop.f32.mrb[9].mxu0 }
 0x17c   :  { %v6023_v60 = vadd.f32 %v602_v59, %v478_v50  ;;  %v4647_v61 = vpop.f32.mrb[10].mxu0 }
 0x17d   :  { %v6025_v62 = vadd.f32 %v4647_v61, %v4629_v51  ;;  %v605_v63 = vpop.f32.mrb[11].mxu0 }
 0x17e   :  { %v6027_v0 = vadd.f32 %v605_v63, %v481_v54 }
 0x17f   :  { %v4632_v33 = vpop.f32.mrb[12].mxu1 }
 0x180   :  { %v494_v2 = vpop.f32.mrb[13].mxu1 }
 0x181   :  { %v4633_v39 = vpop.f32.mrb[14].mxu1 }
 0x182   :  { %v497_v32 = vpop.f32.mrb[15].mxu1  ;;  %v4650_v6 = vpop.f32.mrb[12].mxu0 }
 0x183   :  { %v6029_v8 = vadd.f32 %v4650_v6, %v4632_v33  ;;  %v618_v38 = vpop.f32.mrb[13].mxu0 }
 0x184   :  { %v6031_v9 = vadd.f32 %v618_v38, %v494_v2  ;;  %v4651_v10 = vpop.f32.mrb[14].mxu0 }
 0x185   :  { %v621_v13 = vpop.f32.mrb[15].mxu0 }
 0x186   :  { %v6033_v34 = vadd.f32 %v621_v13, %v497_v32 }
 0x18a   :  { %v4710_v4 = vpop.f32.mrb[16].mxu0 }
 0x18b   :  { %v1009_v21 = vpop.f32.mrb[17].mxu0 }
 0x18c   :  { %v4711_v22 = vpop.f32.mrb[18].mxu0 }
 0x18d   :  { %v1011_v47 = vpop.f32.mrb[19].mxu0 }
 0x19a   :  { %v4718_v15 = vpop.f32.mrb[24].mxu0 }
 0x19b   :  { %v1040_v7 = vpop.f32.mrb[25].mxu0 }
 0x19c   :  { %v4719_v20 = vpop.f32.mrb[26].mxu0 }
 0x19d   :  { %v1042_v18 = vpop.f32.mrb[27].mxu0 }
 0x1aa   :  { %v4728_v31 = vpop.f32.mrb[32].mxu0 }
 0x1ab   :  { %v1115_v14 = vadd.f32 %v4728_v31, %v4710_v4  ;;  %v1107_v26 = vpop.f32.mrb[33].mxu0 }
 0x1ac   :  { %v4729_v42 = vpop.f32.mrb[34].mxu0 }
 0x1ad   :  { %v1118_v29 = vadd.f32 %v4729_v42, %v4711_v22  ;;  %v1109_v45 = vpop.f32.mrb[35].mxu0 }
 0x1ae   :  { %v1110_v52 = vadd.f32 %v1109_v45, %v1011_v47 }
 0x1ba   :  { %v4736_v53 = vpop.f32.mrb[36].mxu0 }
 0x1bb   :  { %v6057_v5 = vadd.f32 %v4736_v53, %v4718_v15  ;;  %v1138_v16 = vpop.f32.mrb[37].mxu0 }
 0x1bc   :  { %v4737_v48 = vpop.f32.mrb[38].mxu0 }
 0x1bd   :  { %v6061_v19 = vadd.f32 %v4737_v48, %v4719_v20  ;;  %v1140_v56 = vpop.f32.mrb[39].mxu0 }
 0x1be   :  { %v6063_v35 = vadd.f32 %v1140_v56, %v1042_v18 }
 0x1c7   :  { %v4692_v28 = vpop.f32.mrb[16].mxu1 }
 0x1c8   :  { %v1284_v27 = vadd.f32 %v6013_v37, %v4692_v28  ;;  %v889_v41 = vpop.f32.mrb[17].mxu1 }
 0x1c9   :  { %v4693_v44 = vpop.f32.mrb[18].mxu1 }
 0x1ca   :  { %v1285_v46 = vadd.f32 %v6007_v11, %v4693_v44  ;;  %v892_v23 = vpop.f32.mrb[19].mxu1  ;;  %v4746_v51 = vpop.f32.mrb[40].mxu0 }
 0x1cb   :  { %v1283_v50 = vadd.f32 %v6009_v55, %v892_v23  ;;  %v1269_v54 = vadd.f32 %v4746_v51, %v1115_v14  ;;  %v1207_v57 = vpop.f32.mrb[41].mxu0 }
 0x1cc   :  { %v4747_v59 = vpop.f32.mrb[42].mxu0 }
 0x1cd   :  { %v6068_v61 = vadd.f32 %v1283_v50, %v1269_v54  ;;  %v1270_v63 = vadd.f32 %v4747_v59, %v1118_v29  ;;  %v1209_v33 = vpop.f32.mrb[43].mxu0 }
 0x1ce   :  { %v1268_v2 = vadd.f32 %v1209_v33, %v1110_v52 }
 0x1cf   :  { %v4696_v39 = vpop.f32.mrb[20].mxu1  ;;  %v1353_v37 = vmul.f32 %v6068_v61, %v6068_v61  ;;  %v6072_v32 = vadd.f32 %v1284_v27, %v1270_v63  ;;  %v1316_v13 = vsel %vm1314_vm5, %v6068_v61, 0.0 }
 0x1d0   :  { %v1288_v11 = vadd.f32 %v6019_v49, %v4696_v39  ;;  %v905_v6 = vpop.f32.mrb[21].mxu1  ;;  %v6075_v55 = vadd.f32 %v1268_v2, %v889_v41 }
 0x1d1   :  { %v1286_v38 = vadd.f32 %v6011_v36, %v905_v6  ;;  %v4697_v10 = vpop.f32.mrb[22].mxu1  ;;  %v1354_v22 = vmul.f32 %v6072_v32, %v6072_v32  ;;  %v1369_v7 = vsel %vm1314_vm5, %v1353_v37, 0.0 }
 0x1d2   :  { %v6081_v4 = vadd.f32 %v6015_v40, %v4697_v10  ;;  %v908_v21 = vpop.f32.mrb[23].mxu1  ;;  %v1315_v47 = vsel %vm1314_vm5, %v6075_v55, 0.0  ;;  %v1352_v49 = vmul.f32 %v6075_v55, %v6075_v55  ;;  %v4750_v36 = vpop.f32.mrb[20].mxu0  ;;  %v1318_v40 = vsel %vm1314_vm5, %v6072_v32, 0.0 }
 0x1d3   :  { %v1287_v15 = vadd.f32 %v6017_v43, %v908_v21  ;;  %v1317_v20 = vadd.f32 %v1316_v13, %v1315_v47  ;;  %v1222_v18 = vpop.f32.mrb[21].mxu0  ;;  %v1371_v42 = vsel %vm1314_vm5, %v1354_v22, 0.0 }
 0x1d4   :  { %v1368_v17 = vsel %vm1314_vm5, %v1352_v49, 0.0  ;;  %v6096_v25 = vadd.f32 %v1285_v46, %v1222_v18  ;;  %v4751_v12 = vpop.f32.mrb[22].mxu0  ;;  %v1359_v13 = vmul.f32 %v6081_v4, %v6081_v4  ;;  %v1328_v49 = vsel %vm1314_vm5, %v6081_v4, 0.0 }
 0x1d5   :  { %v6094_v24 = vadd.f32 %v4750_v36, %v1287_v15  ;;  %v1370_v31 = vadd.f32 %v1369_v7, %v1368_v17  ;;  %v1319_v14 = vadd.f32 %v1318_v40, %v1317_v20  ;;  %v6098_v26 = vadd.f32 %v4751_v12, %v1288_v11  ;;  %v1225_v43 = vpop.f32.mrb[23].mxu0 }
 0x1d6   :  { %v1320_v29 = vsel %vm1314_vm5, %v6096_v25, 0.0  ;;  %v1355_v45 = vmul.f32 %v6096_v25, %v6096_v25  ;;  %v6106_v28 = vadd.f32 %v1286_v38, %v1225_v43 }
 0x1d7   :  { %v4700_v52 = vpop.f32.mrb[24].mxu1  ;;  %v1321_v53 = vadd.f32 %v1320_v29, %v1319_v14  ;;  %v1372_v16 = vadd.f32 %v1371_v42, %v1370_v31  ;;  %v1357_v50 = vmul.f32 %v6094_v24, %v6094_v24  ;;  %v1324_v2 = vsel %vm1314_vm5, %v6094_v24, 0.0 }
 0x1d8   :  { %v921_v48 = vpop.f32.mrb[25].mxu1  ;;  %v1373_v56 = vsel %vm1314_vm5, %v1355_v45, 0.0  ;;  %v1292_v27 = vadd.f32 %v6027_v0, %v4700_v52  ;;  %v1322_v51 = vsel %vm1314_vm5, %v6106_v28, 0.0  ;;  %v1356_v54 = vmul.f32 %v6106_v28, %v6106_v28 }
 0x1d9   :  { %v4701_v41 = vpop.f32.mrb[26].mxu1  ;;  %v1374_v44 = vadd.f32 %v1373_v56, %v1372_v16  ;;  %v1358_v0 = vmul.f32 %v6098_v26, %v6098_v26  ;;  %v1323_v63 = vadd.f32 %v1322_v51, %v1321_v53  ;;  %v1377_v21 = vsel %vm1314_vm5, %v1357_v50, 0.0 }
 0x1da   :  { %v1293_v46 = vadd.f32 %v6021_v58, %v4701_v41  ;;  %v924_v23 = vpop.f32.mrb[27].mxu1  ;;  %v4754_v59 = vpop.f32.mrb[44].mxu0  ;;  %v1375_v39 = vsel %vm1314_vm5, %v1356_v54, 0.0  ;;  %v1381_v29 = vsel %vm1314_vm5, %v1359_v13, 0.0 }
 0x1db   :  { %v1291_v57 = vadd.f32 %v6023_v60, %v924_v23  ;;  %v1276_v33 = vadd.f32 %v4754_v59, %v6057_v5  ;;  %v1238_v58 = vpop.f32.mrb[45].mxu0  ;;  %v1325_v11 = vadd.f32 %v1324_v2, %v1323_v63  ;;  %v1376_v6 = vadd.f32 %v1375_v39, %v1374_v44 }
 0x1dc   :  { %v4755_v37 = vpop.f32.mrb[46].mxu0  ;;  %v1326_v5 = vsel %vm1314_vm5, %v6098_v26, 0.0  ;;  %v1379_v15 = vsel %vm1314_vm5, %v1358_v0, 0.0 }
 0x1dd   :  { %v6123_v38 = vadd.f32 %v1291_v57, %v1276_v33  ;;  %v1277_v60 = vadd.f32 %v4755_v37, %v6061_v19  ;;  %v1240_v10 = vpop.f32.mrb[47].mxu0  ;;  %v1327_v36 = vadd.f32 %v1326_v5, %v1325_v11  ;;  %v1378_v7 = vadd.f32 %v1377_v21, %v1376_v6 }
 0x1de   :  { %v1275_v22 = vadd.f32 %v1240_v10, %v6063_v35 }
 0x1df   :  { %v4704_v47 = vpop.f32.mrb[28].mxu1  ;;  %v6135_v20 = vadd.f32 %v1292_v27, %v1277_v60  ;;  %v1380_v31 = vadd.f32 %v1379_v15, %v1378_v7  ;;  %v1361_v35 = vmul.f32 %v6123_v38, %v6123_v38  ;;  %v1329_v14 = vadd.f32 %v1328_v49, %v1327_v36 }
 0x1e0   :  { %v937_v19 = vpop.f32.mrb[29].mxu1  ;;  %v6137_v18 = vadd.f32 %v1275_v22, %v921_v48  ;;  %v1296_v40 = vadd.f32 %v6033_v34, %v4704_v47 }
 0x1e1   :  { %v1294_v17 = vadd.f32 %v6025_v62, %v937_v19  ;;  %v4705_v12 = vpop.f32.mrb[30].mxu1  ;;  %v1332_v62 = vsel %vm1314_vm5, %v6123_v38, 0.0  ;;  %v1382_v16 = vadd.f32 %v1381_v29, %v1380_v31  ;;  %v1385_v23 = vsel %vm1314_vm5, %v1361_v35, 0.0 }
 0x1e2   :  { %v6144_v43 = vadd.f32 %v6029_v8, %v4705_v12  ;;  %v940_v42 = vpop.f32.mrb[31].mxu1  ;;  %v1330_v45 = vsel %vm1314_vm5, %v6137_v18, 0.0  ;;  %v1360_v34 = vmul.f32 %v6137_v18, %v6137_v18  ;;  %v4758_v52 = vpop.f32.mrb[28].mxu0  ;;  %v1362_v8 = vmul.f32 %v6135_v20, %v6135_v20 }
 0x1e3   :  { %v1331_v53 = vadd.f32 %v1330_v45, %v1329_v14  ;;  %v1253_v48 = vpop.f32.mrb[29].mxu0  ;;  %v1295_v27 = vadd.f32 %v6031_v9, %v940_v42  ;;  %v1334_v59 = vsel %vm1314_vm5, %v6135_v20, 0.0 }
 0x1e4   :  { %v1383_v56 = vsel %vm1314_vm5, %v1360_v34, 0.0  ;;  %v6157_v41 = vadd.f32 %v1293_v46, %v1253_v48  ;;  %v4759_v44 = vpop.f32.mrb[30].mxu0  ;;  %v1387_v58 = vsel %vm1314_vm5, %v1362_v8, 0.0  ;;  %v1367_v36 = vmul.f32 %v6144_v43, %v6144_v43 }
 0x1e5   :  { %v1384_v50 = vadd.f32 %v1383_v56, %v1382_v16  ;;  %v1333_v51 = vadd.f32 %v1332_v62, %v1331_v53  ;;  %v6160_v54 = vadd.f32 %v4759_v44, %v1296_v40  ;;  %v1256_v57 = vpop.f32.mrb[31].mxu0  ;;  %v6164_v0 = vadd.f32 %v4758_v52, %v1295_v27 }
 0x1e6   :  { %v1363_v63 = vmul.f32 %v6157_v41, %v6157_v41  ;;  %v1310_v33 = vadd.f32 %v1294_v17, %v1256_v57  ;;  %v1336_v2 = vsel %vm1314_vm5, %v6157_v41, 0.0  ;;  %v1344_v12 = vsel %vm1314_vm5, %v6144_v43, 0.0 }
 0x1e7   :  { %v1335_v9 = vadd.f32 %v1334_v59, %v1333_v51  ;;  %v1386_v46 = vadd.f32 %v1385_v23, %v1384_v50  ;;  %v1365_v6 = vmul.f32 %v6164_v0, %v6164_v0  ;;  %v1340_v5 = vsel %vm1314_vm5, %v6164_v0, 0.0 }
 0x1e8   :  { %v1364_v11 = vmul.f32 %v1310_v33, %v1310_v33  ;;  %v1389_v60 = vsel %vm1314_vm5, %v1363_v63, 0.0  ;;  %v1338_v10 = vsel %vm1314_vm5, %v1310_v33, 0.0  ;;  %v1366_v22 = vmul.f32 %v6160_v54, %v6160_v54 }
 0x1e9   :  { %v1337_v39 = vadd.f32 %v1336_v2, %v1335_v9  ;;  %v1388_v37 = vadd.f32 %v1387_v58, %v1386_v46  ;;  %v1393_v7 = vsel %vm1314_vm5, %v1365_v6, 0.0  ;;  %v1342_v19 = vsel %vm1314_vm5, %v6160_v54, 0.0  ;;  %v165_v9 = vld [vmem:[%s7405_s2] sm:$0x1] }
 0x1ea   :  { %v1391_v47 = vsel %vm1314_vm5, %v1364_v11, 0.0  ;;  %v1395_v31 = vsel %vm1314_vm5, %v1366_v22, 0.0  ;;  %v1397_v42 = vsel %vm1314_vm5, %v1367_v36, 0.0  ;;  %v6193_v46 = vsub.s32 0, %v5622_v1 }
 0x1eb   :  { %v1390_v13 = vadd.f32 %v1389_v60, %v1388_v37  ;;  %v1339_v21 = vadd.f32 %v1338_v10, %v1337_v39  ;;  %v166_v39 = vld [vmem:[%s7406_s3] sm:$0x1]  ;;  %v1715_v6 = vsel %vm1591_vm4, %v6048_v30, 0  ;;  %v6203_v60 = vsel %vm1591_vm4, %v6055_v3, 0 }
 0x1ed   :  { %v1341_v49 = vadd.f32 %v1340_v5, %v1339_v21  ;;  %v1392_v15 = vadd.f32 %v1391_v47, %v1390_v13 }
 0x1ef   :  { %v1343_v40 = vadd.f32 %v1342_v19, %v1341_v49  ;;  %v1394_v17 = vadd.f32 %v1393_v7, %v1392_v15 }
 0x1f1   :  { %v1345_v35 = vadd.f32 %v1344_v12, %v1343_v40  ;;  %v1396_v14 = vadd.f32 %v1395_v31, %v1394_v17 }
 0x1f3   :  { %v1346_v29 = vrot.slane %v1345_v35, 4  ;;  %v1398_v45 = vadd.f32 %v1397_v42, %v1396_v14 }
 0x1f5   :  { %v1347_v34 = vadd.f32 %v1346_v29, %v1345_v35  ;;  %v1399_v52 = vrot.slane %v1398_v45, 4 }
 0x1f7   :  { %v1348_v62 = vrot.slane %v1347_v34, 2  ;;  %v1400_v53 = vadd.f32 %v1399_v52, %v1398_v45 }
 0x1f9   :  { %v1349_v16 = vadd.f32 %v1348_v62, %v1347_v34  ;;  %v1401_v48 = vrot.slane %v1400_v53, 2 }
 0x1fb   :  { %v1350_v8 = vrot.slane %v1349_v16, 1  ;;  %v1402_v56 = vadd.f32 %v1401_v48, %v1400_v53 }
 0x1fd   :  { %v1351_v27 = vadd.f32 %v1350_v8, %v1349_v16  ;;  %v1403_v44 = vrot.slane %v1402_v56, 1 }
 0x1ff   :  { %v1404_v23 = vadd.f32 %v1403_v44, %v1402_v56  ;;  %v1405_v50 = vmul.f32 0.0078125, %v1351_v27 }
 0x201   :  { %v1406_v51 = vmul.f32 0.0078125, %v1404_v23  ;;  %v1407_v57 = vmul.f32 %v1405_v50, %v1405_v50 }
 0x203   :  { %v1408_v59 = vsub.f32 %v1406_v51, %v1407_v57  ;;  %v6272_v51 = vld [vmem:[%s7404_s4 + $0x8] sm:$0xf]  ;;  %v6277_v57 = vld [vmem:[%s7404_s4 + $0x14] sm:$0xf] }
 0x205   :  { %v1409_v63 = vadd.f32 1e-05, %v1408_v59 }
 0x207   :  { %5393 = vrsqrt.f32 %v1409_v63 }
 0x211   :  { %v5394_v58 = vpop.eup %5393 }
 0x212   :  { %v1411_v2 = vmul.f32 %v5394_v58, %v165_v9 }
 0x214   :  { %v1412_v37 = vmul.f32 %v1411_v2, %v1405_v50  ;;  %v1418_v11 = vrot.slane %v1411_v2, %v6193_v46 }
 0x216   :  { %v1413_v10 = vsub.f32 %v166_v39, %v1412_v37  ;;  %v1432_v13 = vmul.f32 %v1418_v11, %v1310_v33  ;;  %v1420_v21 = vmul.f32 %v1418_v11, %v6075_v55  ;;  %v1421_v5 = vmul.f32 %v1418_v11, %v6068_v61 }
 0x217   :  { %v1422_v22 = vmul.f32 %v1418_v11, %v6072_v32  ;;  %v1423_v47 = vmul.f32 %v1418_v11, %v6096_v25  ;;  %v1424_v49 = vmul.f32 %v1418_v11, %v6106_v28  ;;  %v1425_v15 = vmul.f32 %v1418_v11, %v6094_v24 }
 0x218   :  { %v1440_v30 = vrot.slane %v1413_v10, %v6193_v46  ;;  %v1426_v36 = vmul.f32 %v1418_v11, %v6098_v26  ;;  %v1427_v3 = vmul.f32 %v1418_v11, %v6081_v4  ;;  %v1428_v33 = vmul.f32 %v1418_v11, %v6137_v18 }
 0x219   :  { %v1429_v55 = vmul.f32 %v1418_v11, %v6123_v38  ;;  %v1430_v61 = vmul.f32 %v1418_v11, %v6135_v20  ;;  %v1431_v32 = vmul.f32 %v1418_v11, %v6157_v41  ;;  %v1433_v25 = vmul.f32 %v1418_v11, %v6164_v0 }
 0x21a   :  { %v1454_v7 = vadd.f32 %v1440_v30, %v1432_v13  ;;  %v1442_v28 = vadd.f32 %v1440_v30, %v1420_v21  ;;  %v1443_v19 = vadd.f32 %v1440_v30, %v1421_v5  ;;  %v1444_v24 = vadd.f32 %v1440_v30, %v1422_v22 }
 0x21b   :  { %v1445_v40 = vadd.f32 %v1440_v30, %v1423_v47  ;;  %v1446_v17 = vadd.f32 %v1440_v30, %v1424_v49  ;;  %v1447_v12 = vadd.f32 %v1440_v30, %v1425_v15  ;;  %v1448_v26 = vadd.f32 %v1440_v30, %v1426_v36 }
 0x21c   :  { %v6219_v31 = vmax.f32 %v1454_v7, 0.0  ;;  %v6221_v4 = vmax.f32 %v1442_v28, 0.0  ;;  %v6223_v18 = vmax.f32 %v1443_v19, 0.0  ;;  %v6225_v38 = vmax.f32 %v1444_v24, 0.0 }
 0x21d   :  { %v6227_v20 = vmax.f32 %v1445_v40, 0.0  ;;  %v6229_v41 = vmax.f32 %v1446_v17, 0.0  ;;  %v6231_v0 = vmax.f32 %v1447_v12, 0.0  ;;  %v1449_v35 = vadd.f32 %v1440_v30, %v1427_v3 }
 0x21e   :  { %v6235_v14 = vpack.c.bf16 %v6223_v18, %v6221_v4  ;;  %v6237_v42 = vmax.f32 %v1448_v26, 0.0  ;;  %v1450_v29 = vadd.f32 %v1440_v30, %v1428_v33  ;;  %v1451_v45 = vadd.f32 %v1440_v30, %v1429_v55 }
 0x21f   :  { %v6241_v34 = vpack.c.bf16 %v6227_v20, %v6225_v38  ;;  %v6245_v52 = vpack.c.bf16 %v6231_v0, %v6229_v41  ;;  %v6247_v62 = vmax.f32 %v1449_v35, 0.0  ;;  %v1452_v53 = vadd.f32 %v1440_v30, %v1430_v61 }
 0x220   :  { %4762 = vmatprep.mubr.msk.bf16.mxu1 %vm1314_vm5, %v6235_v14  ;;  %4816 = vmatprep.mubr.msk.bf16.mxu0 %vm1314_vm5, %v6235_v14  ;;  %v6253_v16 = vmax.f32 %v1450_v29, 0.0  ;;  %v6255_v48 = vmax.f32 %v1451_v45, 0.0  ;;  %v1453_v8 = vadd.f32 %v1440_v30, %v1431_v32  ;;  %v1455_v56 = vadd.f32 %v1440_v30, %v1433_v25 }
 0x221   :  { %4763 = vmatmul.mubr.msk.bf16.vlgmr.msra.gmra.mrb[32].mxu1 %vm1314_vm5, %v6241_v34  ;;  %4817 = vmatmul.mubr.msk.bf16.vlgmr.msra.gmra.mrb[48].mxu0 %vm1314_vm5, %v6241_v34  ;;  %v6263_v27 = vpack.c.bf16 %v6247_v62, %v6237_v42  ;;  %v6265_v44 = vmax.f32 %v1452_v53, 0.0  ;;  %v1434_v23 = vmul.f32 %v1418_v11, %v6160_v54  ;;  %v1435_v50 = vmul.f32 %v1418_v11, %v6144_v43 }
 0x222   :  { %4779 = vmatpush3.bf16.msra.mxu1 %v1715_v6  ;;  %4766 = vmatprep.mubr.msk.bf16.mxu1 %vm1314_vm5, %v6245_v52  ;;  %v6283_v59 = vpack.c.bf16 %v6255_v48, %v6253_v16  ;;  %v6285_v54 = vmax.f32 %v1453_v8, 0.0  ;;  %v6287_v43 = vmax.f32 %v1455_v56, 0.0  ;;  %v1476_v63 = vrot.slane %v6221_v4, 7 }
 0x223   :  { %4820 = vmatprep.mubr.msk.bf16.mxu0 %vm1314_vm5, %v6245_v52  ;;  %v1456_v9 = vadd.f32 %v1440_v30, %v1434_v23  ;;  %v1457_v58 = vadd.f32 %v1440_v30, %v1435_v50  ;;  %v1477_v2 = vrot.slane %v6223_v18, 7  ;;  %4833 = vmatpush3.bf16.msra.mxu0 %v6203_v60  ;;  %v1478_v39 = vrot.slane %v6225_v38, 7 }
 0x224   :  { %v6297_v37 = vpack.c.bf16 %v6285_v54, %v6265_v44  ;;  %v6301_v11 = vpack.c.bf16 %v6287_v43, %v6219_v31  ;;  %v1492_v6 = vsel %vm169_vm2, 0.0, %v1476_v63  ;;  %5336 = vmatprep.subr.msk.bf16.mxu1 %vm1591_vm4, %v6272_v51  ;;  %v1479_v10 = vrot.slane %v6227_v20, 7  ;;  %5339 = vmatprep.subr.msk.bf16.mxu0 %vm1591_vm4, %v6277_v57 }
 0x225   :  { %v6310_v60 = vmax.f32 %v1456_v9, 0.0  ;;  %v6312_v13 = vmax.f32 %v1457_v58, 0.0  ;;  %v1493_v21 = vsel %vm169_vm2, 0.0, %v1477_v2  ;;  %v1494_v5 = vsel %vm169_vm2, 0.0, %v1478_v39 }
 0x226   :  { %v6318_v22 = vpack.c.bf16 %v1493_v21, %v1492_v6  ;;  %v1495_v47 = vsel %vm169_vm2, 0.0, %v1479_v10  ;;  %v1480_v49 = vrot.slane %v6229_v41, 7  ;;  %v1481_v15 = vrot.slane %v6231_v0, 7 }
 0x227   :  { %v6326_v30 = vpack.c.bf16 %v6312_v13, %v6310_v60  ;;  %v6328_v36 = vpack.c.bf16 %v1495_v47, %v1494_v5  ;;  %v1482_v3 = vrot.slane %v6237_v42, 7  ;;  %v1483_v33 = vrot.slane %v6247_v62, 7 }
 0x228   :  { %v1496_v55 = vsel %vm169_vm2, 0.0, %v1480_v49  ;;  %v1497_v61 = vsel %vm169_vm2, 0.0, %v1481_v15  ;;  %v1484_v32 = vrot.slane %v6253_v16, 7  ;;  %v1485_v25 = vrot.slane %v6255_v48, 7 }
 0x229   :  { %4767 = vmatmul.mubr.msk.bf16.gmra.mrb[36].mxu1 %vm1314_vm5, %v6263_v27  ;;  %4821 = vmatmul.mubr.msk.bf16.gmra.mrb[52].mxu0 %vm1314_vm5, %v6263_v27  ;;  %v6342_v7 = vpack.c.bf16 %v1497_v61, %v1496_v55  ;;  %v1498_v28 = vsel %vm169_vm2, 0.0, %v1482_v3  ;;  %v1499_v19 = vsel %vm169_vm2, 0.0, %v1483_v33  ;;  %v1486_v24 = vrot.slane %v6265_v44, 7 }
 0x22a   :  { %4770 = vmatprep.mubr.msk.bf16.mxu1 %vm1314_vm5, %v6283_v59  ;;  %4824 = vmatprep.mubr.msk.bf16.mxu0 %vm1314_vm5, %v6283_v59  ;;  %v6353_v40 = vpack.c.bf16 %v1499_v19, %v1498_v28  ;;  %v1500_v17 = vsel %vm169_vm2, 0.0, %v1484_v32  ;;  %v1501_v12 = vsel %vm169_vm2, 0.0, %v1485_v25  ;;  %v1487_v26 = vrot.slane %v6285_v54, 7 }
 0x22b   :  { %v6360_v35 = vpack.c.bf16 %v1501_v12, %v1500_v17  ;;  %v1502_v29 = vsel %vm169_vm2, 0.0, %v1486_v24  ;;  %v1488_v45 = vrot.slane %v6219_v31, 7  ;;  %v1489_v53 = vrot.slane %v6287_v43, 7 }
 0x22c   :  { %v1503_v8 = vsel %vm169_vm2, 0.0, %v1487_v26  ;;  %v1490_v56 = vrot.slane %v6310_v60, 7  ;;  %v1491_v23 = vrot.slane %v6312_v13, 7  ;;  %v1508_v50 = vrot.slane %v6221_v4, 1 }
 0x22d   :  { %v6371_v63 = vpack.c.bf16 %v1503_v8, %v1502_v29  ;;  %v1504_v9 = vsel %vm169_vm2, 0.0, %v1488_v45  ;;  %v1505_v58 = vsel %vm169_vm2, 0.0, %v1489_v53  ;;  %v1509_v2 = vrot.slane %v6223_v18, 1 }
 0x22e   :  { %v6378_v39 = vpack.c.bf16 %v1505_v58, %v1504_v9  ;;  %v1506_v6 = vsel %vm169_vm2, 0.0, %v1490_v56  ;;  %v1507_v10 = vsel %vm169_vm2, 0.0, %v1491_v23  ;;  %v1524_v4 = vsel %vm202_vm3, 0.0, %v1508_v50  ;;  %v4249_v58 = vld [vmem:[%s7404_s4 + $0x1c] sm:$0xf] }
 0x22f   :  { %v6386_v21 = vpack.c.bf16 %v1507_v10, %v1506_v6  ;;  %v1525_v5 = vsel %vm202_vm3, 0.0, %v1509_v2  ;;  %v1510_v47 = vrot.slane %v6225_v38, 1  ;;  %v1511_v18 = vrot.slane %v6227_v20, 1  ;;  %v4266_v6 = vld [vmem:[%s7404_s4 + $0x20] sm:$0xf] }
 0x230   :  { %v6392_v49 = vpack.c.bf16 %v1525_v5, %v1524_v4  ;;  %v1512_v15 = vrot.slane %v6229_v41, 1  ;;  %v1513_v3 = vrot.slane %v6231_v0, 1  ;;  %v1514_v33 = vrot.slane %v6237_v42, 1 }
 0x231   :  { %4771 = vmatmul.mubr.msk.bf16.gmra.mrb[40].mxu1 %vm1314_vm5, %v6297_v37  ;;  %4825 = vmatmul.mubr.msk.bf16.gmra.mrb[56].mxu0 %vm1314_vm5, %v6297_v37  ;;  %v1526_v55 = vsel %vm202_vm3, 0.0, %v1510_v47  ;;  %v1527_v38 = vsel %vm202_vm3, 0.0, %v1511_v18  ;;  %v1515_v20 = vrot.slane %v6247_v62, 1  ;;  %v1516_v41 = vrot.slane %v6253_v16, 1 }
 0x232   :  { %4774 = vmatprep.mubr.msk.bf16.mxu1 %vm1314_vm5, %v6301_v11  ;;  %4828 = vmatprep.mubr.msk.bf16.mxu0 %vm1314_vm5, %v6301_v11  ;;  %v6411_v0 = vpack.c.bf16 %v1527_v38, %v1526_v55  ;;  %v1528_v42 = vsel %vm202_vm3, 0.0, %v1512_v15  ;;  %v1529_v61 = vsel %vm202_vm3, 0.0, %v1513_v3  ;;  %v1530_v32 = vsel %vm202_vm3, 0.0, %v1514_v33 }
 0x233   :  { %v6419_v62 = vpack.c.bf16 %v1529_v61, %v1528_v42  ;;  %v1531_v16 = vsel %vm202_vm3, 0.0, %v1515_v20  ;;  %v1517_v25 = vrot.slane %v6255_v48, 1  ;;  %v1532_v28 = vsel %vm202_vm3, 0.0, %v1516_v41 }
 0x234   :  { %v6426_v19 = vpack.c.bf16 %v1531_v16, %v1530_v32  ;;  %v1518_v24 = vrot.slane %v6265_v44, 1  ;;  %v1519_v17 = vrot.slane %v6285_v54, 1  ;;  %v1520_v12 = vrot.slane %v6219_v31, 1 }
 0x235   :  { %v1533_v26 = vsel %vm202_vm3, 0.0, %v1517_v25  ;;  %v1521_v29 = vrot.slane %v6287_v43, 1  ;;  %v1522_v45 = vrot.slane %v6310_v60, 1  ;;  %v1523_v48 = vrot.slane %v6312_v13, 1 }
 0x236   :  { %v6436_v53 = vpack.c.bf16 %v1533_v26, %v1532_v28  ;;  %v1534_v8 = vsel %vm202_vm3, 0.0, %v1518_v24  ;;  %v1535_v44 = vsel %vm202_vm3, 0.0, %v1519_v17  ;;  %v1536_v31 = vsel %vm202_vm3, 0.0, %v1520_v12 }
 0x237   :  { %v6444_v54 = vpack.c.bf16 %v1535_v44, %v1534_v8  ;;  %v1537_v43 = vsel %vm202_vm3, 0.0, %v1521_v29  ;;  %v1538_v60 = vsel %vm202_vm3, 0.0, %v1522_v45  ;;  %v1539_v13 = vsel %vm202_vm3, 0.0, %v1523_v48 }
 0x238   :  { %v6452_v56 = vpack.c.bf16 %v1537_v43, %v1536_v31  ;;  %v6454_v23 = vpack.c.bf16 %v1539_v13, %v1538_v60  ;;  %v1839_v50 = vsel %vm1591_vm4, %v6272_v51, 0  ;;  %v2157_v9 = vsel %vm1591_vm4, %v6277_v57, 0  ;;  %v4248_v57 = vld [vmem:[%s7404_s4 + $0x18] sm:$0xf] }
 0x239   :  { %4775 = vmatmul.mubr.msk.bf16.gmra.mrb[44].mxu1 %vm1314_vm5, %v6326_v30  ;;  %4829 = vmatmul.mubr.msk.bf16.gmra.mrb[60].mxu0 %vm1314_vm5, %v6326_v30  ;;  %v2277_v51 = vsel %vm1591_vm4, %v4249_v58, 0  ;;  %v2375_v2 = vsel %vm1591_vm4, %v4248_v57, 0 }
 0x23a   :  { %4780 = vmatprep.mubr.msk.bf16.mxu1 %vm1314_vm5, %v6318_v22  ;;  %4834 = vmatprep.mubr.msk.bf16.mxu0 %vm1314_vm5, %v6318_v22 }
 0x241   :  { %4781 = vmatmul.mubr.msk.bf16.vlgmr.msra.gmra.mrb[32].mxu1 %vm1314_vm5, %v6328_v36  ;;  %4835 = vmatmul.mubr.msk.bf16.vlgmr.msra.gmra.mrb[48].mxu0 %vm1314_vm5, %v6328_v36 }
 0x242   :  { %4797 = vmatpush3.bf16.msra.mxu1 %v1839_v50  ;;  %4784 = vmatprep.mubr.msk.bf16.mxu1 %vm1314_vm5, %v6342_v7  ;;  %v4275_v50 = vld [vmem:[%s7407_s7 + $0x4] sm:$0xf] }
 0x243   :  { %4838 = vmatprep.mubr.msk.bf16.mxu0 %vm1314_vm5, %v6342_v7  ;;  %4851 = vmatpush3.bf16.msra.mxu0 %v2157_v9  ;;  %v4302_v9 = vld [vmem:[%s7407_s7 + $0x10] sm:$0xf] }
 0x244   :  { %5340 = vmatprep.subr.msk.bf16.mxu1 %vm1591_vm4, %v4249_v58  ;;  %5343 = vmatprep.subr.msk.bf16.mxu0 %vm1591_vm4, %v4275_v50  ;;  %v2895_v58 = vsel %vm1591_vm4, %v4275_v50, 0 }
 0x249   :  { %4785 = vmatmul.mubr.msk.bf16.gmra.mrb[36].mxu1 %vm1314_vm5, %v6353_v40  ;;  %4839 = vmatmul.mubr.msk.bf16.gmra.mrb[52].mxu0 %vm1314_vm5, %v6353_v40 }
 0x24a   :  { %4788 = vmatprep.mubr.msk.bf16.mxu1 %vm1314_vm5, %v6360_v35  ;;  %4842 = vmatprep.mubr.msk.bf16.mxu0 %vm1314_vm5, %v6360_v35 }
 0x251   :  { %4789 = vmatmul.mubr.msk.bf16.gmra.mrb[40].mxu1 %vm1314_vm5, %v6371_v63  ;;  %4843 = vmatmul.mubr.msk.bf16.gmra.mrb[56].mxu0 %vm1314_vm5, %v6371_v63 }
 0x252   :  { %4792 = vmatprep.mubr.msk.bf16.mxu1 %vm1314_vm5, %v6378_v39  ;;  %4846 = vmatprep.mubr.msk.bf16.mxu0 %vm1314_vm5, %v6378_v39 }
 0x259   :  { %4793 = vmatmul.mubr.msk.bf16.gmra.mrb[44].mxu1 %vm1314_vm5, %v6386_v21  ;;  %4847 = vmatmul.mubr.msk.bf16.gmra.mrb[60].mxu0 %vm1314_vm5, %v6386_v21 }
 0x25a   :  { %4798 = vmatprep.mubr.msk.bf16.mxu1 %vm1314_vm5, %v6392_v49  ;;  %4852 = vmatprep.mubr.msk.bf16.mxu0 %vm1314_vm5, %v6392_v49 }
 0x261   :  { %4799 = vmatmul.mubr.msk.bf16.vlgmr.msra.gmra.mrb[32].mxu1 %vm1314_vm5, %v6411_v0  ;;  %4853 = vmatmul.mubr.msk.bf16.vlgmr.msra.gmra.mrb[48].mxu0 %vm1314_vm5, %v6411_v0 }
 0x262   :  { %4869 = vmatpush3.bf16.msra.mxu1 %v2277_v51  ;;  %4802 = vmatprep.mubr.msk.bf16.mxu1 %vm1314_vm5, %v6419_v62  ;;  %v3257_v51 = vsel %vm1591_vm4, %v4302_v9, 0 }
 0x263   :  { %4856 = vmatprep.mubr.msk.bf16.mxu0 %vm1314_vm5, %v6419_v62  ;;  %5341 = vmatprep.subr.msk.bf16.mxu1 %vm1591_vm4, %v4248_v57  ;;  %v6636_v57 = vld [vmem:[%s7407_s7] sm:$0xf] }
 0x264   :  { %4923 = vmatpush3.bf16.msra.mxu0 %v2895_v58 }
 0x265   :  { %5344 = vmatprep.subr.msk.bf16.mxu0 %vm1591_vm4, %v6636_v57 }
 0x269   :  { %4803 = vmatmul.mubr.msk.bf16.gmra.mrb[36].mxu1 %vm1314_vm5, %v6426_v19  ;;  %4857 = vmatmul.mubr.msk.bf16.gmra.mrb[52].mxu0 %vm1314_vm5, %v6426_v19 }
 0x26a   :  { %4806 = vmatprep.mubr.msk.bf16.mxu1 %vm1314_vm5, %v6436_v53  ;;  %4860 = vmatprep.mubr.msk.bf16.mxu0 %vm1314_vm5, %v6436_v53 }
 0x271   :  { %4807 = vmatmul.mubr.msk.bf16.gmra.mrb[40].mxu1 %vm1314_vm5, %v6444_v54  ;;  %4861 = vmatmul.mubr.msk.bf16.gmra.mrb[56].mxu0 %vm1314_vm5, %v6444_v54 }
 0x272   :  { %4810 = vmatprep.mubr.msk.bf16.mxu1 %vm1314_vm5, %v6452_v56  ;;  %4864 = vmatprep.mubr.msk.bf16.mxu0 %vm1314_vm5, %v6452_v56 }
 0x279   :  { %4811 = vmatmul.mubr.msk.bf16.gmra.mrb[44].mxu1 %vm1314_vm5, %v6454_v23  ;;  %4865 = vmatmul.mubr.msk.bf16.gmra.mrb[60].mxu0 %vm1314_vm5, %v6454_v23 }
 0x27a   :  { %4870 = vmatprep.mubr.msk.bf16.mxu1 %vm1314_vm5, %v6235_v14  ;;  %v2475_v14 = vsel %vm1591_vm4, %v4266_v6, 0 }
 0x281   :  { %4871 = vmatmul.mubr.msk.bf16.vlgmr.msra.gmra.mrb[48].mxu1 %vm1314_vm5, %v6241_v34 }
 0x282   :  { %4887 = vmatpush3.bf16.msra.mxu1 %v2375_v2  ;;  %4874 = vmatprep.mubr.msk.bf16.mxu1 %vm1314_vm5, %v6245_v52 }
 0x283   :  { %5342 = vmatprep.subr.msk.bf16.mxu1 %vm1591_vm4, %v4266_v6 }
 0x289   :  { %4875 = vmatmul.mubr.msk.bf16.gmra.mrb[52].mxu1 %vm1314_vm5, %v6263_v27 }
 0x28a   :  { %4878 = vmatprep.mubr.msk.bf16.mxu1 %vm1314_vm5, %v6283_v59 }
 0x291   :  { %4879 = vmatmul.mubr.msk.bf16.gmra.mrb[56].mxu1 %vm1314_vm5, %v6297_v37 }
 0x292   :  { %4882 = vmatprep.mubr.msk.bf16.mxu1 %vm1314_vm5, %v6301_v11 }
 0x299   :  { %4883 = vmatmul.mubr.msk.bf16.gmra.mrb[60].mxu1 %vm1314_vm5, %v6326_v30 }
 0x29a   :  { %4888 = vmatprep.mubr.msk.bf16.mxu1 %vm1314_vm5, %v6318_v22 }
 0x2a1   :  { %4889 = vmatmul.mubr.msk.bf16.vlgmr.msra.gmra.mrb[64].mxu1 %vm1314_vm5, %v6328_v36 }
 0x2a2   :  { %4905 = vmatpush3.bf16.msra.mxu1 %v2475_v14  ;;  %4892 = vmatprep.mubr.msk.bf16.mxu1 %vm1314_vm5, %v6342_v7 }
 0x2a3   :  { %5346 = vmatprep.subr.msk.bf16.mxu1 %vm1591_vm4, %v4302_v9 }
 0x2a9   :  { %4893 = vmatmul.mubr.msk.bf16.gmra.mrb[52].mxu1 %vm1314_vm5, %v6353_v40 }
 0x2aa   :  { %4896 = vmatprep.mubr.msk.bf16.mxu1 %vm1314_vm5, %v6360_v35 }
 0x2b1   :  { %4897 = vmatmul.mubr.msk.bf16.gmra.mrb[68].mxu1 %vm1314_vm5, %v6371_v63 }
 0x2b2   :  { %4900 = vmatprep.mubr.msk.bf16.mxu1 %vm1314_vm5, %v6378_v39 }
 0x2b9   :  { %4901 = vmatmul.mubr.msk.bf16.gmra.mrb[60].mxu1 %vm1314_vm5, %v6386_v21 }
 0x2ba   :  { %4906 = vmatprep.mubr.msk.bf16.mxu1 %vm1314_vm5, %v6392_v49 }
 0x2c1   :  { %4907 = vmatmul.mubr.msk.bf16.vlgmr.msra.gmra.mrb[72].mxu1 %vm1314_vm5, %v6411_v0 }
 0x2c2   :  { %4910 = vmatprep.mubr.msk.bf16.mxu1 %vm1314_vm5, %v6419_v62  ;;  %4977 = vmatpush3.bf16.msra.mxu1 %v3257_v51 }
 0x2c9   :  { %4911 = vmatmul.mubr.msk.bf16.gmra.mrb[52].mxu1 %vm1314_vm5, %v6426_v19 }
 0x2ca   :  { %4914 = vmatprep.mubr.msk.bf16.mxu1 %vm1314_vm5, %v6436_v53 }
 0x2d1   :  { %4915 = vmatmul.mubr.msk.bf16.gmra.mrb[76].mxu1 %vm1314_vm5, %v6444_v54 }
 0x2d2   :  { %4918 = vmatprep.mubr.msk.bf16.mxu1 %vm1314_vm5, %v6452_v56 }
 0x2d9   :  { %4919 = vmatmul.mubr.msk.bf16.gmra.mrb[60].mxu1 %vm1314_vm5, %v6454_v23 }
 0x334   :  { %v4800_v34 = vpop.f32.mrb[32].mxu1  ;;  %v4854_v52 = vpop.f32.mrb[48].mxu0 }
 0x335   :  { %v1875_v27 = vpop.f32.mrb[33].mxu1  ;;  %v6591_v59 = vpop.f32.mrb[49].mxu0 }
 0x336   :  { %v4801_v37 = vpop.f32.mrb[34].mxu1  ;;  %v4855_v11 = vpop.f32.mrb[50].mxu0 }
 0x337   :  { %v6593_v22 = vadd.f32 %v4855_v11, %v4800_v34  ;;  %v1878_v30 = vpop.f32.mrb[35].mxu1  ;;  %v2196_v36 = vpop.f32.mrb[51].mxu0 }
 0x338   :  { %v6595_v7 = vadd.f32 %v4854_v52, %v1878_v30  ;;  %v6597_v40 = vadd.f32 %v2196_v36, %v1875_v27  ;;  %v6643_v30 = vld [vmem:[%s7407_s7 + $0xc] sm:$0xf] }
 0x339   :  { %5347 = vmatprep.subr.msk.bf16.mxu1 %vm1591_vm4, %v6643_v30 }
 0x33c   :  { %v4804_v35 = vpop.f32.mrb[36].mxu1  ;;  %v4858_v63 = vpop.f32.mrb[52].mxu0 }
 0x33d   :  { %v1891_v39 = vpop.f32.mrb[37].mxu1  ;;  %v2209_v10 = vpop.f32.mrb[53].mxu0 }
 0x33e   :  { %v6599_v4 = vadd.f32 %v4801_v37, %v2209_v10  ;;  %v4805_v21 = vpop.f32.mrb[38].mxu1  ;;  %v4859_v5 = vpop.f32.mrb[54].mxu0 }
 0x33f   :  { %v6601_v47 = vadd.f32 %v4859_v5, %v4804_v35  ;;  %v1894_v18 = vpop.f32.mrb[39].mxu1  ;;  %v2212_v49 = vpop.f32.mrb[55].mxu0 }
 0x340   :  { %v6603_v15 = vadd.f32 %v4858_v63, %v1894_v18  ;;  %v6605_v3 = vadd.f32 %v2212_v49, %v1891_v39 }
 0x344   :  { %v4808_v33 = vpop.f32.mrb[40].mxu1  ;;  %v4862_v55 = vpop.f32.mrb[56].mxu0 }
 0x345   :  { %v1906_v38 = vpop.f32.mrb[41].mxu1  ;;  %v6607_v20 = vpop.f32.mrb[57].mxu0 }
 0x346   :  { %v4809_v41 = vpop.f32.mrb[42].mxu1  ;;  %v4863_v0 = vpop.f32.mrb[58].mxu0 }
 0x347   :  { %v6609_v42 = vadd.f32 %v4863_v0, %v4808_v33  ;;  %v1909_v61 = vpop.f32.mrb[43].mxu1  ;;  %v2228_v32 = vpop.f32.mrb[59].mxu0 }
 0x348   :  { %v6611_v62 = vadd.f32 %v4862_v55, %v1909_v61  ;;  %v6613_v16 = vadd.f32 %v2228_v32, %v1906_v38 }
 0x34c   :  { %v4812_v25 = vpop.f32.mrb[44].mxu1  ;;  %v4866_v28 = vpop.f32.mrb[60].mxu0 }
 0x34d   :  { %v1922_v19 = vpop.f32.mrb[45].mxu1  ;;  %v2241_v24 = vpop.f32.mrb[61].mxu0 }
 0x34e   :  { %v6615_v17 = vadd.f32 %v4809_v41, %v2241_v24  ;;  %v4813_v12 = vpop.f32.mrb[46].mxu1  ;;  %v4867_v26 = vpop.f32.mrb[62].mxu0 }
 0x34f   :  { %v6617_v29 = vadd.f32 %v4867_v26, %v4812_v25  ;;  %v1925_v45 = vpop.f32.mrb[47].mxu1  ;;  %v2244_v48 = vpop.f32.mrb[63].mxu0 }
 0x350   :  { %v6619_v53 = vadd.f32 %v4866_v28, %v1925_v45  ;;  %v6621_v8 = vadd.f32 %v2244_v48, %v1922_v19 }
 0x354   :  { %v4872_v44 = vpop.f32.mrb[48].mxu1 }
 0x355   :  { %v2313_v31 = vpop.f32.mrb[49].mxu1 }
 0x356   :  { %v4873_v54 = vpop.f32.mrb[50].mxu1 }
 0x357   :  { %v2315_v43 = vpop.f32.mrb[51].mxu1 }
 0x364   :  { %v4880_v60 = vpop.f32.mrb[56].mxu1 }
 0x365   :  { %v2344_v13 = vpop.f32.mrb[57].mxu1 }
 0x366   :  { %v4881_v56 = vpop.f32.mrb[58].mxu1 }
 0x367   :  { %v2346_v23 = vpop.f32.mrb[59].mxu1 }
 0x374   :  { %v4890_v2 = vpop.f32.mrb[64].mxu1 }
 0x375   :  { %v2419_v6 = vadd.f32 %v4890_v2, %v4872_v44  ;;  %v2411_v14 = vpop.f32.mrb[65].mxu1 }
 0x376   :  { %v4891_v34 = vpop.f32.mrb[66].mxu1 }
 0x377   :  { %v2422_v52 = vadd.f32 %v4891_v34, %v4873_v54  ;;  %v2413_v27 = vpop.f32.mrb[67].mxu1 }
 0x378   :  { %v2414_v37 = vadd.f32 %v2413_v27, %v2315_v43 }
 0x384   :  { %v4898_v11 = vpop.f32.mrb[68].mxu1 }
 0x385   :  { %v2450_v36 = vadd.f32 %v4898_v11, %v4880_v60  ;;  %v2442_v35 = vpop.f32.mrb[69].mxu1 }
 0x386   :  { %v4899_v63 = vpop.f32.mrb[70].mxu1 }
 0x387   :  { %v2453_v39 = vadd.f32 %v4899_v63, %v4881_v56  ;;  %v2444_v10 = vpop.f32.mrb[71].mxu1 }
 0x388   :  { %v2445_v21 = vadd.f32 %v2444_v10, %v2346_v23 }
 0x394   :  { %v4908_v5 = vpop.f32.mrb[72].mxu1 }
 0x395   :  { %v2573_v18 = vadd.f32 %v4908_v5, %v2419_v6  ;;  %v2511_v49 = vpop.f32.mrb[73].mxu1 }
 0x396   :  { %v4909_v33 = vpop.f32.mrb[74].mxu1 }
 0x397   :  { %v6648_v55 = vadd.f32 %v6597_v40, %v2573_v18  ;;  %v2574_v38 = vadd.f32 %v4909_v33, %v2422_v52  ;;  %v2513_v41 = vpop.f32.mrb[75].mxu1 }
 0x398   :  { %v2572_v0 = vadd.f32 %v2513_v41, %v2414_v37 }
 0x399   :  { %v6651_v61 = vadd.f32 %v6595_v7, %v2574_v38  ;;  %v2656_v32 = vmul.f32 %v6648_v55, %v6648_v55  ;;  %v2619_v19 = vsel %vm1314_vm5, %v6648_v55, 0.0 }
 0x39a   :  { %v6656_v25 = vadd.f32 %v2572_v0, %v6591_v59 }
 0x39b   :  { %v2657_v28 = vmul.f32 %v6651_v61, %v6651_v61  ;;  %v2672_v59 = vsel %vm1314_vm5, %v2656_v32, 0.0  ;;  %v2621_v48 = vsel %vm1314_vm5, %v6651_v61, 0.0  ;;  %v2662_v32 = vmul.f32 %v6601_v47, %v6601_v47 }
 0x39c   :  { %v2618_v40 = vsel %vm1314_vm5, %v6656_v25, 0.0  ;;  %v2655_v24 = vmul.f32 %v6656_v25, %v6656_v25  ;;  %v4912_v7 = vpop.f32.mrb[52].mxu1 }
 0x39d   :  { %v2620_v12 = vadd.f32 %v2619_v19, %v2618_v40  ;;  %v6667_v26 = vadd.f32 %v4912_v7, %v6605_v3  ;;  %v2526_v45 = vpop.f32.mrb[53].mxu1  ;;  %v2674_v43 = vsel %vm1314_vm5, %v2657_v28, 0.0 }
 0x39e   :  { %v2671_v44 = vsel %vm1314_vm5, %v2655_v24, 0.0  ;;  %v6674_v31 = vadd.f32 %v6593_v22, %v2526_v45  ;;  %v4913_v54 = vpop.f32.mrb[54].mxu1  ;;  %v2631_v24 = vsel %vm1314_vm5, %v6601_v47, 0.0  ;;  %v2684_v45 = vsel %vm1314_vm5, %v2662_v32, 0.0 }
 0x39f   :  { %v2673_v60 = vadd.f32 %v2672_v59, %v2671_v44  ;;  %v2622_v13 = vadd.f32 %v2621_v48, %v2620_v12  ;;  %v2529_v56 = vpop.f32.mrb[55].mxu1  ;;  %v6682_v50 = vadd.f32 %v4913_v54, %v6603_v15  ;;  %v2660_v6 = vmul.f32 %v6667_v26, %v6667_v26 }
 0x3a0   :  { %v2623_v3 = vsel %vm1314_vm5, %v6674_v31, 0.0  ;;  %v2658_v23 = vmul.f32 %v6674_v31, %v6674_v31  ;;  %v6685_v9 = vadd.f32 %v6599_v4, %v2529_v56  ;;  %v2627_v15 = vsel %vm1314_vm5, %v6667_v26, 0.0 }
 0x3a1   :  { %v2624_v22 = vadd.f32 %v2623_v3, %v2622_v13  ;;  %v2675_v58 = vadd.f32 %v2674_v43, %v2673_v60  ;;  %v2661_v27 = vmul.f32 %v6682_v50, %v6682_v50  ;;  %v2629_v10 = vsel %vm1314_vm5, %v6682_v50, 0.0 }
 0x3a2   :  { %v2676_v51 = vsel %vm1314_vm5, %v2658_v23, 0.0  ;;  %v2625_v2 = vsel %vm1314_vm5, %v6685_v9, 0.0  ;;  %v2659_v52 = vmul.f32 %v6685_v9, %v6685_v9  ;;  %v2680_v49 = vsel %vm1314_vm5, %v2660_v6, 0.0 }
 0x3a3   :  { %v2677_v14 = vadd.f32 %v2676_v51, %v2675_v58  ;;  %v2626_v34 = vadd.f32 %v2625_v2, %v2624_v22 }
 0x3a4   :  { %v4916_v4 = vpop.f32.mrb[76].mxu1  ;;  %v2678_v11 = vsel %vm1314_vm5, %v2659_v52, 0.0 }
 0x3a5   :  { %v2628_v37 = vadd.f32 %v2627_v15, %v2626_v34  ;;  %v2580_v35 = vadd.f32 %v4916_v4, %v2450_v36  ;;  %v2542_v63 = vpop.f32.mrb[77].mxu1  ;;  %v2679_v5 = vadd.f32 %v2678_v11, %v2677_v14  ;;  %v2682_v36 = vsel %vm1314_vm5, %v2661_v27, 0.0 }
 0x3a6   :  { %v4917_v18 = vpop.f32.mrb[78].mxu1 }
 0x3a7   :  { %v2630_v33 = vadd.f32 %v2629_v10, %v2628_v37  ;;  %v6703_v38 = vadd.f32 %v6613_v16, %v2580_v35  ;;  %v2581_v41 = vadd.f32 %v4917_v18, %v2453_v39  ;;  %v2544_v0 = vpop.f32.mrb[79].mxu1  ;;  %v2681_v28 = vadd.f32 %v2680_v49, %v2679_v5 }
 0x3a8   :  { %v2579_v19 = vadd.f32 %v2544_v0, %v2445_v21 }
 0x3a9   :  { %v6709_v40 = vadd.f32 %v6611_v62, %v2581_v41  ;;  %v2683_v7 = vadd.f32 %v2682_v36, %v2681_v28  ;;  %v2664_v16 = vmul.f32 %v6703_v38, %v6703_v38  ;;  %v2632_v39 = vadd.f32 %v2631_v24, %v2630_v33 }
 0x3aa   :  { %v6714_v12 = vadd.f32 %v2579_v19, %v6607_v20  ;;  %v2635_v43 = vsel %vm1314_vm5, %v6703_v38, 0.0  ;;  %v2670_v41 = vmul.f32 %v6617_v29, %v6617_v29  ;;  %v2647_v36 = vsel %vm1314_vm5, %v6617_v29, 0.0 }
 0x3ab   :  { %v2685_v44 = vadd.f32 %v2684_v45, %v2683_v7  ;;  %v2665_v60 = vmul.f32 %v6709_v40, %v6709_v40  ;;  %v2688_v23 = vsel %vm1314_vm5, %v2664_v16, 0.0 }
 0x3ac   :  { %v2633_v21 = vsel %vm1314_vm5, %v6714_v12, 0.0  ;;  %v2663_v62 = vmul.f32 %v6714_v12, %v6714_v12  ;;  %v4920_v59 = vpop.f32.mrb[60].mxu1 }
 0x3ad   :  { %v2634_v48 = vadd.f32 %v2633_v21, %v2632_v39  ;;  %v6724_v54 = vadd.f32 %v4920_v59, %v6621_v8  ;;  %v2557_v20 = vpop.f32.mrb[61].mxu1  ;;  %v2637_v8 = vsel %vm1314_vm5, %v6709_v40, 0.0  ;;  %v2690_v52 = vsel %vm1314_vm5, %v2665_v60, 0.0 }
 0x3ae   :  { %v2686_v13 = vsel %vm1314_vm5, %v2663_v62, 0.0  ;;  %v6732_v56 = vadd.f32 %v6609_v42, %v2557_v20  ;;  %v4921_v3 = vpop.f32.mrb[62].mxu1  ;;  %v2700_v39 = vsel %vm1314_vm5, %v2670_v41, 0.0 }
 0x3af   :  { %v2687_v22 = vadd.f32 %v2686_v13, %v2685_v44  ;;  %v2636_v58 = vadd.f32 %v2635_v43, %v2634_v48  ;;  %v2560_v51 = vpop.f32.mrb[63].mxu1  ;;  %v6740_v6 = vadd.f32 %v4921_v3, %v6619_v53  ;;  %v2668_v11 = vmul.f32 %v6724_v54, %v6724_v54 }
 0x3b0   :  { %v2666_v2 = vmul.f32 %v6732_v56, %v6732_v56  ;;  %v2614_v14 = vadd.f32 %v6615_v17, %v2560_v51  ;;  %v2639_v15 = vsel %vm1314_vm5, %v6732_v56, 0.0  ;;  %v2643_v17 = vsel %vm1314_vm5, %v6724_v54, 0.0 }
 0x3b1   :  { %v2638_v34 = vadd.f32 %v2637_v8, %v2636_v58  ;;  %v2689_v42 = vadd.f32 %v2688_v23, %v2687_v22  ;;  %v2669_v5 = vmul.f32 %v6740_v6, %v6740_v6  ;;  %v2696_v0 = vsel %vm1314_vm5, %v2668_v11, 0.0 }
 0x3b2   :  { %v2667_v37 = vmul.f32 %v2614_v14, %v2614_v14  ;;  %v2692_v35 = vsel %vm1314_vm5, %v2666_v2, 0.0  ;;  %v2641_v53 = vsel %vm1314_vm5, %v2614_v14, 0.0  ;;  %v2645_v32 = vsel %vm1314_vm5, %v6740_v6, 0.0 }
 0x3b3   :  { %v2640_v4 = vadd.f32 %v2639_v15, %v2638_v34  ;;  %v2691_v27 = vadd.f32 %v2690_v52, %v2689_v42  ;;  %v2698_v24 = vsel %vm1314_vm5, %v2669_v5, 0.0  ;;  %v1474_v42 = vld [vmem:[%s7408_s5] sm:$0x1]  ;;  %v3017_v11 = vsel %vm1591_vm4, %v6636_v57, 0 }
 0x3b4   :  { %v2694_v18 = vsel %vm1314_vm5, %v2667_v37, 0.0 }
 0x3b5   :  { %v2693_v63 = vadd.f32 %v2692_v35, %v2691_v27  ;;  %v2642_v10 = vadd.f32 %v2641_v53, %v2640_v4  ;;  %v1475_v4 = vld [vmem:[%s7409_s6] sm:$0x1]  ;;  %v6775_v35 = vsel %vm1591_vm4, %v6643_v30, 0 }
 0x3b7   :  { %v2644_v49 = vadd.f32 %v2643_v17, %v2642_v10  ;;  %v2695_v33 = vadd.f32 %v2694_v18, %v2693_v63 }
 0x3b9   :  { %v2646_v28 = vadd.f32 %v2645_v32, %v2644_v49  ;;  %v2697_v19 = vadd.f32 %v2696_v0, %v2695_v33 }
 0x3bb   :  { %v2648_v7 = vadd.f32 %v2647_v36, %v2646_v28  ;;  %v2699_v16 = vadd.f32 %v2698_v24, %v2697_v19 }
 0x3bd   :  { %v2649_v45 = vrot.slane %v2648_v7, 4  ;;  %v2701_v21 = vadd.f32 %v2700_v39, %v2699_v16 }
 0x3bf   :  { %v2650_v62 = vadd.f32 %v2649_v45, %v2648_v7  ;;  %v2702_v59 = vrot.slane %v2701_v21, 4 }
 0x3c1   :  { %v2651_v48 = vrot.slane %v2650_v62, 2  ;;  %v2703_v44 = vadd.f32 %v2702_v59, %v2701_v21 }
 0x3c3   :  { %v2652_v20 = vadd.f32 %v2651_v48, %v2650_v62  ;;  %v2704_v43 = vrot.slane %v2703_v44, 2 }
 0x3c5   :  { %v2653_v60 = vrot.slane %v2652_v20, 1  ;;  %v2705_v13 = vadd.f32 %v2704_v43, %v2703_v44 }
 0x3c7   :  { %v2654_v3 = vadd.f32 %v2653_v60, %v2652_v20  ;;  %v2706_v23 = vrot.slane %v2705_v13, 1 }
 0x3c9   :  { %v2707_v22 = vadd.f32 %v2706_v23, %v2705_v13  ;;  %v2708_v58 = vmul.f32 0.0078125, %v2654_v3 }
 0x3cb   :  { %v2709_v51 = vmul.f32 0.0078125, %v2707_v22  ;;  %v2710_v8 = vmul.f32 %v2708_v58, %v2708_v58 }
 0x3cd   :  { %v2711_v2 = vsub.f32 %v2709_v51, %v2710_v8  ;;  %v6844_v51 = vld [vmem:[%s7407_s7 + $0x8] sm:$0xf]  ;;  %v6849_v8 = vld [vmem:[%s7407_s7 + $0x14] sm:$0xf] }
 0x3ce   :  { %v3141_v1 = vsel %vm1591_vm4, %v6844_v51, 0 }
 0x3cf   :  { %v2712_v34 = vadd.f32 1e-05, %v2711_v2 }
 0x3d1   :  { %5395 = vrsqrt.f32 %v2712_v34 }
 0x3db   :  { %v5396_v52 = vpop.eup %5395 }
 0x3dc   :  { %v2714_v15 = vmul.f32 %v5396_v52, %v1474_v42 }
 0x3de   :  { %v2715_v27 = vmul.f32 %v2714_v15, %v2708_v58  ;;  %v2721_v37 = vrot.slane %v2714_v15, %v6193_v46 }
 0x3e0   :  { %v2716_v53 = vsub.f32 %v1475_v4, %v2715_v27  ;;  %v2735_v63 = vmul.f32 %v2721_v37, %v2614_v14  ;;  %v2723_v10 = vmul.f32 %v2721_v37, %v6656_v25  ;;  %v2724_v17 = vmul.f32 %v2721_v37, %v6648_v55 }
 0x3e1   :  { %v2725_v5 = vmul.f32 %v2721_v37, %v6651_v61  ;;  %v2726_v18 = vmul.f32 %v2721_v37, %v6674_v31  ;;  %v2727_v49 = vmul.f32 %v2721_v37, %v6685_v9  ;;  %v2728_v33 = vmul.f32 %v2721_v37, %v6667_v26 }
 0x3e2   :  { %v2743_v57 = vrot.slane %v2716_v53, %v6193_v46  ;;  %v2729_v41 = vmul.f32 %v2721_v37, %v6682_v50  ;;  %v2730_v30 = vmul.f32 %v2721_v37, %v6601_v47  ;;  %v2731_v14 = vmul.f32 %v2721_v37, %v6714_v12 }
 0x3e3   :  { %v2732_v25 = vmul.f32 %v2721_v37, %v6703_v38  ;;  %v2733_v55 = vmul.f32 %v2721_v37, %v6709_v40  ;;  %v2734_v61 = vmul.f32 %v2721_v37, %v6732_v56  ;;  %v2736_v31 = vmul.f32 %v2721_v37, %v6724_v54 }
 0x3e4   :  { %v2757_v0 = vadd.f32 %v2743_v57, %v2735_v63  ;;  %v2745_v9 = vadd.f32 %v2743_v57, %v2723_v10  ;;  %v2746_v32 = vadd.f32 %v2743_v57, %v2724_v17  ;;  %v2747_v26 = vadd.f32 %v2743_v57, %v2725_v5 }
 0x3e5   :  { %v2748_v28 = vadd.f32 %v2743_v57, %v2726_v18  ;;  %v2749_v19 = vadd.f32 %v2743_v57, %v2727_v49  ;;  %v2750_v36 = vadd.f32 %v2743_v57, %v2728_v33  ;;  %v2751_v50 = vadd.f32 %v2743_v57, %v2729_v41 }
 0x3e6   :  { %v6791_v24 = vmax.f32 %v2757_v0, 0.0  ;;  %v6793_v47 = vmax.f32 %v2745_v9, 0.0  ;;  %v6795_v12 = vmax.f32 %v2746_v32, 0.0  ;;  %v6797_v38 = vmax.f32 %v2747_v26, 0.0 }
 0x3e7   :  { %v6799_v40 = vmax.f32 %v2748_v28, 0.0  ;;  %v6801_v56 = vmax.f32 %v2749_v19, 0.0  ;;  %v6803_v54 = vmax.f32 %v2750_v36, 0.0  ;;  %v2752_v7 = vadd.f32 %v2743_v57, %v2730_v30 }
 0x3e8   :  { %v6807_v16 = vpack.c.bf16 %v6795_v12, %v6793_v47  ;;  %v6809_v39 = vmax.f32 %v2751_v50, 0.0  ;;  %v2753_v45 = vadd.f32 %v2743_v57, %v2731_v14  ;;  %v2754_v21 = vadd.f32 %v2743_v57, %v2732_v25 }
 0x3e9   :  { %v6813_v62 = vpack.c.bf16 %v6799_v40, %v6797_v38  ;;  %v6817_v59 = vpack.c.bf16 %v6803_v54, %v6801_v56  ;;  %v6819_v48 = vmax.f32 %v2752_v7, 0.0  ;;  %v2755_v44 = vadd.f32 %v2743_v57, %v2733_v55 }
 0x3ea   :  { %4924 = vmatprep.mubr.msk.bf16.mxu0 %vm1314_vm5, %v6807_v16  ;;  %4978 = vmatprep.mubr.msk.bf16.mxu1 %vm1314_vm5, %v6807_v16  ;;  %v6825_v20 = vmax.f32 %v2753_v45, 0.0  ;;  %v6827_v43 = vmax.f32 %v2754_v21, 0.0  ;;  %v2756_v60 = vadd.f32 %v2743_v57, %v2734_v61  ;;  %v2758_v13 = vadd.f32 %v2743_v57, %v2736_v31 }
 0x3eb   :  { %4925 = vmatmul.mubr.msk.bf16.vlgmr.msra.gmra.mrb[64].mxu0 %vm1314_vm5, %v6813_v62  ;;  %4979 = vmatmul.mubr.msk.bf16.vlgmr.msra.gmra.mrb[80].mxu1 %vm1314_vm5, %v6813_v62  ;;  %v6835_v3 = vpack.c.bf16 %v6819_v48, %v6809_v39  ;;  %v6837_v23 = vmax.f32 %v2755_v44, 0.0  ;;  %v2737_v22 = vmul.f32 %v2721_v37, %v6740_v6  ;;  %v2738_v58 = vmul.f32 %v2721_v37, %v6617_v29 }
 0x3ec   :  { %4941 = vmatpush3.bf16.msra.mxu0 %v3017_v11  ;;  %4928 = vmatprep.mubr.msk.bf16.mxu0 %vm1314_vm5, %v6817_v59  ;;  %v6855_v2 = vpack.c.bf16 %v6827_v43, %v6825_v20  ;;  %v6857_v6 = vmax.f32 %v2756_v60, 0.0  ;;  %v6859_v29 = vmax.f32 %v2758_v13, 0.0  ;;  %v2779_v34 = vrot.slane %v6793_v47, 7 }
 0x3ed   :  { %4982 = vmatprep.mubr.msk.bf16.mxu1 %vm1314_vm5, %v6817_v59  ;;  %v2759_v42 = vadd.f32 %v2743_v57, %v2737_v22  ;;  %v2760_v52 = vadd.f32 %v2743_v57, %v2738_v58  ;;  %v2780_v15 = vrot.slane %v6795_v12, 7  ;;  %4995 = vmatpush3.bf16.msra.mxu1 %v6775_v35  ;;  %v2781_v4 = vrot.slane %v6797_v38, 7 }
 0x3ee   :  { %v6869_v27 = vpack.c.bf16 %v6857_v6, %v6837_v23  ;;  %v6873_v37 = vpack.c.bf16 %v6859_v29, %v6791_v24  ;;  %v2795_v11 = vsel %vm169_vm2, 0.0, %v2779_v34  ;;  %5345 = vmatprep.subr.msk.bf16.mxu0 %vm1591_vm4, %v6844_v51  ;;  %v2782_v53 = vrot.slane %v6799_v40, 7  ;;  %5348 = vmatprep.subr.msk.bf16.mxu1 %vm1591_vm4, %v6849_v8 }
 0x3ef   :  { %v6882_v35 = vmax.f32 %v2759_v42, 0.0  ;;  %v6884_v63 = vmax.f32 %v2760_v52, 0.0  ;;  %v2796_v10 = vsel %vm169_vm2, 0.0, %v2780_v15  ;;  %v2797_v17 = vsel %vm169_vm2, 0.0, %v2781_v4 }
 0x3f0   :  { %v6890_v5 = vpack.c.bf16 %v2796_v10, %v2795_v11  ;;  %v2798_v18 = vsel %vm169_vm2, 0.0, %v2782_v53  ;;  %v2783_v49 = vrot.slane %v6801_v56, 7  ;;  %v2784_v33 = vrot.slane %v6803_v54, 7 }
 0x3f1   :  { %v6898_v57 = vpack.c.bf16 %v6884_v63, %v6882_v35  ;;  %v6900_v41 = vpack.c.bf16 %v2798_v18, %v2797_v17  ;;  %v2785_v30 = vrot.slane %v6809_v39, 7  ;;  %v2786_v14 = vrot.slane %v6819_v48, 7 }
 0x3f2   :  { %v2799_v25 = vsel %vm169_vm2, 0.0, %v2783_v49  ;;  %v2800_v55 = vsel %vm169_vm2, 0.0, %v2784_v33  ;;  %v2787_v61 = vrot.slane %v6825_v20, 7  ;;  %v2788_v31 = vrot.slane %v6827_v43, 7 }
 0x3f3   :  { %4929 = vmatmul.mubr.msk.bf16.gmra.mrb[68].mxu0 %vm1314_vm5, %v6835_v3  ;;  %4983 = vmatmul.mubr.msk.bf16.gmra.mrb[84].mxu1 %vm1314_vm5, %v6835_v3  ;;  %v6914_v0 = vpack.c.bf16 %v2800_v55, %v2799_v25  ;;  %v2801_v9 = vsel %vm169_vm2, 0.0, %v2785_v30  ;;  %v2802_v32 = vsel %vm169_vm2, 0.0, %v2786_v14  ;;  %v2789_v26 = vrot.slane %v6837_v23, 7 }
 0x3f4   :  { %4932 = vmatprep.mubr.msk.bf16.mxu0 %vm1314_vm5, %v6855_v2  ;;  %4986 = vmatprep.mubr.msk.bf16.mxu1 %vm1314_vm5, %v6855_v2  ;;  %v6925_v28 = vpack.c.bf16 %v2802_v32, %v2801_v9  ;;  %v2803_v19 = vsel %vm169_vm2, 0.0, %v2787_v61  ;;  %v2804_v36 = vsel %vm169_vm2, 0.0, %v2788_v31  ;;  %v2790_v50 = vrot.slane %v6857_v6, 7 }
 0x3f5   :  { %v6932_v7 = vpack.c.bf16 %v2804_v36, %v2803_v19  ;;  %v2805_v45 = vsel %vm169_vm2, 0.0, %v2789_v26  ;;  %v2791_v21 = vrot.slane %v6791_v24, 7  ;;  %v2792_v44 = vrot.slane %v6859_v29, 7 }
 0x3f6   :  { %v2806_v60 = vsel %vm169_vm2, 0.0, %v2790_v50  ;;  %v2793_v13 = vrot.slane %v6882_v35, 7  ;;  %v2794_v22 = vrot.slane %v6884_v63, 7  ;;  %v2811_v58 = vrot.slane %v6793_v47, 1 }
 0x3f7   :  { %v6943_v34 = vpack.c.bf16 %v2806_v60, %v2805_v45  ;;  %v2807_v42 = vsel %vm169_vm2, 0.0, %v2791_v21  ;;  %v2808_v52 = vsel %vm169_vm2, 0.0, %v2792_v44  ;;  %v2812_v15 = vrot.slane %v6795_v12, 1 }
 0x3f8   :  { %v6950_v4 = vpack.c.bf16 %v2808_v52, %v2807_v42  ;;  %v2809_v11 = vsel %vm169_vm2, 0.0, %v2793_v13  ;;  %v2810_v53 = vsel %vm169_vm2, 0.0, %v2794_v22  ;;  %v2827_v47 = vsel %vm202_vm3, 0.0, %v2811_v58  ;;  %v4329_v42 = vld [vmem:[%s7407_s7 + $0x1c] sm:$0xf] }
 0x3f9   :  { %v6958_v10 = vpack.c.bf16 %v2810_v53, %v2809_v11  ;;  %v2828_v17 = vsel %vm202_vm3, 0.0, %v2812_v15  ;;  %v2813_v18 = vrot.slane %v6797_v38, 1  ;;  %v2814_v12 = vrot.slane %v6799_v40, 1  ;;  %v4346_v15 = vld [vmem:[%s7407_s7 + $0x20] sm:$0xf] }
 0x3fa   :  { %v6964_v49 = vpack.c.bf16 %v2828_v17, %v2827_v47  ;;  %v2815_v33 = vrot.slane %v6801_v56, 1  ;;  %v2816_v30 = vrot.slane %v6803_v54, 1  ;;  %v2817_v14 = vrot.slane %v6809_v39, 1 }
 0x3fb   :  { %4933 = vmatmul.mubr.msk.bf16.gmra.mrb[72].mxu0 %vm1314_vm5, %v6869_v27  ;;  %4987 = vmatmul.mubr.msk.bf16.gmra.mrb[88].mxu1 %vm1314_vm5, %v6869_v27  ;;  %v2829_v25 = vsel %vm202_vm3, 0.0, %v2813_v18  ;;  %v2830_v38 = vsel %vm202_vm3, 0.0, %v2814_v12  ;;  %v2818_v40 = vrot.slane %v6819_v48, 1  ;;  %v2819_v56 = vrot.slane %v6825_v20, 1 }
 0x3fc   :  { %4936 = vmatprep.mubr.msk.bf16.mxu0 %vm1314_vm5, %v6873_v37  ;;  %4990 = vmatprep.mubr.msk.bf16.mxu1 %vm1314_vm5, %v6873_v37  ;;  %v6983_v54 = vpack.c.bf16 %v2830_v38, %v2829_v25  ;;  %v2831_v39 = vsel %vm202_vm3, 0.0, %v2815_v33  ;;  %v2832_v55 = vsel %vm202_vm3, 0.0, %v2816_v30  ;;  %v2833_v61 = vsel %vm202_vm3, 0.0, %v2817_v14 }
 0x3fd   :  { %v6991_v48 = vpack.c.bf16 %v2832_v55, %v2831_v39  ;;  %v2834_v20 = vsel %vm202_vm3, 0.0, %v2818_v40  ;;  %v2820_v31 = vrot.slane %v6827_v43, 1  ;;  %v2835_v9 = vsel %vm202_vm3, 0.0, %v2819_v56 }
 0x3fe   :  { %v6998_v32 = vpack.c.bf16 %v2834_v20, %v2833_v61  ;;  %v2821_v26 = vrot.slane %v6837_v23, 1  ;;  %v2822_v19 = vrot.slane %v6857_v6, 1  ;;  %v2823_v36 = vrot.slane %v6791_v24, 1 }
 0x3ff   :  { %v2836_v50 = vsel %vm202_vm3, 0.0, %v2820_v31  ;;  %v2824_v45 = vrot.slane %v6859_v29, 1  ;;  %v2825_v21 = vrot.slane %v6882_v35, 1  ;;  %v2826_v43 = vrot.slane %v6884_v63, 1 }
 0x400   :  { %v7008_v44 = vpack.c.bf16 %v2836_v50, %v2835_v9  ;;  %v2837_v60 = vsel %vm202_vm3, 0.0, %v2821_v26  ;;  %v2838_v23 = vsel %vm202_vm3, 0.0, %v2822_v19  ;;  %v2839_v24 = vsel %vm202_vm3, 0.0, %v2823_v36 }
 0x401   :  { %v7016_v6 = vpack.c.bf16 %v2838_v23, %v2837_v60  ;;  %v2840_v29 = vsel %vm202_vm3, 0.0, %v2824_v45  ;;  %v2841_v35 = vsel %vm202_vm3, 0.0, %v2825_v21  ;;  %v2842_v63 = vsel %vm202_vm3, 0.0, %v2826_v43 }
 0x402   :  { %v7024_v13 = vpack.c.bf16 %v2840_v29, %v2839_v24  ;;  %v7026_v22 = vpack.c.bf16 %v2842_v63, %v2841_v35  ;;  %v3459_v58 = vsel %vm1591_vm4, %v6849_v8, 0  ;;  %v3579_v51 = vsel %vm1591_vm4, %v4329_v42, 0  ;;  %v4328_v8 = vld [vmem:[%s7407_s7 + $0x18] sm:$0xf] }
 0x403   :  { %4937 = vmatmul.mubr.msk.bf16.gmra.mrb[76].mxu0 %vm1314_vm5, %v6898_v57  ;;  %4991 = vmatmul.mubr.msk.bf16.gmra.mrb[92].mxu1 %vm1314_vm5, %v6898_v57  ;;  %v3677_v52 = vsel %vm1591_vm4, %v4328_v8, 0 }
 0x404   :  { %4942 = vmatprep.mubr.msk.bf16.mxu0 %vm1314_vm5, %v6890_v5  ;;  %4996 = vmatprep.mubr.msk.bf16.mxu1 %vm1314_vm5, %v6890_v5 }
 0x40b   :  { %4943 = vmatmul.mubr.msk.bf16.vlgmr.msra.gmra.mrb[64].mxu0 %vm1314_vm5, %v6900_v41  ;;  %4997 = vmatmul.mubr.msk.bf16.vlgmr.msra.gmra.mrb[80].mxu1 %vm1314_vm5, %v6900_v41 }
 0x40c   :  { %4959 = vmatpush3.bf16.msra.mxu0 %v3141_v1  ;;  %4946 = vmatprep.mubr.msk.bf16.mxu0 %vm1314_vm5, %v6914_v0 }
 0x40d   :  { %5000 = vmatprep.mubr.msk.bf16.mxu1 %vm1314_vm5, %v6914_v0  ;;  %5013 = vmatpush3.bf16.msra.mxu1 %v3459_v58 }
 0x40e   :  { %5349 = vmatprep.subr.msk.bf16.mxu0 %vm1591_vm4, %v4329_v42 }
 0x413   :  { %4947 = vmatmul.mubr.msk.bf16.gmra.mrb[68].mxu0 %vm1314_vm5, %v6925_v28  ;;  %5001 = vmatmul.mubr.msk.bf16.gmra.mrb[84].mxu1 %vm1314_vm5, %v6925_v28 }
 0x414   :  { %4950 = vmatprep.mubr.msk.bf16.mxu0 %vm1314_vm5, %v6932_v7  ;;  %5004 = vmatprep.mubr.msk.bf16.mxu1 %vm1314_vm5, %v6932_v7 }
 0x41b   :  { %4951 = vmatmul.mubr.msk.bf16.gmra.mrb[72].mxu0 %vm1314_vm5, %v6943_v34  ;;  %5005 = vmatmul.mubr.msk.bf16.gmra.mrb[88].mxu1 %vm1314_vm5, %v6943_v34 }
 0x41c   :  { %4954 = vmatprep.mubr.msk.bf16.mxu0 %vm1314_vm5, %v6950_v4  ;;  %5008 = vmatprep.mubr.msk.bf16.mxu1 %vm1314_vm5, %v6950_v4 }
 0x423   :  { %4955 = vmatmul.mubr.msk.bf16.gmra.mrb[76].mxu0 %vm1314_vm5, %v6958_v10  ;;  %5009 = vmatmul.mubr.msk.bf16.gmra.mrb[92].mxu1 %vm1314_vm5, %v6958_v10 }
 0x424   :  { %4960 = vmatprep.mubr.msk.bf16.mxu0 %vm1314_vm5, %v6964_v49  ;;  %5014 = vmatprep.mubr.msk.bf16.mxu1 %vm1314_vm5, %v6964_v49 }
 0x42b   :  { %4961 = vmatmul.mubr.msk.bf16.vlgmr.msra.gmra.mrb[64].mxu0 %vm1314_vm5, %v6983_v54  ;;  %5015 = vmatmul.mubr.msk.bf16.vlgmr.msra.gmra.mrb[80].mxu1 %vm1314_vm5, %v6983_v54 }
 0x42c   :  { %5031 = vmatpush3.bf16.msra.mxu0 %v3579_v51  ;;  %4964 = vmatprep.mubr.msk.bf16.mxu0 %vm1314_vm5, %v6991_v48 }
 0x42d   :  { %5018 = vmatprep.mubr.msk.bf16.mxu1 %vm1314_vm5, %v6991_v48  ;;  %5350 = vmatprep.subr.msk.bf16.mxu0 %vm1591_vm4, %v4328_v8 }
 0x433   :  { %4965 = vmatmul.mubr.msk.bf16.gmra.mrb[68].mxu0 %vm1314_vm5, %v6998_v32  ;;  %5019 = vmatmul.mubr.msk.bf16.gmra.mrb[84].mxu1 %vm1314_vm5, %v6998_v32 }
 0x434   :  { %4968 = vmatprep.mubr.msk.bf16.mxu0 %vm1314_vm5, %v7008_v44  ;;  %5022 = vmatprep.mubr.msk.bf16.mxu1 %vm1314_vm5, %v7008_v44 }
 0x43b   :  { %4969 = vmatmul.mubr.msk.bf16.gmra.mrb[72].mxu0 %vm1314_vm5, %v7016_v6  ;;  %5023 = vmatmul.mubr.msk.bf16.gmra.mrb[88].mxu1 %vm1314_vm5, %v7016_v6 }
 0x43c   :  { %4972 = vmatprep.mubr.msk.bf16.mxu0 %vm1314_vm5, %v7024_v13  ;;  %5026 = vmatprep.mubr.msk.bf16.mxu1 %vm1314_vm5, %v7024_v13 }
 0x443   :  { %4973 = vmatmul.mubr.msk.bf16.gmra.mrb[76].mxu0 %vm1314_vm5, %v7026_v22  ;;  %5027 = vmatmul.mubr.msk.bf16.gmra.mrb[92].mxu1 %vm1314_vm5, %v7026_v22 }
 0x444   :  { %5032 = vmatprep.mubr.msk.bf16.mxu0 %vm1314_vm5, %v6807_v16  ;;  %v3777_v16 = vsel %vm1591_vm4, %v4346_v15, 0 }
 0x44b   :  { %5033 = vmatmul.mubr.msk.bf16.vlgmr.msra.gmra.mrb[80].mxu0 %vm1314_vm5, %v6813_v62 }
 0x44c   :  { %5049 = vmatpush3.bf16.msra.mxu0 %v3677_v52  ;;  %5036 = vmatprep.mubr.msk.bf16.mxu0 %vm1314_vm5, %v6817_v59 }
 0x44d   :  { %5351 = vmatprep.subr.msk.bf16.mxu0 %vm1591_vm4, %v4346_v15 }
 0x453   :  { %5037 = vmatmul.mubr.msk.bf16.gmra.mrb[84].mxu0 %vm1314_vm5, %v6835_v3 }
 0x454   :  { %5040 = vmatprep.mubr.msk.bf16.mxu0 %vm1314_vm5, %v6855_v2 }
 0x45b   :  { %5041 = vmatmul.mubr.msk.bf16.gmra.mrb[88].mxu0 %vm1314_vm5, %v6869_v27 }
 0x45c   :  { %5044 = vmatprep.mubr.msk.bf16.mxu0 %vm1314_vm5, %v6873_v37 }
 0x463   :  { %5045 = vmatmul.mubr.msk.bf16.gmra.mrb[92].mxu0 %vm1314_vm5, %v6898_v57 }
 0x464   :  { %5050 = vmatprep.mubr.msk.bf16.mxu0 %vm1314_vm5, %v6890_v5 }
 0x46b   :  { %5051 = vmatmul.mubr.msk.bf16.vlgmr.msra.gmra.mrb[96].mxu0 %vm1314_vm5, %v6900_v41 }
 0x46c   :  { %5067 = vmatpush3.bf16.msra.mxu0 %v3777_v16  ;;  %5054 = vmatprep.mubr.msk.bf16.mxu0 %vm1314_vm5, %v6914_v0 }
 0x473   :  { %5055 = vmatmul.mubr.msk.bf16.gmra.mrb[84].mxu0 %vm1314_vm5, %v6925_v28 }
 0x474   :  { %5058 = vmatprep.mubr.msk.bf16.mxu0 %vm1314_vm5, %v6932_v7 }
 0x47b   :  { %5059 = vmatmul.mubr.msk.bf16.gmra.mrb[100].mxu0 %vm1314_vm5, %v6943_v34 }
 0x47c   :  { %5062 = vmatprep.mubr.msk.bf16.mxu0 %vm1314_vm5, %v6950_v4 }
 0x483   :  { %5063 = vmatmul.mubr.msk.bf16.gmra.mrb[92].mxu0 %vm1314_vm5, %v6958_v10 }
 0x484   :  { %5068 = vmatprep.mubr.msk.bf16.mxu0 %vm1314_vm5, %v6964_v49 }
 0x48b   :  { %5069 = vmatmul.mubr.msk.bf16.vlgmr.msra.gmra.mrb[104].mxu0 %vm1314_vm5, %v6983_v54 }
 0x48c   :  { %5072 = vmatprep.mubr.msk.bf16.mxu0 %vm1314_vm5, %v6991_v48 }
 0x493   :  { %5073 = vmatmul.mubr.msk.bf16.gmra.mrb[84].mxu0 %vm1314_vm5, %v6998_v32 }
 0x494   :  { %5076 = vmatprep.mubr.msk.bf16.mxu0 %vm1314_vm5, %v7008_v44 }
 0x49b   :  { %5077 = vmatmul.mubr.msk.bf16.gmra.mrb[108].mxu0 %vm1314_vm5, %v7016_v6 }
 0x49c   :  { %5080 = vmatprep.mubr.msk.bf16.mxu0 %vm1314_vm5, %v7024_v13 }
 0x4a3   :  { %5081 = vmatmul.mubr.msk.bf16.gmra.mrb[92].mxu0 %vm1314_vm5, %v7026_v22 }
 0x4fe   :  { %v4962_v62 = vpop.f32.mrb[64].mxu0  ;;  %v5016_v59 = vpop.f32.mrb[80].mxu1 }
 0x4ff   :  { %v3177_v3 = vpop.f32.mrb[65].mxu0  ;;  %v7163_v2 = vpop.f32.mrb[81].mxu1 }
 0x500   :  { %v4963_v27 = vpop.f32.mrb[66].mxu0  ;;  %v5017_v37 = vpop.f32.mrb[82].mxu1 }
 0x501   :  { %v7165_v5 = vadd.f32 %v5017_v37, %v4962_v62  ;;  %v3180_v57 = vpop.f32.mrb[67].mxu0  ;;  %v3498_v41 = vpop.f32.mrb[83].mxu1 }
 0x502   :  { %v7167_v0 = vadd.f32 %v5016_v59, %v3180_v57  ;;  %v3889_v28 = vadd.f32 %v3498_v41, %v3177_v3 }
 0x506   :  { %v4966_v7 = vpop.f32.mrb[68].mxu0  ;;  %v5020_v34 = vpop.f32.mrb[84].mxu1 }
 0x507   :  { %v3193_v4 = vpop.f32.mrb[69].mxu0  ;;  %v3511_v11 = vpop.f32.mrb[85].mxu1 }
 0x508   :  { %v7169_v53 = vadd.f32 %v4963_v27, %v3511_v11  ;;  %v4967_v47 = vpop.f32.mrb[70].mxu0  ;;  %v5021_v10 = vpop.f32.mrb[86].mxu1 }
 0x509   :  { %v7171_v17 = vadd.f32 %v5021_v10, %v4966_v7  ;;  %v3196_v18 = vpop.f32.mrb[71].mxu0  ;;  %v3514_v12 = vpop.f32.mrb[87].mxu1 }
 0x50a   :  { %v7173_v49 = vadd.f32 %v5020_v34, %v3196_v18  ;;  %v7175_v33 = vadd.f32 %v3514_v12, %v3193_v4 }
 0x50e   :  { %v4970_v30 = vpop.f32.mrb[72].mxu0  ;;  %v5024_v14 = vpop.f32.mrb[88].mxu1 }
 0x50f   :  { %v3208_v25 = vpop.f32.mrb[73].mxu0  ;;  %v7177_v38 = vpop.f32.mrb[89].mxu1 }
 0x510   :  { %v4971_v40 = vpop.f32.mrb[74].mxu0  ;;  %v5025_v56 = vpop.f32.mrb[90].mxu1 }
 0x511   :  { %v7179_v54 = vadd.f32 %v5025_v56, %v4970_v30  ;;  %v3211_v39 = vpop.f32.mrb[75].mxu0  ;;  %v3530_v55 = vpop.f32.mrb[91].mxu1 }
 0x512   :  { %v7181_v61 = vadd.f32 %v5024_v14, %v3211_v39  ;;  %v7183_v48 = vadd.f32 %v3530_v55, %v3208_v25 }
 0x516   :  { %v4974_v20 = vpop.f32.mrb[76].mxu0  ;;  %v5028_v31 = vpop.f32.mrb[92].mxu1 }
 0x517   :  { %v3224_v9 = vpop.f32.mrb[77].mxu0  ;;  %v3543_v32 = vpop.f32.mrb[93].mxu1 }
 0x518   :  { %v7185_v26 = vadd.f32 %v4971_v40, %v3543_v32  ;;  %v4975_v19 = vpop.f32.mrb[78].mxu0  ;;  %v5029_v36 = vpop.f32.mrb[94].mxu1 }
 0x519   :  { %v7187_v50 = vadd.f32 %v5029_v36, %v4974_v20  ;;  %v3227_v45 = vpop.f32.mrb[79].mxu0  ;;  %v3546_v21 = vpop.f32.mrb[95].mxu1 }
 0x51a   :  { %v7189_v43 = vadd.f32 %v5028_v31, %v3227_v45  ;;  %v7191_v44 = vadd.f32 %v3546_v21, %v3224_v9 }
 0x51e   :  { %v5034_v60 = vpop.f32.mrb[80].mxu0 }
 0x51f   :  { %v3615_v23 = vpop.f32.mrb[81].mxu0 }
 0x520   :  { %v5035_v24 = vpop.f32.mrb[82].mxu0 }
 0x521   :  { %v3617_v6 = vpop.f32.mrb[83].mxu0 }
 0x52e   :  { %v5042_v29 = vpop.f32.mrb[88].mxu0 }
 0x52f   :  { %v3646_v35 = vpop.f32.mrb[89].mxu0 }
 0x530   :  { %v5043_v63 = vpop.f32.mrb[90].mxu0 }
 0x531   :  { %v3648_v13 = vpop.f32.mrb[91].mxu0 }
 0x53e   :  { %v5052_v22 = vpop.f32.mrb[96].mxu0 }
 0x53f   :  { %v3721_v1 = vadd.f32 %v5052_v22, %v5034_v60  ;;  %v3713_v58 = vpop.f32.mrb[97].mxu0 }
 0x540   :  { %v5053_v42 = vpop.f32.mrb[98].mxu0 }
 0x541   :  { %v3724_v51 = vadd.f32 %v5053_v42, %v5035_v24  ;;  %v3715_v8 = vpop.f32.mrb[99].mxu0 }
 0x542   :  { %v3716_v52 = vadd.f32 %v3715_v8, %v3617_v6 }
 0x54e   :  { %v5060_v15 = vpop.f32.mrb[100].mxu0 }
 0x54f   :  { %v3752_v16 = vadd.f32 %v5060_v15, %v5042_v29  ;;  %v3744_v62 = vpop.f32.mrb[101].mxu0  ;;  %v3964_v15 = vmul.f32 %v7171_v17, %v7171_v17 }
 0x550   :  { %v5061_v59 = vpop.f32.mrb[102].mxu0 }
 0x551   :  { %v3755_v3 = vadd.f32 %v5061_v59, %v5043_v63  ;;  %v3746_v27 = vpop.f32.mrb[103].mxu0 }
 0x552   :  { %v3747_v37 = vadd.f32 %v3746_v27, %v3648_v13 }
 0x55e   :  { %v5070_v57 = vpop.f32.mrb[104].mxu0 }
 0x55f   :  { %v3875_v41 = vadd.f32 %v5070_v57, %v3721_v1  ;;  %v3813_v7 = vpop.f32.mrb[105].mxu0 }
 0x560   :  { %v5071_v34 = vpop.f32.mrb[106].mxu0 }
 0x561   :  { %v7193_v4 = vadd.f32 %v3889_v28, %v3875_v41  ;;  %v3876_v11 = vadd.f32 %v5071_v34, %v3724_v51  ;;  %v3815_v47 = vpop.f32.mrb[107].mxu0 }
 0x562   :  { %v3874_v10 = vadd.f32 %v3815_v47, %v3716_v52 }
 0x563   :  { %v7196_v18 = vadd.f32 %v7167_v0, %v3876_v11  ;;  %v3958_v12 = vmul.f32 %v7193_v4, %v7193_v4  ;;  %v3921_v25 = vsel %vm1314_vm5, %v7193_v4, 0.0 }
 0x564   :  { %v7201_v30 = vadd.f32 %v3874_v10, %v7163_v2 }
 0x565   :  { %v3959_v14 = vmul.f32 %v7196_v18, %v7196_v18  ;;  %v3974_v2 = vsel %vm1314_vm5, %v3958_v12, 0.0  ;;  %v3923_v20 = vsel %vm1314_vm5, %v7196_v18, 0.0 }
 0x566   :  { %v3920_v28 = vsel %vm1314_vm5, %v7201_v30, 0.0  ;;  %v3957_v40 = vmul.f32 %v7201_v30, %v7201_v30  ;;  %v5074_v0 = vpop.f32.mrb[84].mxu0 }
 0x567   :  { %v3922_v56 = vadd.f32 %v3921_v25, %v3920_v28  ;;  %v7212_v39 = vadd.f32 %v5074_v0, %v7175_v33  ;;  %v3828_v55 = vpop.f32.mrb[85].mxu0  ;;  %v3976_v19 = vsel %vm1314_vm5, %v3959_v14, 0.0 }
 0x568   :  { %v3973_v31 = vsel %vm1314_vm5, %v3957_v40, 0.0  ;;  %v7219_v9 = vadd.f32 %v7165_v5, %v3828_v55  ;;  %v5075_v32 = vpop.f32.mrb[86].mxu0 }
 0x569   :  { %v3975_v36 = vadd.f32 %v3974_v2, %v3973_v31  ;;  %v3924_v45 = vadd.f32 %v3923_v20, %v3922_v56  ;;  %v3831_v21 = vpop.f32.mrb[87].mxu0  ;;  %v7227_v23 = vadd.f32 %v5075_v32, %v7173_v49  ;;  %v3962_v63 = vmul.f32 %v7212_v39, %v7212_v39 }
 0x56a   :  { %v3925_v33 = vsel %vm1314_vm5, %v7219_v9, 0.0  ;;  %v3960_v60 = vmul.f32 %v7219_v9, %v7219_v9  ;;  %v7230_v24 = vadd.f32 %v7169_v53, %v3831_v21  ;;  %v3929_v49 = vsel %vm1314_vm5, %v7212_v39, 0.0 }
 0x56b   :  { %v3926_v5 = vadd.f32 %v3925_v33, %v3924_v45  ;;  %v3977_v6 = vadd.f32 %v3976_v19, %v3975_v36  ;;  %v3963_v58 = vmul.f32 %v7227_v23, %v7227_v23  ;;  %v3931_v62 = vsel %vm1314_vm5, %v7227_v23, 0.0 }
 0x56c   :  { %v3978_v29 = vsel %vm1314_vm5, %v3960_v60, 0.0  ;;  %v3927_v35 = vsel %vm1314_vm5, %v7230_v24, 0.0  ;;  %v3961_v1 = vmul.f32 %v7230_v24, %v7230_v24  ;;  %v3982_v57 = vsel %vm1314_vm5, %v3962_v63, 0.0 }
 0x56d   :  { %v3979_v13 = vadd.f32 %v3978_v29, %v3977_v6  ;;  %v3928_v22 = vadd.f32 %v3927_v35, %v3926_v5  ;;  %v3984_v12 = vsel %vm1314_vm5, %v3963_v58, 0.0 }
 0x56e   :  { %v5078_v53 = vpop.f32.mrb[108].mxu0  ;;  %v3980_v51 = vsel %vm1314_vm5, %v3961_v1, 0.0 }
 0x56f   :  { %v3930_v42 = vadd.f32 %v3929_v49, %v3928_v22  ;;  %v3882_v8 = vadd.f32 %v5078_v53, %v3752_v16  ;;  %v3844_v52 = vpop.f32.mrb[109].mxu0  ;;  %v3981_v59 = vadd.f32 %v3980_v51, %v3979_v13  ;;  %v3933_v16 = vsel %vm1314_vm5, %v7171_v17, 0.0 }
 0x570   :  { %v5079_v27 = vpop.f32.mrb[110].mxu0 }
 0x571   :  { %v3932_v41 = vadd.f32 %v3931_v62, %v3930_v42  ;;  %v7250_v7 = vadd.f32 %v7183_v48, %v3882_v8  ;;  %v3883_v34 = vadd.f32 %v5079_v27, %v3755_v3  ;;  %v3846_v11 = vpop.f32.mrb[111].mxu0  ;;  %v3983_v47 = vadd.f32 %v3982_v57, %v3981_v59 }
 0x572   :  { %v3881_v10 = vadd.f32 %v3846_v11, %v3747_v37  ;;  %v3986_v48 = vsel %vm1314_vm5, %v3964_v15, 0.0  ;;  %v3972_v59 = vmul.f32 %v7187_v50, %v7187_v50  ;;  %v3949_v11 = vsel %vm1314_vm5, %v7187_v50, 0.0 }
 0x573   :  { %v7256_v14 = vadd.f32 %v7181_v61, %v3883_v34  ;;  %v3934_v25 = vadd.f32 %v3933_v16, %v3932_v41  ;;  %v3985_v28 = vadd.f32 %v3984_v12, %v3983_v47  ;;  %v3966_v3 = vmul.f32 %v7250_v7, %v7250_v7 }
 0x574   :  { %v7259_v40 = vadd.f32 %v3881_v10, %v7177_v38  ;;  %v3937_v38 = vsel %vm1314_vm5, %v7250_v7, 0.0  ;;  %v4002_v12 = vsel %vm1314_vm5, %v3972_v59, 0.0 }
 0x575   :  { %v3987_v56 = vadd.f32 %v3986_v48, %v3985_v28  ;;  %v3967_v31 = vmul.f32 %v7256_v14, %v7256_v14  ;;  %v3990_v45 = vsel %vm1314_vm5, %v3966_v3, 0.0 }
 0x576   :  { %v3935_v0 = vsel %vm1314_vm5, %v7259_v40, 0.0  ;;  %v3965_v37 = vmul.f32 %v7259_v40, %v7259_v40  ;;  %v5082_v55 = vpop.f32.mrb[92].mxu0 }
 0x577   :  { %v3936_v61 = vadd.f32 %v3935_v0, %v3934_v25  ;;  %v7269_v2 = vadd.f32 %v5082_v55, %v7191_v44  ;;  %v3859_v20 = vpop.f32.mrb[93].mxu0  ;;  %v3939_v44 = vsel %vm1314_vm5, %v7256_v14, 0.0  ;;  %v3992_v63 = vsel %vm1314_vm5, %v3967_v31, 0.0 }
 0x578   :  { %v3988_v32 = vsel %vm1314_vm5, %v3965_v37, 0.0  ;;  %v7277_v19 = vadd.f32 %v7179_v54, %v3859_v20  ;;  %v5083_v36 = vpop.f32.mrb[94].mxu0 }
 0x579   :  { %v3989_v21 = vadd.f32 %v3988_v32, %v3987_v56  ;;  %v3938_v33 = vadd.f32 %v3937_v38, %v3936_v61  ;;  %v3862_v60 = vpop.f32.mrb[95].mxu0  ;;  %v7285_v6 = vadd.f32 %v5083_v36, %v7189_v43  ;;  %v3970_v53 = vmul.f32 %v7269_v2, %v7269_v2 }
 0x57a   :  { %v3968_v5 = vmul.f32 %v7277_v19, %v7277_v19  ;;  %v7288_v29 = vadd.f32 %v7185_v26, %v3862_v60  ;;  %v3941_v13 = vsel %vm1314_vm5, %v7277_v19, 0.0  ;;  %v3945_v51 = vsel %vm1314_vm5, %v7269_v2, 0.0 }
 0x57b   :  { %v3940_v54 = vadd.f32 %v3939_v44, %v3938_v33  ;;  %v3991_v35 = vadd.f32 %v3990_v45, %v3989_v21  ;;  %v3971_v8 = vmul.f32 %v7285_v6, %v7285_v6  ;;  %v3998_v27 = vsel %vm1314_vm5, %v3970_v53, 0.0  ;;  %v2777_v44 = vld [vmem:[%s7410_s8] sm:$0x1] }
 0x57c   :  { %v3969_v49 = vmul.f32 %v7288_v29, %v7288_v29  ;;  %v3994_v43 = vsel %vm1314_vm5, %v3968_v5, 0.0  ;;  %v3943_v26 = vsel %vm1314_vm5, %v7288_v29, 0.0  ;;  %v3947_v57 = vsel %vm1314_vm5, %v7285_v6, 0.0 }
 0x57d   :  { %v3942_v22 = vadd.f32 %v3941_v13, %v3940_v54  ;;  %v3993_v1 = vadd.f32 %v3992_v63, %v3991_v35  ;;  %v4000_v16 = vsel %vm1314_vm5, %v3971_v8, 0.0  ;;  %v2778_v35 = vld [vmem:[%s7411_s9] sm:$0x1] }
 0x57e   :  { %v3996_v52 = vsel %vm1314_vm5, %v3969_v49, 0.0 }
 0x57f   :  { %v3995_v58 = vadd.f32 %v3994_v43, %v3993_v1  ;;  %v3944_v42 = vadd.f32 %v3943_v26, %v3942_v22 }
 0x581   :  { %v3946_v15 = vadd.f32 %v3945_v51, %v3944_v42  ;;  %v3997_v62 = vadd.f32 %v3996_v52, %v3995_v58 }
 0x583   :  { %v3948_v41 = vadd.f32 %v3947_v57, %v3946_v15  ;;  %v3999_v34 = vadd.f32 %v3998_v27, %v3997_v62 }
 0x585   :  { %v3950_v47 = vadd.f32 %v3949_v11, %v3948_v41  ;;  %v4001_v10 = vadd.f32 %v4000_v16, %v3999_v34 }
 0x587   :  { %v3951_v25 = vrot.slane %v3950_v47, 4  ;;  %v4003_v28 = vadd.f32 %v4002_v12, %v4001_v10 }
 0x589   :  { %v3952_v48 = vadd.f32 %v3951_v25, %v3950_v47  ;;  %v4004_v3 = vrot.slane %v4003_v28, 4 }
 0x58b   :  { %v3953_v0 = vrot.slane %v3952_v48, 2  ;;  %v4005_v37 = vadd.f32 %v4004_v3, %v4003_v28 }
 0x58d   :  { %v3954_v56 = vadd.f32 %v3953_v0, %v3952_v48  ;;  %v4006_v55 = vrot.slane %v4005_v37, 2 }
 0x58f   :  { %v3955_v61 = vrot.slane %v3954_v56, 1  ;;  %v4007_v20 = vadd.f32 %v4006_v55, %v4005_v37 }
 0x591   :  { %v3956_v38 = vadd.f32 %v3955_v61, %v3954_v56  ;;  %v4008_v31 = vrot.slane %v4007_v20, 1 }
 0x593   :  { %v4009_v32 = vadd.f32 %v4008_v31, %v4007_v20  ;;  %v4010_v36 = vmul.f32 0.0078125, %v3956_v38 }
 0x595   :  { %v4011_v45 = vmul.f32 0.0078125, %v4009_v32  ;;  %v4012_v21 = vmul.f32 %v4010_v36, %v4010_v36 }
 0x597   :  { %v4013_v33 = vsub.f32 %v4011_v45, %v4012_v21 }
 0x599   :  { %v4014_v60 = vadd.f32 1e-05, %v4013_v33 }
 0x59b   :  { %5397 = vrsqrt.f32 %v4014_v60 }
 0x5a5   :  { %v5398_v5 = vpop.eup %5397 }
 0x5a6   :  { %v4016_v54 = vmul.f32 %v5398_v5, %v2777_v44 }
 0x5a8   :  { %v4017_v63 = vmul.f32 %v4016_v54, %v4010_v36  ;;  %v4023_v13 = vrot.slane %v4016_v54, %v6193_v46 }
 0x5aa   :  { %v4018_v22 = vsub.f32 %v2778_v35, %v4017_v63  ;;  %v4025_v1 = vmul.f32 %v4023_v13, %v7201_v30  ;;  %v4028_v49 = vmul.f32 %v4023_v13, %v7219_v9  ;;  %v4029_v53 = vmul.f32 %v4023_v13, %v7230_v24 }
 0x5ab   :  { %v4030_v43 = vmul.f32 %v4023_v13, %v7212_v39  ;;  %v4031_v26 = vmul.f32 %v4023_v13, %v7227_v23  ;;  %v4032_v58 = vmul.f32 %v4023_v13, %v7171_v17  ;;  %v4033_v42 = vmul.f32 %v4023_v13, %v7259_v40 }
 0x5ac   :  { %v4034_v51 = vmul.f32 %v4023_v13, %v7250_v7  ;;  %v4035_v8 = vmul.f32 %v4023_v13, %v7256_v14  ;;  %v4036_v52 = vmul.f32 %v4023_v13, %v7277_v19  ;;  %v4037_v30 = vmul.f32 %v4023_v13, %v7288_v29 }
 0x5ad   :  { %v4038_v9 = vmul.f32 %v4023_v13, %v7269_v2  ;;  %v4039_v24 = vmul.f32 %v4023_v13, %v7285_v6  ;;  %v4026_v39 = vmul.f32 %v4023_v13, %v7193_v4  ;;  %v4027_v23 = vmul.f32 %v4023_v13, %v7196_v18 }
 0x5ae   :  { %v4040_v17 = vmul.f32 %v4023_v13, %v7187_v50  ;;  %v4045_v40 = vrot.slane %v4018_v22, %v6193_v46 }
 0x5b0   :  { %v4047_v15 = vadd.f32 %v4045_v40, %v4025_v1  ;;  %v4048_v7 = vadd.f32 %v4045_v40, %v4026_v39  ;;  %v4049_v62 = vadd.f32 %v4045_v40, %v4027_v23  ;;  %v4050_v14 = vadd.f32 %v4045_v40, %v4028_v49 }
 0x5b1   :  { %v4051_v59 = vadd.f32 %v4045_v40, %v4029_v53  ;;  %v4052_v19 = vadd.f32 %v4045_v40, %v4030_v43  ;;  %v4053_v27 = vadd.f32 %v4045_v40, %v4031_v26  ;;  %v4054_v29 = vadd.f32 %v4045_v40, %v4032_v58 }
 0x5b2   :  { %v4055_v57 = vadd.f32 %v4045_v40, %v4033_v42  ;;  %v4056_v2 = vadd.f32 %v4045_v40, %v4034_v51  ;;  %v4057_v41 = vadd.f32 %v4045_v40, %v4035_v8  ;;  %v4058_v6 = vadd.f32 %v4045_v40, %v4036_v52 }
 0x5b3   :  { %v4059_v34 = vadd.f32 %v4045_v40, %v4037_v30  ;;  %v4060_v4 = vadd.f32 %v4045_v40, %v4038_v9  ;;  %v4061_v11 = vadd.f32 %v4045_v40, %v4039_v24  ;;  %v4062_v18 = vadd.f32 %v4045_v40, %v4040_v17 }
 0x5b4   :  { %v4063_v16 = vmax.f32 %v4047_v15, 0.0  ;;  %v4064_v50 = vmax.f32 %v4048_v7, 0.0  ;;  %v4065_v47 = vmax.f32 %v4049_v62, 0.0  ;;  %v4066_v46 = vmax.f32 %v4050_v14, 0.0 }
 0x5b5   :  { %v4067_v10 = vmax.f32 %v4051_v59, 0.0  ;;  %v4068_v12 = vmax.f32 %v4052_v19, 0.0  ;;  %v4069_v25 = vmax.f32 %v4053_v27, 0.0  ;;  %v4070_v28 = vmax.f32 %v4054_v29, 0.0 }
 0x5b6   :  { %v4071_v48 = vmax.f32 %v4055_v57, 0.0  ;;  %v4072_v3 = vmax.f32 %v4056_v2, 0.0  ;;  %v4073_v0 = vmax.f32 %v4057_v41, 0.0  ;;  %v4074_v37 = vmax.f32 %v4058_v6, 0.0  ;;  %4079 = vst.msk [vmem:[%s7412_s10] sm:$0xff] %vm1314_vm5, %v4063_v16  ;;  %4080 = vst.msk [vmem:[%s7412_s10 + $0x8] sm:$0xff] %vm1314_vm5, %v4064_v50 }
 0x5b7   :  { %4081 = vst.msk [vmem:[%s7412_s10 + $0x10] sm:$0xff] %vm1314_vm5, %v4065_v47  ;;  %4082 = vst.msk [vmem:[%s7412_s10 + $0x18] sm:$0xff] %vm1314_vm5, %v4066_v46  ;;  %v4075_v56 = vmax.f32 %v4059_v34, 0.0  ;;  %v4076_v55 = vmax.f32 %v4060_v4, 0.0  ;;  %v4077_v61 = vmax.f32 %v4061_v11, 0.0  ;;  %v4078_v20 = vmax.f32 %v4062_v18, 0.0 }
 0x5b8   :  { %4083 = vst.msk [vmem:[%s7412_s10 + $0x20] sm:$0xff] %vm1314_vm5, %v4067_v10  ;;  %4084 = vst.msk [vmem:[%s7412_s10 + $0x28] sm:$0xff] %vm1314_vm5, %v4068_v12 }
 0x5b9   :  { %4085 = vst.msk [vmem:[%s7412_s10 + $0x30] sm:$0xff] %vm1314_vm5, %v4069_v25  ;;  %4086 = vst.msk [vmem:[%s7412_s10 + $0x38] sm:$0xff] %vm1314_vm5, %v4070_v28 }
 0x5ba   :  { %4087 = vst.msk [vmem:[%s7412_s10 + $0x40] sm:$0xff] %vm1314_vm5, %v4071_v48  ;;  %4088 = vst.msk [vmem:[%s7412_s10 + $0x48] sm:$0xff] %vm1314_vm5, %v4072_v3 }
 0x5bb   :  { %4089 = vst.msk [vmem:[%s7412_s10 + $0x50] sm:$0xff] %vm1314_vm5, %v4073_v0  ;;  %4090 = vst.msk [vmem:[%s7412_s10 + $0x58] sm:$0xff] %vm1314_vm5, %v4074_v37 }
 0x5bc   :  { %4091 = vst.msk [vmem:[%s7412_s10 + $0x60] sm:$0xff] %vm1314_vm5, %v4075_v56  ;;  %4092 = vst.msk [vmem:[%s7412_s10 + $0x68] sm:$0xff] %vm1314_vm5, %v4076_v55 }
 0x5bd   :  { %4093 = vst.msk [vmem:[%s7412_s10 + $0x70] sm:$0xff] %vm1314_vm5, %v4077_v61  ;;  %4094 = vst.msk [vmem:[%s7412_s10 + $0x78] sm:$0xff] %vm1314_vm5, %v4078_v20 }

</bundles_post_ra>
